<compile_context>
chip_gen: v7x
topology: tpu7x:2x2x1
jax: 0.10.0
libtpu: 0.0.40
codegen_flags: <defaults>
</compile_context>

<pallas_src>
import functools

import jax
import jax.numpy as jnp
import numpy as np
from jax.experimental import pallas as pl
from jax.experimental.pallas import tpu as pltpu


def _round_up(x, m):
    return ((x + m - 1) // m) * m


# ----------------------------------------------------------------------------
# Pallas kernel: one tile of Bt rows per grid step, processed in static
# RC-row sub-chunks.  Everything is 2-D [RC, F] / [RC, 128] f32.
# ----------------------------------------------------------------------------
def fur_kernel(in_ref,
               w1l_ref, b1l_ref, w2l_ref, b2l_ref,
               w1s_ref, b1s_ref, w2s_ref, b2s_ref,
               out_ref,
               *, select_num, n_chan, hidden, feat, row_chunk,
               trend_threshold, out_w):
    S, C, H, F, RC = select_num, n_chan, hidden, feat, row_chunk
    Din = C + 1
    Bt = out_ref.shape[0]
    n_chunks = Bt // RC
    NEG_INF = jnp.float32(-jnp.inf)

    for k in range(n_chunks):                     # static sub-chunks: small vreg set
        r0 = k * RC

        x1 = in_ref[0, r0:r0 + RC, :]             # [RC, F]
        x2 = in_ref[1, r0:r0 + RC, :]             # [RC, F]

        # ---- 1) trend decision (only needs mean(x1)) -----------------------
        mean1 = jnp.sum(x1, axis=1, keepdims=True) / jnp.float32(F)    # [RC, 1]
        trend = mean1 > jnp.float32(trend_threshold)                   # [RC, 1] bool

        # ---- 2) tiny MLP at ALL F positions (gather & elementwise MLP commute)
        # per-row weight select: l_net weights for trend rows, s_net otherwise
        def wsel(a_ref, b_ref, i):
            return jnp.where(trend, a_ref[i], b_ref[i])                # [RC, 1]

        x_sel = jnp.where(trend, x2, x1)                               # [RC, F]
        out_full = None
        for j in range(H):                                             # H unrolled
            pre = x_sel * wsel(w1l_ref, w1s_ref, j * Din) + wsel(b1l_ref, b1s_ref, j)
            for c in range(C):
                pt_c = in_ref[2 + c, r0:r0 + RC, :]                    # cheap vld reload
                pre = pre + pt_c * wsel(w1l_ref, w1s_ref, j * Din + 1 + c)
            h = jnp.maximum(pre, jnp.float32(0.0))
            term = h * wsel(w2l_ref, w2s_ref, j)
            out_full = term if out_full is None else out_full + term
        out_full = out_full + wsel(b2l_ref, b2s_ref, 0)                # [RC, F]

        # ---- 3) single fused top-k ------------------------------------------
        # largest-k of where(trend, x2, -x1)
        #   == descending argsort of x2 (trend) | ascending argsort of x1 (else)
        vals = jnp.where(trend, x2, -x1)                               # [RC, F]
        iota_f = jax.lax.broadcasted_iota(jnp.int32, (RC, F), 1)
        lane_i = jax.lax.broadcasted_iota(jnp.int32, (RC, out_w), 1)

        # result slab: lanes [0,S) = output, [S,2S) = combine idx, lane 2S = trend
        slab = jnp.where(lane_i == 2 * S, trend.astype(jnp.float32), jnp.float32(0.0))

        masked = vals
        for s in range(S):                                             # S unrolled
            ext = jnp.max(masked, axis=1, keepdims=True)               # [RC, 1]
            hit = masked == ext
            idx = jnp.min(jnp.where(hit, iota_f, F), axis=1, keepdims=True)  # 1st hit
            sel = iota_f == idx                                        # exact one-hot
            g = jnp.sum(jnp.where(sel, out_full, jnp.float32(0.0)),
                        axis=1, keepdims=True)                         # gathered MLP out
            slab = jnp.where(lane_i == s, g, slab)
            slab = jnp.where(lane_i == S + s, idx.astype(jnp.float32), slab)
            masked = jnp.where(sel, NEG_INF, masked)

        out_ref[r0:r0 + RC, :] = slab                                  # full-width store


# ----------------------------------------------------------------------------
# Wrapper
# ----------------------------------------------------------------------------
def fur_strategy_pallas(x1, x2, past_targets, params,
                        select_num=10, trend_threshold=0.55, ignore_next=False):
    B, F = x1.shape
    C = past_targets.shape[-1]
    S = select_num
    assert S <= F, "select_num must not exceed features_dim"
    (w1l, b1l), (w2l, b2l), (w1s, b1s), (w2s, b2s) = params
    H, Din = w1l.shape
    assert Din == C + 1

    # Row tiling: grid tiles of Bt rows, kernel-internal sub-chunks of RC rows.
    # Bt capped at 256 so the grid has >= 2 steps for large B (v7x: 2 TCs).
    Bt = min(256, _round_up(B, 8))
    RC = min(64, Bt)
    Bt = _round_up(Bt, RC)
    Bp = _round_up(B, Bt)

    x1f = x1.astype(jnp.float32)
    x2f = x2.astype(jnp.float32)
    ptf = past_targets.astype(jnp.float32)
    if Bp != B:
        pad = Bp - B
        x1f = jnp.pad(x1f, ((0, pad), (0, 0)))
        x2f = jnp.pad(x2f, ((0, pad), (0, 0)))
        ptf = jnp.pad(ptf, ((0, pad), (0, 0), (0, 0)))

    # Single packed input tensor: group 0 = x1, 1 = x2, 2+c = past_targets[..., c]
    packed = jnp.concatenate(
        [x1f[None], x2f[None], jnp.transpose(ptf, (2, 0, 1))], axis=0)  # [2+C, Bp, F]
    G = 2 + C

    out_w = 128
    while out_w < 2 * S + 1:
        out_w += 128

    kernel = functools.partial(
        fur_kernel, select_num=S, n_chan=C, hidden=H, feat=F, row_chunk=RC,
        trend_threshold=float(trend_threshold), out_w=out_w)

    smem = pl.BlockSpec(memory_space=pltpu.MemorySpace.SMEM)

    slab = pl.pallas_call(
        kernel,
        out_shape=jax.ShapeDtypeStruct((Bp, out_w), jnp.float32),
        grid=(Bp // Bt,),
        in_specs=[
            pl.BlockSpec((G, Bt, F), lambda i: (0, i, 0)),
            smem, smem, smem, smem,   # l_net params (flat, SMEM scalars)
            smem, smem, smem, smem,   # s_net params
        ],
        out_specs=pl.BlockSpec((Bt, out_w), lambda i: (i, 0)),
        compiler_params=pltpu.CompilerParams(dimension_semantics=("parallel",)),
    )(
        packed,
        w1l.reshape(-1).astype(jnp.float32), b1l.reshape(-1).astype(jnp.float32),
        w2l.reshape(-1).astype(jnp.float32), b2l.reshape(-1).astype(jnp.float32),
        w1s.reshape(-1).astype(jnp.float32), b1s.reshape(-1).astype(jnp.float32),
        w2s.reshape(-1).astype(jnp.float32), b2s.reshape(-1).astype(jnp.float32),
    )

    slab = slab[:B]
    output = slab[:, :S]
    combine = slab[:, S:2 * S].astype(jnp.int32)   # torch returns int64; int32 here
    trend = slab[:, 2 * S] > 0.5
    if ignore_next:
        return jnp.ones((B, S), jnp.float32), trend, combine
    return output, trend, combine


# ----------------------------------------------------------------------------
# Pure-JAX reference (mirrors the PyTorch forward) for verification.
# ----------------------------------------------------------------------------
def fur_strategy_ref(x1, x2, past_targets, params, select_num, trend_threshold):
    (w1l, b1l), (w2l, b2l), (w1s, b1s), (w2s, b2s) = params
    mean1 = jnp.mean(x1, axis=1)
    trend = mean1 > trend_threshold
    sel_s = jnp.argsort(x1, axis=1)[:, :select_num]
    sel_l = jnp.argsort(-x2, axis=1)[:, :select_num]
    combine = jnp.where(trend[:, None], sel_l, sel_s).astype(jnp.int32)
    x1g = jnp.take_along_axis(x1, sel_s, axis=1)
    x2g = jnp.take_along_axis(x2, sel_l, axis=1)
    pts = jnp.take_along_axis(past_targets, sel_s[:, :, None], axis=1)
    ptl = jnp.take_along_axis(past_targets, sel_l[:, :, None], axis=1)
    s_in = jnp.concatenate([x1g[..., None], pts], axis=-1)
    l_in = jnp.concatenate([x2g[..., None], ptl], axis=-1)

    def mlp(x, w1, b1, w2, b2):
        h = jax.nn.relu(x @ w1.T + b1)
        return h @ w2.T + b2

    s_out = mlp(s_in, w1s, b1s, w2s, b2s)[..., 0]
    l_out = mlp(l_in, w1l, b1l, w2l, b2l)[..., 0]
    out = jnp.where(trend[:, None], l_out, s_out)
    return out, trend, combine


# ----------------------------------------------------------------------------
# Main
# ----------------------------------------------------------------------------
if __name__ == "__main__":
    # module hyper-params
    features_dim = 16          # F
    hidden_size = 8            # H
    select_num = 10            # S
    past_tar_dim = 3           # -> C = 2*past_tar_dim = 6, Din = 7
    trend_threshold = 0.55
    B = 4
    C = 2 * past_tar_dim
    Din = C + 1

    key = jax.random.PRNGKey(0)
    k = jax.random.split(key, 16)

    def init_linear(kw, kb, out_dim, in_dim):
        bound = 1.0 / np.sqrt(in_dim)
        W = jax.random.uniform(kw, (out_dim, in_dim), jnp.float32, -bound, bound)
        b = jax.random.uniform(kb, (out_dim,), jnp.float32, -bound, bound)
        return W, b

    # l_net / s_net: Linear(Din, H) -> ReLU -> Linear(H, 1)
    l_lin1 = init_linear(k[0], k[1], hidden_size, Din)
    l_lin2 = init_linear(k[2], k[3], 1, hidden_size)
    s_lin1 = init_linear(k[4], k[5], hidden_size, Din)
    s_lin2 = init_linear(k[6], k[7], 1, hidden_size)
    params = (l_lin1, l_lin2, s_lin1, s_lin2)

    # inputs: per-batch offsets so both trend=True and trend=False branches occur
    offsets = jnp.array([0.0, 0.3, -0.1, 0.25], jnp.float32)
    x1 = jax.random.uniform(k[8], (B, features_dim), jnp.float32) + offsets[:, None]
    x2 = jax.random.uniform(k[9], (B, features_dim), jnp.float32)
    past_targets = 0.1 * jax.random.normal(k[10], (B, features_dim, C), jnp.float32)

    out, trend, combine = fur_strategy_pallas(
        x1, x2, past_targets, params,
        select_num=select_num, trend_threshold=trend_threshold)
    jax.block_until_ready((out, trend, combine))

    out_r, trend_r, comb_r = fur_strategy_ref(
        x1, x2, past_targets, params, select_num, trend_threshold)

    np.testing.assert_array_equal(np.asarray(trend), np.asarray(trend_r))
    np.testing.assert_array_equal(np.asarray(combine), np.asarray(comb_r))
    np.testing.assert_allclose(np.asarray(out), np.asarray(out_r), atol=1e-5, rtol=1e-5)

    print("KERNEL_OK")
</pallas_src>

<mosaic_0001>
module attributes {stable_mosaic.version = 11 : i64} {
  func.func @fur_kernel(%arg0: i32, %arg1: memref<8x8x16xf32, #tpu.memory_space<vmem>>, %arg2: memref<56xf32, #tpu.memory_space<smem>>, %arg3: memref<8xf32, #tpu.memory_space<smem>>, %arg4: memref<8xf32, #tpu.memory_space<smem>>, %arg5: memref<1xf32, #tpu.memory_space<smem>>, %arg6: memref<56xf32, #tpu.memory_space<smem>>, %arg7: memref<8xf32, #tpu.memory_space<smem>>, %arg8: memref<8xf32, #tpu.memory_space<smem>>, %arg9: memref<1xf32, #tpu.memory_space<smem>>, %arg10: memref<8x128xf32, #tpu.memory_space<vmem>>) attributes {dimension_semantics = [#tpu.dimension_semantics<parallel>], iteration_bounds = array<i64: 1>, scalar_prefetch = 0 : i64, scratch_operands = 0 : i64, tpu.core_type = #tpu.core_type<tc>, window_params = [{transform_indices = @transform_0, window_bounds = array<i64: 8, 8, 16>}, {transform_indices = @transform_1, window_bounds = array<i64: 56>}, {transform_indices = @transform_2, window_bounds = array<i64: 8>}, {transform_indices = @transform_3, window_bounds = array<i64: 8>}, {transform_indices = @transform_4, window_bounds = array<i64: 1>}, {transform_indices = @transform_5, window_bounds = array<i64: 56>}, {transform_indices = @transform_6, window_bounds = array<i64: 8>}, {transform_indices = @transform_7, window_bounds = array<i64: 8>}, {transform_indices = @transform_8, window_bounds = array<i64: 1>}, {transform_indices = @transform_9, window_bounds = array<i64: 8, 128>}]} {
    %c0 = arith.constant 0 : index
    %c0_0 = arith.constant 0 : index
    %c0_1 = arith.constant 0 : index
    %0 = vector.load %arg1[%c0, %c0_0, %c0_1] : memref<8x8x16xf32, #tpu.memory_space<vmem>>, vector<1x8x16xf32>
    %1 = vector.shape_cast %0 : vector<1x8x16xf32> to vector<8x16xf32>
    %c1 = arith.constant 1 : index
    %c0_2 = arith.constant 0 : index
    %c0_3 = arith.constant 0 : index
    %2 = vector.load %arg1[%c1, %c0_2, %c0_3] : memref<8x8x16xf32, #tpu.memory_space<vmem>>, vector<1x8x16xf32>
    %3 = vector.shape_cast %2 : vector<1x8x16xf32> to vector<8x16xf32>
    %cst = arith.constant dense<0.000000e+00> : vector<8xf32>
    %4 = vector.multi_reduction <add>, %1, %cst [1] : vector<8x16xf32> to vector<8xf32>
    %5 = vector.shape_cast %4 : vector<8xf32> to vector<8x1xf32>
    %cst_4 = arith.constant 1.600000e+01 : f32
    %6 = vector.broadcast %cst_4 : f32 to vector<8x1xf32>
    %7 = arith.divf %5, %6 : vector<8x1xf32>
    %cst_5 = arith.constant 5.500000e-01 : f32
    %8 = vector.broadcast %cst_5 : f32 to vector<8x1xf32>
    %9 = arith.cmpf ogt, %7, %8 : vector<8x1xf32>
    %10 = vector.shape_cast %9 : vector<8x1xi1> to vector<8x1xi1>
    %11 = vector.broadcast %10 : vector<8x1xi1> to vector<8x16xi1>
    %12 = arith.select %11, %3, %1 : vector<8x16xi1>, vector<8x16xf32>
    %c0_6 = arith.constant 0 : index
    %13 = memref.load %arg2[%c0_6] : memref<56xf32, #tpu.memory_space<smem>>
    %c0_7 = arith.constant 0 : index
    %14 = memref.load %arg6[%c0_7] : memref<56xf32, #tpu.memory_space<smem>>
    %15 = vector.broadcast %13 : f32 to vector<8x1xf32>
    %16 = vector.broadcast %14 : f32 to vector<8x1xf32>
    %17 = arith.select %9, %15, %16 : vector<8x1xi1>, vector<8x1xf32>
    %18 = vector.broadcast %17 : vector<8x1xf32> to vector<8x16xf32>
    %19 = arith.mulf %12, %18 : vector<8x16xf32>
    %c0_8 = arith.constant 0 : index
    %20 = memref.load %arg3[%c0_8] : memref<8xf32, #tpu.memory_space<smem>>
    %c0_9 = arith.constant 0 : index
    %21 = memref.load %arg7[%c0_9] : memref<8xf32, #tpu.memory_space<smem>>
    %22 = vector.broadcast %20 : f32 to vector<8x1xf32>
    %23 = vector.broadcast %21 : f32 to vector<8x1xf32>
    %24 = arith.select %9, %22, %23 : vector<8x1xi1>, vector<8x1xf32>
    %25 = vector.broadcast %24 : vector<8x1xf32> to vector<8x16xf32>
    %26 = arith.addf %19, %25 : vector<8x16xf32>
    %c2 = arith.constant 2 : index
    %c0_10 = arith.constant 0 : index
    %c0_11 = arith.constant 0 : index
    %27 = vector.load %arg1[%c2, %c0_10, %c0_11] : memref<8x8x16xf32, #tpu.memory_space<vmem>>, vector<1x8x16xf32>
    %28 = vector.shape_cast %27 : vector<1x8x16xf32> to vector<8x16xf32>
    %c1_12 = arith.constant 1 : index
    %29 = memref.load %arg2[%c1_12] : memref<56xf32, #tpu.memory_space<smem>>
    %c1_13 = arith.constant 1 : index
    %30 = memref.load %arg6[%c1_13] : memref<56xf32, #tpu.memory_space<smem>>
    %31 = vector.broadcast %29 : f32 to vector<8x1xf32>
    %32 = vector.broadcast %30 : f32 to vector<8x1xf32>
    %33 = arith.select %9, %31, %32 : vector<8x1xi1>, vector<8x1xf32>
    %34 = vector.broadcast %33 : vector<8x1xf32> to vector<8x16xf32>
    %35 = arith.mulf %28, %34 : vector<8x16xf32>
    %36 = arith.addf %26, %35 : vector<8x16xf32>
    %c3 = arith.constant 3 : index
    %c0_14 = arith.constant 0 : index
    %c0_15 = arith.constant 0 : index
    %37 = vector.load %arg1[%c3, %c0_14, %c0_15] : memref<8x8x16xf32, #tpu.memory_space<vmem>>, vector<1x8x16xf32>
    %38 = vector.shape_cast %37 : vector<1x8x16xf32> to vector<8x16xf32>
    %c2_16 = arith.constant 2 : index
    %39 = memref.load %arg2[%c2_16] : memref<56xf32, #tpu.memory_space<smem>>
    %c2_17 = arith.constant 2 : index
    %40 = memref.load %arg6[%c2_17] : memref<56xf32, #tpu.memory_space<smem>>
    %41 = vector.broadcast %39 : f32 to vector<8x1xf32>
    %42 = vector.broadcast %40 : f32 to vector<8x1xf32>
    %43 = arith.select %9, %41, %42 : vector<8x1xi1>, vector<8x1xf32>
    %44 = vector.broadcast %43 : vector<8x1xf32> to vector<8x16xf32>
    %45 = arith.mulf %38, %44 : vector<8x16xf32>
    %46 = arith.addf %36, %45 : vector<8x16xf32>
    %c4 = arith.constant 4 : index
    %c0_18 = arith.constant 0 : index
    %c0_19 = arith.constant 0 : index
    %47 = vector.load %arg1[%c4, %c0_18, %c0_19] : memref<8x8x16xf32, #tpu.memory_space<vmem>>, vector<1x8x16xf32>
    %48 = vector.shape_cast %47 : vector<1x8x16xf32> to vector<8x16xf32>
    %c3_20 = arith.constant 3 : index
    %49 = memref.load %arg2[%c3_20] : memref<56xf32, #tpu.memory_space<smem>>
    %c3_21 = arith.constant 3 : index
    %50 = memref.load %arg6[%c3_21] : memref<56xf32, #tpu.memory_space<smem>>
    %51 = vector.broadcast %49 : f32 to vector<8x1xf32>
    %52 = vector.broadcast %50 : f32 to vector<8x1xf32>
    %53 = arith.select %9, %51, %52 : vector<8x1xi1>, vector<8x1xf32>
    %54 = vector.broadcast %53 : vector<8x1xf32> to vector<8x16xf32>
    %55 = arith.mulf %48, %54 : vector<8x16xf32>
    %56 = arith.addf %46, %55 : vector<8x16xf32>
    %c5 = arith.constant 5 : index
    %c0_22 = arith.constant 0 : index
    %c0_23 = arith.constant 0 : index
    %57 = vector.load %arg1[%c5, %c0_22, %c0_23] : memref<8x8x16xf32, #tpu.memory_space<vmem>>, vector<1x8x16xf32>
    %58 = vector.shape_cast %57 : vector<1x8x16xf32> to vector<8x16xf32>
    %c4_24 = arith.constant 4 : index
    %59 = memref.load %arg2[%c4_24] : memref<56xf32, #tpu.memory_space<smem>>
    %c4_25 = arith.constant 4 : index
    %60 = memref.load %arg6[%c4_25] : memref<56xf32, #tpu.memory_space<smem>>
    %61 = vector.broadcast %59 : f32 to vector<8x1xf32>
    %62 = vector.broadcast %60 : f32 to vector<8x1xf32>
    %63 = arith.select %9, %61, %62 : vector<8x1xi1>, vector<8x1xf32>
    %64 = vector.broadcast %63 : vector<8x1xf32> to vector<8x16xf32>
    %65 = arith.mulf %58, %64 : vector<8x16xf32>
    %66 = arith.addf %56, %65 : vector<8x16xf32>
    %c6 = arith.constant 6 : index
    %c0_26 = arith.constant 0 : index
    %c0_27 = arith.constant 0 : index
    %67 = vector.load %arg1[%c6, %c0_26, %c0_27] : memref<8x8x16xf32, #tpu.memory_space<vmem>>, vector<1x8x16xf32>
    %68 = vector.shape_cast %67 : vector<1x8x16xf32> to vector<8x16xf32>
    %c5_28 = arith.constant 5 : index
    %69 = memref.load %arg2[%c5_28] : memref<56xf32, #tpu.memory_space<smem>>
    %c5_29 = arith.constant 5 : index
    %70 = memref.load %arg6[%c5_29] : memref<56xf32, #tpu.memory_space<smem>>
    %71 = vector.broadcast %69 : f32 to vector<8x1xf32>
    %72 = vector.broadcast %70 : f32 to vector<8x1xf32>
    %73 = arith.select %9, %71, %72 : vector<8x1xi1>, vector<8x1xf32>
    %74 = vector.broadcast %73 : vector<8x1xf32> to vector<8x16xf32>
    %75 = arith.mulf %68, %74 : vector<8x16xf32>
    %76 = arith.addf %66, %75 : vector<8x16xf32>
    %c7 = arith.constant 7 : index
    %c0_30 = arith.constant 0 : index
    %c0_31 = arith.constant 0 : index
    %77 = vector.load %arg1[%c7, %c0_30, %c0_31] : memref<8x8x16xf32, #tpu.memory_space<vmem>>, vector<1x8x16xf32>
    %78 = vector.shape_cast %77 : vector<1x8x16xf32> to vector<8x16xf32>
    %c6_32 = arith.constant 6 : index
    %79 = memref.load %arg2[%c6_32] : memref<56xf32, #tpu.memory_space<smem>>
    %c6_33 = arith.constant 6 : index
    %80 = memref.load %arg6[%c6_33] : memref<56xf32, #tpu.memory_space<smem>>
    %81 = vector.broadcast %79 : f32 to vector<8x1xf32>
    %82 = vector.broadcast %80 : f32 to vector<8x1xf32>
    %83 = arith.select %9, %81, %82 : vector<8x1xi1>, vector<8x1xf32>
    %84 = vector.broadcast %83 : vector<8x1xf32> to vector<8x16xf32>
    %85 = arith.mulf %78, %84 : vector<8x16xf32>
    %86 = arith.addf %76, %85 : vector<8x16xf32>
    %cst_34 = arith.constant 0.000000e+00 : f32
    %87 = vector.broadcast %cst_34 : f32 to vector<8x16xf32>
    %88 = arith.maximumf %86, %87 : vector<8x16xf32>
    %c0_35 = arith.constant 0 : index
    %89 = memref.load %arg4[%c0_35] : memref<8xf32, #tpu.memory_space<smem>>
    %c0_36 = arith.constant 0 : index
    %90 = memref.load %arg8[%c0_36] : memref<8xf32, #tpu.memory_space<smem>>
    %91 = vector.broadcast %89 : f32 to vector<8x1xf32>
    %92 = vector.broadcast %90 : f32 to vector<8x1xf32>
    %93 = arith.select %9, %91, %92 : vector<8x1xi1>, vector<8x1xf32>
    %94 = vector.broadcast %93 : vector<8x1xf32> to vector<8x16xf32>
    %95 = arith.mulf %88, %94 : vector<8x16xf32>
    %c7_37 = arith.constant 7 : index
    %96 = memref.load %arg2[%c7_37] : memref<56xf32, #tpu.memory_space<smem>>
    %c7_38 = arith.constant 7 : index
    %97 = memref.load %arg6[%c7_38] : memref<56xf32, #tpu.memory_space<smem>>
    %98 = vector.broadcast %96 : f32 to vector<8x1xf32>
    %99 = vector.broadcast %97 : f32 to vector<8x1xf32>
    %100 = arith.select %9, %98, %99 : vector<8x1xi1>, vector<8x1xf32>
    %101 = vector.broadcast %100 : vector<8x1xf32> to vector<8x16xf32>
    %102 = arith.mulf %12, %101 : vector<8x16xf32>
    %c1_39 = arith.constant 1 : index
    %103 = memref.load %arg3[%c1_39] : memref<8xf32, #tpu.memory_space<smem>>
    %c1_40 = arith.constant 1 : index
    %104 = memref.load %arg7[%c1_40] : memref<8xf32, #tpu.memory_space<smem>>
    %105 = vector.broadcast %103 : f32 to vector<8x1xf32>
    %106 = vector.broadcast %104 : f32 to vector<8x1xf32>
    %107 = arith.select %9, %105, %106 : vector<8x1xi1>, vector<8x1xf32>
    %108 = vector.broadcast %107 : vector<8x1xf32> to vector<8x16xf32>
    %109 = arith.addf %102, %108 : vector<8x16xf32>
    %c2_41 = arith.constant 2 : index
    %c0_42 = arith.constant 0 : index
    %c0_43 = arith.constant 0 : index
    %110 = vector.load %arg1[%c2_41, %c0_42, %c0_43] : memref<8x8x16xf32, #tpu.memory_space<vmem>>, vector<1x8x16xf32>
    %111 = vector.shape_cast %110 : vector<1x8x16xf32> to vector<8x16xf32>
    %c8 = arith.constant 8 : index
    %112 = memref.load %arg2[%c8] : memref<56xf32, #tpu.memory_space<smem>>
    %c8_44 = arith.constant 8 : index
    %113 = memref.load %arg6[%c8_44] : memref<56xf32, #tpu.memory_space<smem>>
    %114 = vector.broadcast %112 : f32 to vector<8x1xf32>
    %115 = vector.broadcast %113 : f32 to vector<8x1xf32>
    %116 = arith.select %9, %114, %115 : vector<8x1xi1>, vector<8x1xf32>
    %117 = vector.broadcast %116 : vector<8x1xf32> to vector<8x16xf32>
    %118 = arith.mulf %111, %117 : vector<8x16xf32>
    %119 = arith.addf %109, %118 : vector<8x16xf32>
    %c3_45 = arith.constant 3 : index
    %c0_46 = arith.constant 0 : index
    %c0_47 = arith.constant 0 : index
    %120 = vector.load %arg1[%c3_45, %c0_46, %c0_47] : memref<8x8x16xf32, #tpu.memory_space<vmem>>, vector<1x8x16xf32>
    %121 = vector.shape_cast %120 : vector<1x8x16xf32> to vector<8x16xf32>
    %c9 = arith.constant 9 : index
    %122 = memref.load %arg2[%c9] : memref<56xf32, #tpu.memory_space<smem>>
    %c9_48 = arith.constant 9 : index
    %123 = memref.load %arg6[%c9_48] : memref<56xf32, #tpu.memory_space<smem>>
    %124 = vector.broadcast %122 : f32 to vector<8x1xf32>
    %125 = vector.broadcast %123 : f32 to vector<8x1xf32>
    %126 = arith.select %9, %124, %125 : vector<8x1xi1>, vector<8x1xf32>
    %127 = vector.broadcast %126 : vector<8x1xf32> to vector<8x16xf32>
    %128 = arith.mulf %121, %127 : vector<8x16xf32>
    %129 = arith.addf %119, %128 : vector<8x16xf32>
    %c4_49 = arith.constant 4 : index
    %c0_50 = arith.constant 0 : index
    %c0_51 = arith.constant 0 : index
    %130 = vector.load %arg1[%c4_49, %c0_50, %c0_51] : memref<8x8x16xf32, #tpu.memory_space<vmem>>, vector<1x8x16xf32>
    %131 = vector.shape_cast %130 : vector<1x8x16xf32> to vector<8x16xf32>
    %c10 = arith.constant 10 : index
    %132 = memref.load %arg2[%c10] : memref<56xf32, #tpu.memory_space<smem>>
    %c10_52 = arith.constant 10 : index
    %133 = memref.load %arg6[%c10_52] : memref<56xf32, #tpu.memory_space<smem>>
    %134 = vector.broadcast %132 : f32 to vector<8x1xf32>
    %135 = vector.broadcast %133 : f32 to vector<8x1xf32>
    %136 = arith.select %9, %134, %135 : vector<8x1xi1>, vector<8x1xf32>
    %137 = vector.broadcast %136 : vector<8x1xf32> to vector<8x16xf32>
    %138 = arith.mulf %131, %137 : vector<8x16xf32>
    %139 = arith.addf %129, %138 : vector<8x16xf32>
    %c5_53 = arith.constant 5 : index
    %c0_54 = arith.constant 0 : index
    %c0_55 = arith.constant 0 : index
    %140 = vector.load %arg1[%c5_53, %c0_54, %c0_55] : memref<8x8x16xf32, #tpu.memory_space<vmem>>, vector<1x8x16xf32>
    %141 = vector.shape_cast %140 : vector<1x8x16xf32> to vector<8x16xf32>
    %c11 = arith.constant 11 : index
    %142 = memref.load %arg2[%c11] : memref<56xf32, #tpu.memory_space<smem>>
    %c11_56 = arith.constant 11 : index
    %143 = memref.load %arg6[%c11_56] : memref<56xf32, #tpu.memory_space<smem>>
    %144 = vector.broadcast %142 : f32 to vector<8x1xf32>
    %145 = vector.broadcast %143 : f32 to vector<8x1xf32>
    %146 = arith.select %9, %144, %145 : vector<8x1xi1>, vector<8x1xf32>
    %147 = vector.broadcast %146 : vector<8x1xf32> to vector<8x16xf32>
    %148 = arith.mulf %141, %147 : vector<8x16xf32>
    %149 = arith.addf %139, %148 : vector<8x16xf32>
    %c6_57 = arith.constant 6 : index
    %c0_58 = arith.constant 0 : index
    %c0_59 = arith.constant 0 : index
    %150 = vector.load %arg1[%c6_57, %c0_58, %c0_59] : memref<8x8x16xf32, #tpu.memory_space<vmem>>, vector<1x8x16xf32>
    %151 = vector.shape_cast %150 : vector<1x8x16xf32> to vector<8x16xf32>
    %c12 = arith.constant 12 : index
    %152 = memref.load %arg2[%c12] : memref<56xf32, #tpu.memory_space<smem>>
    %c12_60 = arith.constant 12 : index
    %153 = memref.load %arg6[%c12_60] : memref<56xf32, #tpu.memory_space<smem>>
    %154 = vector.broadcast %152 : f32 to vector<8x1xf32>
    %155 = vector.broadcast %153 : f32 to vector<8x1xf32>
    %156 = arith.select %9, %154, %155 : vector<8x1xi1>, vector<8x1xf32>
    %157 = vector.broadcast %156 : vector<8x1xf32> to vector<8x16xf32>
    %158 = arith.mulf %151, %157 : vector<8x16xf32>
    %159 = arith.addf %149, %158 : vector<8x16xf32>
    %c7_61 = arith.constant 7 : index
    %c0_62 = arith.constant 0 : index
    %c0_63 = arith.constant 0 : index
    %160 = vector.load %arg1[%c7_61, %c0_62, %c0_63] : memref<8x8x16xf32, #tpu.memory_space<vmem>>, vector<1x8x16xf32>
    %161 = vector.shape_cast %160 : vector<1x8x16xf32> to vector<8x16xf32>
    %c13 = arith.constant 13 : index
    %162 = memref.load %arg2[%c13] : memref<56xf32, #tpu.memory_space<smem>>
    %c13_64 = arith.constant 13 : index
    %163 = memref.load %arg6[%c13_64] : memref<56xf32, #tpu.memory_space<smem>>
    %164 = vector.broadcast %162 : f32 to vector<8x1xf32>
    %165 = vector.broadcast %163 : f32 to vector<8x1xf32>
    %166 = arith.select %9, %164, %165 : vector<8x1xi1>, vector<8x1xf32>
    %167 = vector.broadcast %166 : vector<8x1xf32> to vector<8x16xf32>
    %168 = arith.mulf %161, %167 : vector<8x16xf32>
    %169 = arith.addf %159, %168 : vector<8x16xf32>
    %cst_65 = arith.constant 0.000000e+00 : f32
    %170 = vector.broadcast %cst_65 : f32 to vector<8x16xf32>
    %171 = arith.maximumf %169, %170 : vector<8x16xf32>
    %c1_66 = arith.constant 1 : index
    %172 = memref.load %arg4[%c1_66] : memref<8xf32, #tpu.memory_space<smem>>
    %c1_67 = arith.constant 1 : index
    %173 = memref.load %arg8[%c1_67] : memref<8xf32, #tpu.memory_space<smem>>
    %174 = vector.broadcast %172 : f32 to vector<8x1xf32>
    %175 = vector.broadcast %173 : f32 to vector<8x1xf32>
    %176 = arith.select %9, %174, %175 : vector<8x1xi1>, vector<8x1xf32>
    %177 = vector.broadcast %176 : vector<8x1xf32> to vector<8x16xf32>
    %178 = arith.mulf %171, %177 : vector<8x16xf32>
    %179 = arith.addf %95, %178 : vector<8x16xf32>
    %c14 = arith.constant 14 : index
    %180 = memref.load %arg2[%c14] : memref<56xf32, #tpu.memory_space<smem>>
    %c14_68 = arith.constant 14 : index
    %181 = memref.load %arg6[%c14_68] : memref<56xf32, #tpu.memory_space<smem>>
    %182 = vector.broadcast %180 : f32 to vector<8x1xf32>
    %183 = vector.broadcast %181 : f32 to vector<8x1xf32>
    %184 = arith.select %9, %182, %183 : vector<8x1xi1>, vector<8x1xf32>
    %185 = vector.broadcast %184 : vector<8x1xf32> to vector<8x16xf32>
    %186 = arith.mulf %12, %185 : vector<8x16xf32>
    %c2_69 = arith.constant 2 : index
    %187 = memref.load %arg3[%c2_69] : memref<8xf32, #tpu.memory_space<smem>>
    %c2_70 = arith.constant 2 : index
    %188 = memref.load %arg7[%c2_70] : memref<8xf32, #tpu.memory_space<smem>>
    %189 = vector.broadcast %187 : f32 to vector<8x1xf32>
    %190 = vector.broadcast %188 : f32 to vector<8x1xf32>
    %191 = arith.select %9, %189, %190 : vector<8x1xi1>, vector<8x1xf32>
    %192 = vector.broadcast %191 : vector<8x1xf32> to vector<8x16xf32>
    %193 = arith.addf %186, %192 : vector<8x16xf32>
    %c2_71 = arith.constant 2 : index
    %c0_72 = arith.constant 0 : index
    %c0_73 = arith.constant 0 : index
    %194 = vector.load %arg1[%c2_71, %c0_72, %c0_73] : memref<8x8x16xf32, #tpu.memory_space<vmem>>, vector<1x8x16xf32>
    %195 = vector.shape_cast %194 : vector<1x8x16xf32> to vector<8x16xf32>
    %c15 = arith.constant 15 : index
    %196 = memref.load %arg2[%c15] : memref<56xf32, #tpu.memory_space<smem>>
    %c15_74 = arith.constant 15 : index
    %197 = memref.load %arg6[%c15_74] : memref<56xf32, #tpu.memory_space<smem>>
    %198 = vector.broadcast %196 : f32 to vector<8x1xf32>
    %199 = vector.broadcast %197 : f32 to vector<8x1xf32>
    %200 = arith.select %9, %198, %199 : vector<8x1xi1>, vector<8x1xf32>
    %201 = vector.broadcast %200 : vector<8x1xf32> to vector<8x16xf32>
    %202 = arith.mulf %195, %201 : vector<8x16xf32>
    %203 = arith.addf %193, %202 : vector<8x16xf32>
    %c3_75 = arith.constant 3 : index
    %c0_76 = arith.constant 0 : index
    %c0_77 = arith.constant 0 : index
    %204 = vector.load %arg1[%c3_75, %c0_76, %c0_77] : memref<8x8x16xf32, #tpu.memory_space<vmem>>, vector<1x8x16xf32>
    %205 = vector.shape_cast %204 : vector<1x8x16xf32> to vector<8x16xf32>
    %c16 = arith.constant 16 : index
    %206 = memref.load %arg2[%c16] : memref<56xf32, #tpu.memory_space<smem>>
    %c16_78 = arith.constant 16 : index
    %207 = memref.load %arg6[%c16_78] : memref<56xf32, #tpu.memory_space<smem>>
    %208 = vector.broadcast %206 : f32 to vector<8x1xf32>
    %209 = vector.broadcast %207 : f32 to vector<8x1xf32>
    %210 = arith.select %9, %208, %209 : vector<8x1xi1>, vector<8x1xf32>
    %211 = vector.broadcast %210 : vector<8x1xf32> to vector<8x16xf32>
    %212 = arith.mulf %205, %211 : vector<8x16xf32>
    %213 = arith.addf %203, %212 : vector<8x16xf32>
    %c4_79 = arith.constant 4 : index
    %c0_80 = arith.constant 0 : index
    %c0_81 = arith.constant 0 : index
    %214 = vector.load %arg1[%c4_79, %c0_80, %c0_81] : memref<8x8x16xf32, #tpu.memory_space<vmem>>, vector<1x8x16xf32>
    %215 = vector.shape_cast %214 : vector<1x8x16xf32> to vector<8x16xf32>
    %c17 = arith.constant 17 : index
    %216 = memref.load %arg2[%c17] : memref<56xf32, #tpu.memory_space<smem>>
    %c17_82 = arith.constant 17 : index
    %217 = memref.load %arg6[%c17_82] : memref<56xf32, #tpu.memory_space<smem>>
    %218 = vector.broadcast %216 : f32 to vector<8x1xf32>
    %219 = vector.broadcast %217 : f32 to vector<8x1xf32>
    %220 = arith.select %9, %218, %219 : vector<8x1xi1>, vector<8x1xf32>
    %221 = vector.broadcast %220 : vector<8x1xf32> to vector<8x16xf32>
    %222 = arith.mulf %215, %221 : vector<8x16xf32>
    %223 = arith.addf %213, %222 : vector<8x16xf32>
    %c5_83 = arith.constant 5 : index
    %c0_84 = arith.constant 0 : index
    %c0_85 = arith.constant 0 : index
    %224 = vector.load %arg1[%c5_83, %c0_84, %c0_85] : memref<8x8x16xf32, #tpu.memory_space<vmem>>, vector<1x8x16xf32>
    %225 = vector.shape_cast %224 : vector<1x8x16xf32> to vector<8x16xf32>
    %c18 = arith.constant 18 : index
    %226 = memref.load %arg2[%c18] : memref<56xf32, #tpu.memory_space<smem>>
    %c18_86 = arith.constant 18 : index
    %227 = memref.load %arg6[%c18_86] : memref<56xf32, #tpu.memory_space<smem>>
    %228 = vector.broadcast %226 : f32 to vector<8x1xf32>
    %229 = vector.broadcast %227 : f32 to vector<8x1xf32>
    %230 = arith.select %9, %228, %229 : vector<8x1xi1>, vector<8x1xf32>
    %231 = vector.broadcast %230 : vector<8x1xf32> to vector<8x16xf32>
    %232 = arith.mulf %225, %231 : vector<8x16xf32>
    %233 = arith.addf %223, %232 : vector<8x16xf32>
    %c6_87 = arith.constant 6 : index
    %c0_88 = arith.constant 0 : index
    %c0_89 = arith.constant 0 : index
    %234 = vector.load %arg1[%c6_87, %c0_88, %c0_89] : memref<8x8x16xf32, #tpu.memory_space<vmem>>, vector<1x8x16xf32>
    %235 = vector.shape_cast %234 : vector<1x8x16xf32> to vector<8x16xf32>
    %c19 = arith.constant 19 : index
    %236 = memref.load %arg2[%c19] : memref<56xf32, #tpu.memory_space<smem>>
    %c19_90 = arith.constant 19 : index
    %237 = memref.load %arg6[%c19_90] : memref<56xf32, #tpu.memory_space<smem>>
    %238 = vector.broadcast %236 : f32 to vector<8x1xf32>
    %239 = vector.broadcast %237 : f32 to vector<8x1xf32>
    %240 = arith.select %9, %238, %239 : vector<8x1xi1>, vector<8x1xf32>
    %241 = vector.broadcast %240 : vector<8x1xf32> to vector<8x16xf32>
    %242 = arith.mulf %235, %241 : vector<8x16xf32>
    %243 = arith.addf %233, %242 : vector<8x16xf32>
    %c7_91 = arith.constant 7 : index
    %c0_92 = arith.constant 0 : index
    %c0_93 = arith.constant 0 : index
    %244 = vector.load %arg1[%c7_91, %c0_92, %c0_93] : memref<8x8x16xf32, #tpu.memory_space<vmem>>, vector<1x8x16xf32>
    %245 = vector.shape_cast %244 : vector<1x8x16xf32> to vector<8x16xf32>
    %c20 = arith.constant 20 : index
    %246 = memref.load %arg2[%c20] : memref<56xf32, #tpu.memory_space<smem>>
    %c20_94 = arith.constant 20 : index
    %247 = memref.load %arg6[%c20_94] : memref<56xf32, #tpu.memory_space<smem>>
    %248 = vector.broadcast %246 : f32 to vector<8x1xf32>
    %249 = vector.broadcast %247 : f32 to vector<8x1xf32>
    %250 = arith.select %9, %248, %249 : vector<8x1xi1>, vector<8x1xf32>
    %251 = vector.broadcast %250 : vector<8x1xf32> to vector<8x16xf32>
    %252 = arith.mulf %245, %251 : vector<8x16xf32>
    %253 = arith.addf %243, %252 : vector<8x16xf32>
    %cst_95 = arith.constant 0.000000e+00 : f32
    %254 = vector.broadcast %cst_95 : f32 to vector<8x16xf32>
    %255 = arith.maximumf %253, %254 : vector<8x16xf32>
    %c2_96 = arith.constant 2 : index
    %256 = memref.load %arg4[%c2_96] : memref<8xf32, #tpu.memory_space<smem>>
    %c2_97 = arith.constant 2 : index
    %257 = memref.load %arg8[%c2_97] : memref<8xf32, #tpu.memory_space<smem>>
    %258 = vector.broadcast %256 : f32 to vector<8x1xf32>
    %259 = vector.broadcast %257 : f32 to vector<8x1xf32>
    %260 = arith.select %9, %258, %259 : vector<8x1xi1>, vector<8x1xf32>
    %261 = vector.broadcast %260 : vector<8x1xf32> to vector<8x16xf32>
    %262 = arith.mulf %255, %261 : vector<8x16xf32>
    %263 = arith.addf %179, %262 : vector<8x16xf32>
    %c21 = arith.constant 21 : index
    %264 = memref.load %arg2[%c21] : memref<56xf32, #tpu.memory_space<smem>>
    %c21_98 = arith.constant 21 : index
    %265 = memref.load %arg6[%c21_98] : memref<56xf32, #tpu.memory_space<smem>>
    %266 = vector.broadcast %264 : f32 to vector<8x1xf32>
    %267 = vector.broadcast %265 : f32 to vector<8x1xf32>
    %268 = arith.select %9, %266, %267 : vector<8x1xi1>, vector<8x1xf32>
    %269 = vector.broadcast %268 : vector<8x1xf32> to vector<8x16xf32>
    %270 = arith.mulf %12, %269 : vector<8x16xf32>
    %c3_99 = arith.constant 3 : index
    %271 = memref.load %arg3[%c3_99] : memref<8xf32, #tpu.memory_space<smem>>
    %c3_100 = arith.constant 3 : index
    %272 = memref.load %arg7[%c3_100] : memref<8xf32, #tpu.memory_space<smem>>
    %273 = vector.broadcast %271 : f32 to vector<8x1xf32>
    %274 = vector.broadcast %272 : f32 to vector<8x1xf32>
    %275 = arith.select %9, %273, %274 : vector<8x1xi1>, vector<8x1xf32>
    %276 = vector.broadcast %275 : vector<8x1xf32> to vector<8x16xf32>
    %277 = arith.addf %270, %276 : vector<8x16xf32>
    %c2_101 = arith.constant 2 : index
    %c0_102 = arith.constant 0 : index
    %c0_103 = arith.constant 0 : index
    %278 = vector.load %arg1[%c2_101, %c0_102, %c0_103] : memref<8x8x16xf32, #tpu.memory_space<vmem>>, vector<1x8x16xf32>
    %279 = vector.shape_cast %278 : vector<1x8x16xf32> to vector<8x16xf32>
    %c22 = arith.constant 22 : index
    %280 = memref.load %arg2[%c22] : memref<56xf32, #tpu.memory_space<smem>>
    %c22_104 = arith.constant 22 : index
    %281 = memref.load %arg6[%c22_104] : memref<56xf32, #tpu.memory_space<smem>>
    %282 = vector.broadcast %280 : f32 to vector<8x1xf32>
    %283 = vector.broadcast %281 : f32 to vector<8x1xf32>
    %284 = arith.select %9, %282, %283 : vector<8x1xi1>, vector<8x1xf32>
    %285 = vector.broadcast %284 : vector<8x1xf32> to vector<8x16xf32>
    %286 = arith.mulf %279, %285 : vector<8x16xf32>
    %287 = arith.addf %277, %286 : vector<8x16xf32>
    %c3_105 = arith.constant 3 : index
    %c0_106 = arith.constant 0 : index
    %c0_107 = arith.constant 0 : index
    %288 = vector.load %arg1[%c3_105, %c0_106, %c0_107] : memref<8x8x16xf32, #tpu.memory_space<vmem>>, vector<1x8x16xf32>
    %289 = vector.shape_cast %288 : vector<1x8x16xf32> to vector<8x16xf32>
    %c23 = arith.constant 23 : index
    %290 = memref.load %arg2[%c23] : memref<56xf32, #tpu.memory_space<smem>>
    %c23_108 = arith.constant 23 : index
    %291 = memref.load %arg6[%c23_108] : memref<56xf32, #tpu.memory_space<smem>>
    %292 = vector.broadcast %290 : f32 to vector<8x1xf32>
    %293 = vector.broadcast %291 : f32 to vector<8x1xf32>
    %294 = arith.select %9, %292, %293 : vector<8x1xi1>, vector<8x1xf32>
    %295 = vector.broadcast %294 : vector<8x1xf32> to vector<8x16xf32>
    %296 = arith.mulf %289, %295 : vector<8x16xf32>
    %297 = arith.addf %287, %296 : vector<8x16xf32>
    %c4_109 = arith.constant 4 : index
    %c0_110 = arith.constant 0 : index
    %c0_111 = arith.constant 0 : index
    %298 = vector.load %arg1[%c4_109, %c0_110, %c0_111] : memref<8x8x16xf32, #tpu.memory_space<vmem>>, vector<1x8x16xf32>
    %299 = vector.shape_cast %298 : vector<1x8x16xf32> to vector<8x16xf32>
    %c24 = arith.constant 24 : index
    %300 = memref.load %arg2[%c24] : memref<56xf32, #tpu.memory_space<smem>>
    %c24_112 = arith.constant 24 : index
    %301 = memref.load %arg6[%c24_112] : memref<56xf32, #tpu.memory_space<smem>>
    %302 = vector.broadcast %300 : f32 to vector<8x1xf32>
    %303 = vector.broadcast %301 : f32 to vector<8x1xf32>
    %304 = arith.select %9, %302, %303 : vector<8x1xi1>, vector<8x1xf32>
    %305 = vector.broadcast %304 : vector<8x1xf32> to vector<8x16xf32>
    %306 = arith.mulf %299, %305 : vector<8x16xf32>
    %307 = arith.addf %297, %306 : vector<8x16xf32>
    %c5_113 = arith.constant 5 : index
    %c0_114 = arith.constant 0 : index
    %c0_115 = arith.constant 0 : index
    %308 = vector.load %arg1[%c5_113, %c0_114, %c0_115] : memref<8x8x16xf32, #tpu.memory_space<vmem>>, vector<1x8x16xf32>
    %309 = vector.shape_cast %308 : vector<1x8x16xf32> to vector<8x16xf32>
    %c25 = arith.constant 25 : index
    %310 = memref.load %arg2[%c25] : memref<56xf32, #tpu.memory_space<smem>>
    %c25_116 = arith.constant 25 : index
    %311 = memref.load %arg6[%c25_116] : memref<56xf32, #tpu.memory_space<smem>>
    %312 = vector.broadcast %310 : f32 to vector<8x1xf32>
    %313 = vector.broadcast %311 : f32 to vector<8x1xf32>
    %314 = arith.select %9, %312, %313 : vector<8x1xi1>, vector<8x1xf32>
    %315 = vector.broadcast %314 : vector<8x1xf32> to vector<8x16xf32>
    %316 = arith.mulf %309, %315 : vector<8x16xf32>
    %317 = arith.addf %307, %316 : vector<8x16xf32>
    %c6_117 = arith.constant 6 : index
    %c0_118 = arith.constant 0 : index
    %c0_119 = arith.constant 0 : index
    %318 = vector.load %arg1[%c6_117, %c0_118, %c0_119] : memref<8x8x16xf32, #tpu.memory_space<vmem>>, vector<1x8x16xf32>
    %319 = vector.shape_cast %318 : vector<1x8x16xf32> to vector<8x16xf32>
    %c26 = arith.constant 26 : index
    %320 = memref.load %arg2[%c26] : memref<56xf32, #tpu.memory_space<smem>>
    %c26_120 = arith.constant 26 : index
    %321 = memref.load %arg6[%c26_120] : memref<56xf32, #tpu.memory_space<smem>>
    %322 = vector.broadcast %320 : f32 to vector<8x1xf32>
    %323 = vector.broadcast %321 : f32 to vector<8x1xf32>
    %324 = arith.select %9, %322, %323 : vector<8x1xi1>, vector<8x1xf32>
    %325 = vector.broadcast %324 : vector<8x1xf32> to vector<8x16xf32>
    %326 = arith.mulf %319, %325 : vector<8x16xf32>
    %327 = arith.addf %317, %326 : vector<8x16xf32>
    %c7_121 = arith.constant 7 : index
    %c0_122 = arith.constant 0 : index
    %c0_123 = arith.constant 0 : index
    %328 = vector.load %arg1[%c7_121, %c0_122, %c0_123] : memref<8x8x16xf32, #tpu.memory_space<vmem>>, vector<1x8x16xf32>
    %329 = vector.shape_cast %328 : vector<1x8x16xf32> to vector<8x16xf32>
    %c27 = arith.constant 27 : index
    %330 = memref.load %arg2[%c27] : memref<56xf32, #tpu.memory_space<smem>>
    %c27_124 = arith.constant 27 : index
    %331 = memref.load %arg6[%c27_124] : memref<56xf32, #tpu.memory_space<smem>>
    %332 = vector.broadcast %330 : f32 to vector<8x1xf32>
    %333 = vector.broadcast %331 : f32 to vector<8x1xf32>
    %334 = arith.select %9, %332, %333 : vector<8x1xi1>, vector<8x1xf32>
    %335 = vector.broadcast %334 : vector<8x1xf32> to vector<8x16xf32>
    %336 = arith.mulf %329, %335 : vector<8x16xf32>
    %337 = arith.addf %327, %336 : vector<8x16xf32>
    %cst_125 = arith.constant 0.000000e+00 : f32
    %338 = vector.broadcast %cst_125 : f32 to vector<8x16xf32>
    %339 = arith.maximumf %337, %338 : vector<8x16xf32>
    %c3_126 = arith.constant 3 : index
    %340 = memref.load %arg4[%c3_126] : memref<8xf32, #tpu.memory_space<smem>>
    %c3_127 = arith.constant 3 : index
    %341 = memref.load %arg8[%c3_127] : memref<8xf32, #tpu.memory_space<smem>>
    %342 = vector.broadcast %340 : f32 to vector<8x1xf32>
    %343 = vector.broadcast %341 : f32 to vector<8x1xf32>
    %344 = arith.select %9, %342, %343 : vector<8x1xi1>, vector<8x1xf32>
    %345 = vector.broadcast %344 : vector<8x1xf32> to vector<8x16xf32>
    %346 = arith.mulf %339, %345 : vector<8x16xf32>
    %347 = arith.addf %263, %346 : vector<8x16xf32>
    %c28 = arith.constant 28 : index
    %348 = memref.load %arg2[%c28] : memref<56xf32, #tpu.memory_space<smem>>
    %c28_128 = arith.constant 28 : index
    %349 = memref.load %arg6[%c28_128] : memref<56xf32, #tpu.memory_space<smem>>
    %350 = vector.broadcast %348 : f32 to vector<8x1xf32>
    %351 = vector.broadcast %349 : f32 to vector<8x1xf32>
    %352 = arith.select %9, %350, %351 : vector<8x1xi1>, vector<8x1xf32>
    %353 = vector.broadcast %352 : vector<8x1xf32> to vector<8x16xf32>
    %354 = arith.mulf %12, %353 : vector<8x16xf32>
    %c4_129 = arith.constant 4 : index
    %355 = memref.load %arg3[%c4_129] : memref<8xf32, #tpu.memory_space<smem>>
    %c4_130 = arith.constant 4 : index
    %356 = memref.load %arg7[%c4_130] : memref<8xf32, #tpu.memory_space<smem>>
    %357 = vector.broadcast %355 : f32 to vector<8x1xf32>
    %358 = vector.broadcast %356 : f32 to vector<8x1xf32>
    %359 = arith.select %9, %357, %358 : vector<8x1xi1>, vector<8x1xf32>
    %360 = vector.broadcast %359 : vector<8x1xf32> to vector<8x16xf32>
    %361 = arith.addf %354, %360 : vector<8x16xf32>
    %c2_131 = arith.constant 2 : index
    %c0_132 = arith.constant 0 : index
    %c0_133 = arith.constant 0 : index
    %362 = vector.load %arg1[%c2_131, %c0_132, %c0_133] : memref<8x8x16xf32, #tpu.memory_space<vmem>>, vector<1x8x16xf32>
    %363 = vector.shape_cast %362 : vector<1x8x16xf32> to vector<8x16xf32>
    %c29 = arith.constant 29 : index
    %364 = memref.load %arg2[%c29] : memref<56xf32, #tpu.memory_space<smem>>
    %c29_134 = arith.constant 29 : index
    %365 = memref.load %arg6[%c29_134] : memref<56xf32, #tpu.memory_space<smem>>
    %366 = vector.broadcast %364 : f32 to vector<8x1xf32>
    %367 = vector.broadcast %365 : f32 to vector<8x1xf32>
    %368 = arith.select %9, %366, %367 : vector<8x1xi1>, vector<8x1xf32>
    %369 = vector.broadcast %368 : vector<8x1xf32> to vector<8x16xf32>
    %370 = arith.mulf %363, %369 : vector<8x16xf32>
    %371 = arith.addf %361, %370 : vector<8x16xf32>
    %c3_135 = arith.constant 3 : index
    %c0_136 = arith.constant 0 : index
    %c0_137 = arith.constant 0 : index
    %372 = vector.load %arg1[%c3_135, %c0_136, %c0_137] : memref<8x8x16xf32, #tpu.memory_space<vmem>>, vector<1x8x16xf32>
    %373 = vector.shape_cast %372 : vector<1x8x16xf32> to vector<8x16xf32>
    %c30 = arith.constant 30 : index
    %374 = memref.load %arg2[%c30] : memref<56xf32, #tpu.memory_space<smem>>
    %c30_138 = arith.constant 30 : index
    %375 = memref.load %arg6[%c30_138] : memref<56xf32, #tpu.memory_space<smem>>
    %376 = vector.broadcast %374 : f32 to vector<8x1xf32>
    %377 = vector.broadcast %375 : f32 to vector<8x1xf32>
    %378 = arith.select %9, %376, %377 : vector<8x1xi1>, vector<8x1xf32>
    %379 = vector.broadcast %378 : vector<8x1xf32> to vector<8x16xf32>
    %380 = arith.mulf %373, %379 : vector<8x16xf32>
    %381 = arith.addf %371, %380 : vector<8x16xf32>
    %c4_139 = arith.constant 4 : index
    %c0_140 = arith.constant 0 : index
    %c0_141 = arith.constant 0 : index
    %382 = vector.load %arg1[%c4_139, %c0_140, %c0_141] : memref<8x8x16xf32, #tpu.memory_space<vmem>>, vector<1x8x16xf32>
    %383 = vector.shape_cast %382 : vector<1x8x16xf32> to vector<8x16xf32>
    %c31 = arith.constant 31 : index
    %384 = memref.load %arg2[%c31] : memref<56xf32, #tpu.memory_space<smem>>
    %c31_142 = arith.constant 31 : index
    %385 = memref.load %arg6[%c31_142] : memref<56xf32, #tpu.memory_space<smem>>
    %386 = vector.broadcast %384 : f32 to vector<8x1xf32>
    %387 = vector.broadcast %385 : f32 to vector<8x1xf32>
    %388 = arith.select %9, %386, %387 : vector<8x1xi1>, vector<8x1xf32>
    %389 = vector.broadcast %388 : vector<8x1xf32> to vector<8x16xf32>
    %390 = arith.mulf %383, %389 : vector<8x16xf32>
    %391 = arith.addf %381, %390 : vector<8x16xf32>
    %c5_143 = arith.constant 5 : index
    %c0_144 = arith.constant 0 : index
    %c0_145 = arith.constant 0 : index
    %392 = vector.load %arg1[%c5_143, %c0_144, %c0_145] : memref<8x8x16xf32, #tpu.memory_space<vmem>>, vector<1x8x16xf32>
    %393 = vector.shape_cast %392 : vector<1x8x16xf32> to vector<8x16xf32>
    %c32 = arith.constant 32 : index
    %394 = memref.load %arg2[%c32] : memref<56xf32, #tpu.memory_space<smem>>
    %c32_146 = arith.constant 32 : index
    %395 = memref.load %arg6[%c32_146] : memref<56xf32, #tpu.memory_space<smem>>
    %396 = vector.broadcast %394 : f32 to vector<8x1xf32>
    %397 = vector.broadcast %395 : f32 to vector<8x1xf32>
    %398 = arith.select %9, %396, %397 : vector<8x1xi1>, vector<8x1xf32>
    %399 = vector.broadcast %398 : vector<8x1xf32> to vector<8x16xf32>
    %400 = arith.mulf %393, %399 : vector<8x16xf32>
    %401 = arith.addf %391, %400 : vector<8x16xf32>
    %c6_147 = arith.constant 6 : index
    %c0_148 = arith.constant 0 : index
    %c0_149 = arith.constant 0 : index
    %402 = vector.load %arg1[%c6_147, %c0_148, %c0_149] : memref<8x8x16xf32, #tpu.memory_space<vmem>>, vector<1x8x16xf32>
    %403 = vector.shape_cast %402 : vector<1x8x16xf32> to vector<8x16xf32>
    %c33 = arith.constant 33 : index
    %404 = memref.load %arg2[%c33] : memref<56xf32, #tpu.memory_space<smem>>
    %c33_150 = arith.constant 33 : index
    %405 = memref.load %arg6[%c33_150] : memref<56xf32, #tpu.memory_space<smem>>
    %406 = vector.broadcast %404 : f32 to vector<8x1xf32>
    %407 = vector.broadcast %405 : f32 to vector<8x1xf32>
    %408 = arith.select %9, %406, %407 : vector<8x1xi1>, vector<8x1xf32>
    %409 = vector.broadcast %408 : vector<8x1xf32> to vector<8x16xf32>
    %410 = arith.mulf %403, %409 : vector<8x16xf32>
    %411 = arith.addf %401, %410 : vector<8x16xf32>
    %c7_151 = arith.constant 7 : index
    %c0_152 = arith.constant 0 : index
    %c0_153 = arith.constant 0 : index
    %412 = vector.load %arg1[%c7_151, %c0_152, %c0_153] : memref<8x8x16xf32, #tpu.memory_space<vmem>>, vector<1x8x16xf32>
    %413 = vector.shape_cast %412 : vector<1x8x16xf32> to vector<8x16xf32>
    %c34 = arith.constant 34 : index
    %414 = memref.load %arg2[%c34] : memref<56xf32, #tpu.memory_space<smem>>
    %c34_154 = arith.constant 34 : index
    %415 = memref.load %arg6[%c34_154] : memref<56xf32, #tpu.memory_space<smem>>
    %416 = vector.broadcast %414 : f32 to vector<8x1xf32>
    %417 = vector.broadcast %415 : f32 to vector<8x1xf32>
    %418 = arith.select %9, %416, %417 : vector<8x1xi1>, vector<8x1xf32>
    %419 = vector.broadcast %418 : vector<8x1xf32> to vector<8x16xf32>
    %420 = arith.mulf %413, %419 : vector<8x16xf32>
    %421 = arith.addf %411, %420 : vector<8x16xf32>
    %cst_155 = arith.constant 0.000000e+00 : f32
    %422 = vector.broadcast %cst_155 : f32 to vector<8x16xf32>
    %423 = arith.maximumf %421, %422 : vector<8x16xf32>
    %c4_156 = arith.constant 4 : index
    %424 = memref.load %arg4[%c4_156] : memref<8xf32, #tpu.memory_space<smem>>
    %c4_157 = arith.constant 4 : index
    %425 = memref.load %arg8[%c4_157] : memref<8xf32, #tpu.memory_space<smem>>
    %426 = vector.broadcast %424 : f32 to vector<8x1xf32>
    %427 = vector.broadcast %425 : f32 to vector<8x1xf32>
    %428 = arith.select %9, %426, %427 : vector<8x1xi1>, vector<8x1xf32>
    %429 = vector.broadcast %428 : vector<8x1xf32> to vector<8x16xf32>
    %430 = arith.mulf %423, %429 : vector<8x16xf32>
    %431 = arith.addf %347, %430 : vector<8x16xf32>
    %c35 = arith.constant 35 : index
    %432 = memref.load %arg2[%c35] : memref<56xf32, #tpu.memory_space<smem>>
    %c35_158 = arith.constant 35 : index
    %433 = memref.load %arg6[%c35_158] : memref<56xf32, #tpu.memory_space<smem>>
    %434 = vector.broadcast %432 : f32 to vector<8x1xf32>
    %435 = vector.broadcast %433 : f32 to vector<8x1xf32>
    %436 = arith.select %9, %434, %435 : vector<8x1xi1>, vector<8x1xf32>
    %437 = vector.broadcast %436 : vector<8x1xf32> to vector<8x16xf32>
    %438 = arith.mulf %12, %437 : vector<8x16xf32>
    %c5_159 = arith.constant 5 : index
    %439 = memref.load %arg3[%c5_159] : memref<8xf32, #tpu.memory_space<smem>>
    %c5_160 = arith.constant 5 : index
    %440 = memref.load %arg7[%c5_160] : memref<8xf32, #tpu.memory_space<smem>>
    %441 = vector.broadcast %439 : f32 to vector<8x1xf32>
    %442 = vector.broadcast %440 : f32 to vector<8x1xf32>
    %443 = arith.select %9, %441, %442 : vector<8x1xi1>, vector<8x1xf32>
    %444 = vector.broadcast %443 : vector<8x1xf32> to vector<8x16xf32>
    %445 = arith.addf %438, %444 : vector<8x16xf32>
    %c2_161 = arith.constant 2 : index
    %c0_162 = arith.constant 0 : index
    %c0_163 = arith.constant 0 : index
    %446 = vector.load %arg1[%c2_161, %c0_162, %c0_163] : memref<8x8x16xf32, #tpu.memory_space<vmem>>, vector<1x8x16xf32>
    %447 = vector.shape_cast %446 : vector<1x8x16xf32> to vector<8x16xf32>
    %c36 = arith.constant 36 : index
    %448 = memref.load %arg2[%c36] : memref<56xf32, #tpu.memory_space<smem>>
    %c36_164 = arith.constant 36 : index
    %449 = memref.load %arg6[%c36_164] : memref<56xf32, #tpu.memory_space<smem>>
    %450 = vector.broadcast %448 : f32 to vector<8x1xf32>
    %451 = vector.broadcast %449 : f32 to vector<8x1xf32>
    %452 = arith.select %9, %450, %451 : vector<8x1xi1>, vector<8x1xf32>
    %453 = vector.broadcast %452 : vector<8x1xf32> to vector<8x16xf32>
    %454 = arith.mulf %447, %453 : vector<8x16xf32>
    %455 = arith.addf %445, %454 : vector<8x16xf32>
    %c3_165 = arith.constant 3 : index
    %c0_166 = arith.constant 0 : index
    %c0_167 = arith.constant 0 : index
    %456 = vector.load %arg1[%c3_165, %c0_166, %c0_167] : memref<8x8x16xf32, #tpu.memory_space<vmem>>, vector<1x8x16xf32>
    %457 = vector.shape_cast %456 : vector<1x8x16xf32> to vector<8x16xf32>
    %c37 = arith.constant 37 : index
    %458 = memref.load %arg2[%c37] : memref<56xf32, #tpu.memory_space<smem>>
    %c37_168 = arith.constant 37 : index
    %459 = memref.load %arg6[%c37_168] : memref<56xf32, #tpu.memory_space<smem>>
    %460 = vector.broadcast %458 : f32 to vector<8x1xf32>
    %461 = vector.broadcast %459 : f32 to vector<8x1xf32>
    %462 = arith.select %9, %460, %461 : vector<8x1xi1>, vector<8x1xf32>
    %463 = vector.broadcast %462 : vector<8x1xf32> to vector<8x16xf32>
    %464 = arith.mulf %457, %463 : vector<8x16xf32>
    %465 = arith.addf %455, %464 : vector<8x16xf32>
    %c4_169 = arith.constant 4 : index
    %c0_170 = arith.constant 0 : index
    %c0_171 = arith.constant 0 : index
    %466 = vector.load %arg1[%c4_169, %c0_170, %c0_171] : memref<8x8x16xf32, #tpu.memory_space<vmem>>, vector<1x8x16xf32>
    %467 = vector.shape_cast %466 : vector<1x8x16xf32> to vector<8x16xf32>
    %c38 = arith.constant 38 : index
    %468 = memref.load %arg2[%c38] : memref<56xf32, #tpu.memory_space<smem>>
    %c38_172 = arith.constant 38 : index
    %469 = memref.load %arg6[%c38_172] : memref<56xf32, #tpu.memory_space<smem>>
    %470 = vector.broadcast %468 : f32 to vector<8x1xf32>
    %471 = vector.broadcast %469 : f32 to vector<8x1xf32>
    %472 = arith.select %9, %470, %471 : vector<8x1xi1>, vector<8x1xf32>
    %473 = vector.broadcast %472 : vector<8x1xf32> to vector<8x16xf32>
    %474 = arith.mulf %467, %473 : vector<8x16xf32>
    %475 = arith.addf %465, %474 : vector<8x16xf32>
    %c5_173 = arith.constant 5 : index
    %c0_174 = arith.constant 0 : index
    %c0_175 = arith.constant 0 : index
    %476 = vector.load %arg1[%c5_173, %c0_174, %c0_175] : memref<8x8x16xf32, #tpu.memory_space<vmem>>, vector<1x8x16xf32>
    %477 = vector.shape_cast %476 : vector<1x8x16xf32> to vector<8x16xf32>
    %c39 = arith.constant 39 : index
    %478 = memref.load %arg2[%c39] : memref<56xf32, #tpu.memory_space<smem>>
    %c39_176 = arith.constant 39 : index
    %479 = memref.load %arg6[%c39_176] : memref<56xf32, #tpu.memory_space<smem>>
    %480 = vector.broadcast %478 : f32 to vector<8x1xf32>
    %481 = vector.broadcast %479 : f32 to vector<8x1xf32>
    %482 = arith.select %9, %480, %481 : vector<8x1xi1>, vector<8x1xf32>
    %483 = vector.broadcast %482 : vector<8x1xf32> to vector<8x16xf32>
    %484 = arith.mulf %477, %483 : vector<8x16xf32>
    %485 = arith.addf %475, %484 : vector<8x16xf32>
    %c6_177 = arith.constant 6 : index
    %c0_178 = arith.constant 0 : index
    %c0_179 = arith.constant 0 : index
    %486 = vector.load %arg1[%c6_177, %c0_178, %c0_179] : memref<8x8x16xf32, #tpu.memory_space<vmem>>, vector<1x8x16xf32>
    %487 = vector.shape_cast %486 : vector<1x8x16xf32> to vector<8x16xf32>
    %c40 = arith.constant 40 : index
    %488 = memref.load %arg2[%c40] : memref<56xf32, #tpu.memory_space<smem>>
    %c40_180 = arith.constant 40 : index
    %489 = memref.load %arg6[%c40_180] : memref<56xf32, #tpu.memory_space<smem>>
    %490 = vector.broadcast %488 : f32 to vector<8x1xf32>
    %491 = vector.broadcast %489 : f32 to vector<8x1xf32>
    %492 = arith.select %9, %490, %491 : vector<8x1xi1>, vector<8x1xf32>
    %493 = vector.broadcast %492 : vector<8x1xf32> to vector<8x16xf32>
    %494 = arith.mulf %487, %493 : vector<8x16xf32>
    %495 = arith.addf %485, %494 : vector<8x16xf32>
    %c7_181 = arith.constant 7 : index
    %c0_182 = arith.constant 0 : index
    %c0_183 = arith.constant 0 : index
    %496 = vector.load %arg1[%c7_181, %c0_182, %c0_183] : memref<8x8x16xf32, #tpu.memory_space<vmem>>, vector<1x8x16xf32>
    %497 = vector.shape_cast %496 : vector<1x8x16xf32> to vector<8x16xf32>
    %c41 = arith.constant 41 : index
    %498 = memref.load %arg2[%c41] : memref<56xf32, #tpu.memory_space<smem>>
    %c41_184 = arith.constant 41 : index
    %499 = memref.load %arg6[%c41_184] : memref<56xf32, #tpu.memory_space<smem>>
    %500 = vector.broadcast %498 : f32 to vector<8x1xf32>
    %501 = vector.broadcast %499 : f32 to vector<8x1xf32>
    %502 = arith.select %9, %500, %501 : vector<8x1xi1>, vector<8x1xf32>
    %503 = vector.broadcast %502 : vector<8x1xf32> to vector<8x16xf32>
    %504 = arith.mulf %497, %503 : vector<8x16xf32>
    %505 = arith.addf %495, %504 : vector<8x16xf32>
    %cst_185 = arith.constant 0.000000e+00 : f32
    %506 = vector.broadcast %cst_185 : f32 to vector<8x16xf32>
    %507 = arith.maximumf %505, %506 : vector<8x16xf32>
    %c5_186 = arith.constant 5 : index
    %508 = memref.load %arg4[%c5_186] : memref<8xf32, #tpu.memory_space<smem>>
    %c5_187 = arith.constant 5 : index
    %509 = memref.load %arg8[%c5_187] : memref<8xf32, #tpu.memory_space<smem>>
    %510 = vector.broadcast %508 : f32 to vector<8x1xf32>
    %511 = vector.broadcast %509 : f32 to vector<8x1xf32>
    %512 = arith.select %9, %510, %511 : vector<8x1xi1>, vector<8x1xf32>
    %513 = vector.broadcast %512 : vector<8x1xf32> to vector<8x16xf32>
    %514 = arith.mulf %507, %513 : vector<8x16xf32>
    %515 = arith.addf %431, %514 : vector<8x16xf32>
    %c42 = arith.constant 42 : index
    %516 = memref.load %arg2[%c42] : memref<56xf32, #tpu.memory_space<smem>>
    %c42_188 = arith.constant 42 : index
    %517 = memref.load %arg6[%c42_188] : memref<56xf32, #tpu.memory_space<smem>>
    %518 = vector.broadcast %516 : f32 to vector<8x1xf32>
    %519 = vector.broadcast %517 : f32 to vector<8x1xf32>
    %520 = arith.select %9, %518, %519 : vector<8x1xi1>, vector<8x1xf32>
    %521 = vector.broadcast %520 : vector<8x1xf32> to vector<8x16xf32>
    %522 = arith.mulf %12, %521 : vector<8x16xf32>
    %c6_189 = arith.constant 6 : index
    %523 = memref.load %arg3[%c6_189] : memref<8xf32, #tpu.memory_space<smem>>
    %c6_190 = arith.constant 6 : index
    %524 = memref.load %arg7[%c6_190] : memref<8xf32, #tpu.memory_space<smem>>
    %525 = vector.broadcast %523 : f32 to vector<8x1xf32>
    %526 = vector.broadcast %524 : f32 to vector<8x1xf32>
    %527 = arith.select %9, %525, %526 : vector<8x1xi1>, vector<8x1xf32>
    %528 = vector.broadcast %527 : vector<8x1xf32> to vector<8x16xf32>
    %529 = arith.addf %522, %528 : vector<8x16xf32>
    %c2_191 = arith.constant 2 : index
    %c0_192 = arith.constant 0 : index
    %c0_193 = arith.constant 0 : index
    %530 = vector.load %arg1[%c2_191, %c0_192, %c0_193] : memref<8x8x16xf32, #tpu.memory_space<vmem>>, vector<1x8x16xf32>
    %531 = vector.shape_cast %530 : vector<1x8x16xf32> to vector<8x16xf32>
    %c43 = arith.constant 43 : index
    %532 = memref.load %arg2[%c43] : memref<56xf32, #tpu.memory_space<smem>>
    %c43_194 = arith.constant 43 : index
    %533 = memref.load %arg6[%c43_194] : memref<56xf32, #tpu.memory_space<smem>>
    %534 = vector.broadcast %532 : f32 to vector<8x1xf32>
    %535 = vector.broadcast %533 : f32 to vector<8x1xf32>
    %536 = arith.select %9, %534, %535 : vector<8x1xi1>, vector<8x1xf32>
    %537 = vector.broadcast %536 : vector<8x1xf32> to vector<8x16xf32>
    %538 = arith.mulf %531, %537 : vector<8x16xf32>
    %539 = arith.addf %529, %538 : vector<8x16xf32>
    %c3_195 = arith.constant 3 : index
    %c0_196 = arith.constant 0 : index
    %c0_197 = arith.constant 0 : index
    %540 = vector.load %arg1[%c3_195, %c0_196, %c0_197] : memref<8x8x16xf32, #tpu.memory_space<vmem>>, vector<1x8x16xf32>
    %541 = vector.shape_cast %540 : vector<1x8x16xf32> to vector<8x16xf32>
    %c44 = arith.constant 44 : index
    %542 = memref.load %arg2[%c44] : memref<56xf32, #tpu.memory_space<smem>>
    %c44_198 = arith.constant 44 : index
    %543 = memref.load %arg6[%c44_198] : memref<56xf32, #tpu.memory_space<smem>>
    %544 = vector.broadcast %542 : f32 to vector<8x1xf32>
    %545 = vector.broadcast %543 : f32 to vector<8x1xf32>
    %546 = arith.select %9, %544, %545 : vector<8x1xi1>, vector<8x1xf32>
    %547 = vector.broadcast %546 : vector<8x1xf32> to vector<8x16xf32>
    %548 = arith.mulf %541, %547 : vector<8x16xf32>
    %549 = arith.addf %539, %548 : vector<8x16xf32>
    %c4_199 = arith.constant 4 : index
    %c0_200 = arith.constant 0 : index
    %c0_201 = arith.constant 0 : index
    %550 = vector.load %arg1[%c4_199, %c0_200, %c0_201] : memref<8x8x16xf32, #tpu.memory_space<vmem>>, vector<1x8x16xf32>
    %551 = vector.shape_cast %550 : vector<1x8x16xf32> to vector<8x16xf32>
    %c45 = arith.constant 45 : index
    %552 = memref.load %arg2[%c45] : memref<56xf32, #tpu.memory_space<smem>>
    %c45_202 = arith.constant 45 : index
    %553 = memref.load %arg6[%c45_202] : memref<56xf32, #tpu.memory_space<smem>>
    %554 = vector.broadcast %552 : f32 to vector<8x1xf32>
    %555 = vector.broadcast %553 : f32 to vector<8x1xf32>
    %556 = arith.select %9, %554, %555 : vector<8x1xi1>, vector<8x1xf32>
    %557 = vector.broadcast %556 : vector<8x1xf32> to vector<8x16xf32>
    %558 = arith.mulf %551, %557 : vector<8x16xf32>
    %559 = arith.addf %549, %558 : vector<8x16xf32>
    %c5_203 = arith.constant 5 : index
    %c0_204 = arith.constant 0 : index
    %c0_205 = arith.constant 0 : index
    %560 = vector.load %arg1[%c5_203, %c0_204, %c0_205] : memref<8x8x16xf32, #tpu.memory_space<vmem>>, vector<1x8x16xf32>
    %561 = vector.shape_cast %560 : vector<1x8x16xf32> to vector<8x16xf32>
    %c46 = arith.constant 46 : index
    %562 = memref.load %arg2[%c46] : memref<56xf32, #tpu.memory_space<smem>>
    %c46_206 = arith.constant 46 : index
    %563 = memref.load %arg6[%c46_206] : memref<56xf32, #tpu.memory_space<smem>>
    %564 = vector.broadcast %562 : f32 to vector<8x1xf32>
    %565 = vector.broadcast %563 : f32 to vector<8x1xf32>
    %566 = arith.select %9, %564, %565 : vector<8x1xi1>, vector<8x1xf32>
    %567 = vector.broadcast %566 : vector<8x1xf32> to vector<8x16xf32>
    %568 = arith.mulf %561, %567 : vector<8x16xf32>
    %569 = arith.addf %559, %568 : vector<8x16xf32>
    %c6_207 = arith.constant 6 : index
    %c0_208 = arith.constant 0 : index
    %c0_209 = arith.constant 0 : index
    %570 = vector.load %arg1[%c6_207, %c0_208, %c0_209] : memref<8x8x16xf32, #tpu.memory_space<vmem>>, vector<1x8x16xf32>
    %571 = vector.shape_cast %570 : vector<1x8x16xf32> to vector<8x16xf32>
    %c47 = arith.constant 47 : index
    %572 = memref.load %arg2[%c47] : memref<56xf32, #tpu.memory_space<smem>>
    %c47_210 = arith.constant 47 : index
    %573 = memref.load %arg6[%c47_210] : memref<56xf32, #tpu.memory_space<smem>>
    %574 = vector.broadcast %572 : f32 to vector<8x1xf32>
    %575 = vector.broadcast %573 : f32 to vector<8x1xf32>
    %576 = arith.select %9, %574, %575 : vector<8x1xi1>, vector<8x1xf32>
    %577 = vector.broadcast %576 : vector<8x1xf32> to vector<8x16xf32>
    %578 = arith.mulf %571, %577 : vector<8x16xf32>
    %579 = arith.addf %569, %578 : vector<8x16xf32>
    %c7_211 = arith.constant 7 : index
    %c0_212 = arith.constant 0 : index
    %c0_213 = arith.constant 0 : index
    %580 = vector.load %arg1[%c7_211, %c0_212, %c0_213] : memref<8x8x16xf32, #tpu.memory_space<vmem>>, vector<1x8x16xf32>
    %581 = vector.shape_cast %580 : vector<1x8x16xf32> to vector<8x16xf32>
    %c48 = arith.constant 48 : index
    %582 = memref.load %arg2[%c48] : memref<56xf32, #tpu.memory_space<smem>>
    %c48_214 = arith.constant 48 : index
    %583 = memref.load %arg6[%c48_214] : memref<56xf32, #tpu.memory_space<smem>>
    %584 = vector.broadcast %582 : f32 to vector<8x1xf32>
    %585 = vector.broadcast %583 : f32 to vector<8x1xf32>
    %586 = arith.select %9, %584, %585 : vector<8x1xi1>, vector<8x1xf32>
    %587 = vector.broadcast %586 : vector<8x1xf32> to vector<8x16xf32>
    %588 = arith.mulf %581, %587 : vector<8x16xf32>
    %589 = arith.addf %579, %588 : vector<8x16xf32>
    %cst_215 = arith.constant 0.000000e+00 : f32
    %590 = vector.broadcast %cst_215 : f32 to vector<8x16xf32>
    %591 = arith.maximumf %589, %590 : vector<8x16xf32>
    %c6_216 = arith.constant 6 : index
    %592 = memref.load %arg4[%c6_216] : memref<8xf32, #tpu.memory_space<smem>>
    %c6_217 = arith.constant 6 : index
    %593 = memref.load %arg8[%c6_217] : memref<8xf32, #tpu.memory_space<smem>>
    %594 = vector.broadcast %592 : f32 to vector<8x1xf32>
    %595 = vector.broadcast %593 : f32 to vector<8x1xf32>
    %596 = arith.select %9, %594, %595 : vector<8x1xi1>, vector<8x1xf32>
    %597 = vector.broadcast %596 : vector<8x1xf32> to vector<8x16xf32>
    %598 = arith.mulf %591, %597 : vector<8x16xf32>
    %599 = arith.addf %515, %598 : vector<8x16xf32>
    %c49 = arith.constant 49 : index
    %600 = memref.load %arg2[%c49] : memref<56xf32, #tpu.memory_space<smem>>
    %c49_218 = arith.constant 49 : index
    %601 = memref.load %arg6[%c49_218] : memref<56xf32, #tpu.memory_space<smem>>
    %602 = vector.broadcast %600 : f32 to vector<8x1xf32>
    %603 = vector.broadcast %601 : f32 to vector<8x1xf32>
    %604 = arith.select %9, %602, %603 : vector<8x1xi1>, vector<8x1xf32>
    %605 = vector.broadcast %604 : vector<8x1xf32> to vector<8x16xf32>
    %606 = arith.mulf %12, %605 : vector<8x16xf32>
    %c7_219 = arith.constant 7 : index
    %607 = memref.load %arg3[%c7_219] : memref<8xf32, #tpu.memory_space<smem>>
    %c7_220 = arith.constant 7 : index
    %608 = memref.load %arg7[%c7_220] : memref<8xf32, #tpu.memory_space<smem>>
    %609 = vector.broadcast %607 : f32 to vector<8x1xf32>
    %610 = vector.broadcast %608 : f32 to vector<8x1xf32>
    %611 = arith.select %9, %609, %610 : vector<8x1xi1>, vector<8x1xf32>
    %612 = vector.broadcast %611 : vector<8x1xf32> to vector<8x16xf32>
    %613 = arith.addf %606, %612 : vector<8x16xf32>
    %c2_221 = arith.constant 2 : index
    %c0_222 = arith.constant 0 : index
    %c0_223 = arith.constant 0 : index
    %614 = vector.load %arg1[%c2_221, %c0_222, %c0_223] : memref<8x8x16xf32, #tpu.memory_space<vmem>>, vector<1x8x16xf32>
    %615 = vector.shape_cast %614 : vector<1x8x16xf32> to vector<8x16xf32>
    %c50 = arith.constant 50 : index
    %616 = memref.load %arg2[%c50] : memref<56xf32, #tpu.memory_space<smem>>
    %c50_224 = arith.constant 50 : index
    %617 = memref.load %arg6[%c50_224] : memref<56xf32, #tpu.memory_space<smem>>
    %618 = vector.broadcast %616 : f32 to vector<8x1xf32>
    %619 = vector.broadcast %617 : f32 to vector<8x1xf32>
    %620 = arith.select %9, %618, %619 : vector<8x1xi1>, vector<8x1xf32>
    %621 = vector.broadcast %620 : vector<8x1xf32> to vector<8x16xf32>
    %622 = arith.mulf %615, %621 : vector<8x16xf32>
    %623 = arith.addf %613, %622 : vector<8x16xf32>
    %c3_225 = arith.constant 3 : index
    %c0_226 = arith.constant 0 : index
    %c0_227 = arith.constant 0 : index
    %624 = vector.load %arg1[%c3_225, %c0_226, %c0_227] : memref<8x8x16xf32, #tpu.memory_space<vmem>>, vector<1x8x16xf32>
    %625 = vector.shape_cast %624 : vector<1x8x16xf32> to vector<8x16xf32>
    %c51 = arith.constant 51 : index
    %626 = memref.load %arg2[%c51] : memref<56xf32, #tpu.memory_space<smem>>
    %c51_228 = arith.constant 51 : index
    %627 = memref.load %arg6[%c51_228] : memref<56xf32, #tpu.memory_space<smem>>
    %628 = vector.broadcast %626 : f32 to vector<8x1xf32>
    %629 = vector.broadcast %627 : f32 to vector<8x1xf32>
    %630 = arith.select %9, %628, %629 : vector<8x1xi1>, vector<8x1xf32>
    %631 = vector.broadcast %630 : vector<8x1xf32> to vector<8x16xf32>
    %632 = arith.mulf %625, %631 : vector<8x16xf32>
    %633 = arith.addf %623, %632 : vector<8x16xf32>
    %c4_229 = arith.constant 4 : index
    %c0_230 = arith.constant 0 : index
    %c0_231 = arith.constant 0 : index
    %634 = vector.load %arg1[%c4_229, %c0_230, %c0_231] : memref<8x8x16xf32, #tpu.memory_space<vmem>>, vector<1x8x16xf32>
    %635 = vector.shape_cast %634 : vector<1x8x16xf32> to vector<8x16xf32>
    %c52 = arith.constant 52 : index
    %636 = memref.load %arg2[%c52] : memref<56xf32, #tpu.memory_space<smem>>
    %c52_232 = arith.constant 52 : index
    %637 = memref.load %arg6[%c52_232] : memref<56xf32, #tpu.memory_space<smem>>
    %638 = vector.broadcast %636 : f32 to vector<8x1xf32>
    %639 = vector.broadcast %637 : f32 to vector<8x1xf32>
    %640 = arith.select %9, %638, %639 : vector<8x1xi1>, vector<8x1xf32>
    %641 = vector.broadcast %640 : vector<8x1xf32> to vector<8x16xf32>
    %642 = arith.mulf %635, %641 : vector<8x16xf32>
    %643 = arith.addf %633, %642 : vector<8x16xf32>
    %c5_233 = arith.constant 5 : index
    %c0_234 = arith.constant 0 : index
    %c0_235 = arith.constant 0 : index
    %644 = vector.load %arg1[%c5_233, %c0_234, %c0_235] : memref<8x8x16xf32, #tpu.memory_space<vmem>>, vector<1x8x16xf32>
    %645 = vector.shape_cast %644 : vector<1x8x16xf32> to vector<8x16xf32>
    %c53 = arith.constant 53 : index
    %646 = memref.load %arg2[%c53] : memref<56xf32, #tpu.memory_space<smem>>
    %c53_236 = arith.constant 53 : index
    %647 = memref.load %arg6[%c53_236] : memref<56xf32, #tpu.memory_space<smem>>
    %648 = vector.broadcast %646 : f32 to vector<8x1xf32>
    %649 = vector.broadcast %647 : f32 to vector<8x1xf32>
    %650 = arith.select %9, %648, %649 : vector<8x1xi1>, vector<8x1xf32>
    %651 = vector.broadcast %650 : vector<8x1xf32> to vector<8x16xf32>
    %652 = arith.mulf %645, %651 : vector<8x16xf32>
    %653 = arith.addf %643, %652 : vector<8x16xf32>
    %c6_237 = arith.constant 6 : index
    %c0_238 = arith.constant 0 : index
    %c0_239 = arith.constant 0 : index
    %654 = vector.load %arg1[%c6_237, %c0_238, %c0_239] : memref<8x8x16xf32, #tpu.memory_space<vmem>>, vector<1x8x16xf32>
    %655 = vector.shape_cast %654 : vector<1x8x16xf32> to vector<8x16xf32>
    %c54 = arith.constant 54 : index
    %656 = memref.load %arg2[%c54] : memref<56xf32, #tpu.memory_space<smem>>
    %c54_240 = arith.constant 54 : index
    %657 = memref.load %arg6[%c54_240] : memref<56xf32, #tpu.memory_space<smem>>
    %658 = vector.broadcast %656 : f32 to vector<8x1xf32>
    %659 = vector.broadcast %657 : f32 to vector<8x1xf32>
    %660 = arith.select %9, %658, %659 : vector<8x1xi1>, vector<8x1xf32>
    %661 = vector.broadcast %660 : vector<8x1xf32> to vector<8x16xf32>
    %662 = arith.mulf %655, %661 : vector<8x16xf32>
    %663 = arith.addf %653, %662 : vector<8x16xf32>
    %c7_241 = arith.constant 7 : index
    %c0_242 = arith.constant 0 : index
    %c0_243 = arith.constant 0 : index
    %664 = vector.load %arg1[%c7_241, %c0_242, %c0_243] : memref<8x8x16xf32, #tpu.memory_space<vmem>>, vector<1x8x16xf32>
    %665 = vector.shape_cast %664 : vector<1x8x16xf32> to vector<8x16xf32>
    %c55 = arith.constant 55 : index
    %666 = memref.load %arg2[%c55] : memref<56xf32, #tpu.memory_space<smem>>
    %c55_244 = arith.constant 55 : index
    %667 = memref.load %arg6[%c55_244] : memref<56xf32, #tpu.memory_space<smem>>
    %668 = vector.broadcast %666 : f32 to vector<8x1xf32>
    %669 = vector.broadcast %667 : f32 to vector<8x1xf32>
    %670 = arith.select %9, %668, %669 : vector<8x1xi1>, vector<8x1xf32>
    %671 = vector.broadcast %670 : vector<8x1xf32> to vector<8x16xf32>
    %672 = arith.mulf %665, %671 : vector<8x16xf32>
    %673 = arith.addf %663, %672 : vector<8x16xf32>
    %cst_245 = arith.constant 0.000000e+00 : f32
    %674 = vector.broadcast %cst_245 : f32 to vector<8x16xf32>
    %675 = arith.maximumf %673, %674 : vector<8x16xf32>
    %c7_246 = arith.constant 7 : index
    %676 = memref.load %arg4[%c7_246] : memref<8xf32, #tpu.memory_space<smem>>
    %c7_247 = arith.constant 7 : index
    %677 = memref.load %arg8[%c7_247] : memref<8xf32, #tpu.memory_space<smem>>
    %678 = vector.broadcast %676 : f32 to vector<8x1xf32>
    %679 = vector.broadcast %677 : f32 to vector<8x1xf32>
    %680 = arith.select %9, %678, %679 : vector<8x1xi1>, vector<8x1xf32>
    %681 = vector.broadcast %680 : vector<8x1xf32> to vector<8x16xf32>
    %682 = arith.mulf %675, %681 : vector<8x16xf32>
    %683 = arith.addf %599, %682 : vector<8x16xf32>
    %c0_248 = arith.constant 0 : index
    %684 = memref.load %arg5[%c0_248] : memref<1xf32, #tpu.memory_space<smem>>
    %c0_249 = arith.constant 0 : index
    %685 = memref.load %arg9[%c0_249] : memref<1xf32, #tpu.memory_space<smem>>
    %686 = vector.broadcast %684 : f32 to vector<8x1xf32>
    %687 = vector.broadcast %685 : f32 to vector<8x1xf32>
    %688 = arith.select %9, %686, %687 : vector<8x1xi1>, vector<8x1xf32>
    %689 = vector.broadcast %688 : vector<8x1xf32> to vector<8x16xf32>
    %690 = arith.addf %683, %689 : vector<8x16xf32>
    %cst_250 = arith.constant 0.000000e+00 : f32
    %691 = vector.broadcast %cst_250 : f32 to vector<8x16xf32>
    %692 = arith.subf %691, %1 : vector<8x16xf32>
    %693 = vector.shape_cast %9 : vector<8x1xi1> to vector<8x1xi1>
    %694 = vector.broadcast %693 : vector<8x1xi1> to vector<8x16xi1>
    %695 = arith.select %694, %3, %692 : vector<8x16xi1>, vector<8x16xf32>
    %696 = tpu.iota {dimensions = array<i32: 1>} : vector<8x16xi32>
    %697 = tpu.iota {dimensions = array<i32: 1>} : vector<8x128xi32>
    %c20_i32 = arith.constant 20 : i32
    %698 = vector.broadcast %c20_i32 : i32 to vector<8x128xi32>
    %699 = arith.cmpi eq, %697, %698 : vector<8x128xi32>
    %700 = arith.extui %9 : vector<8x1xi1> to vector<8x1xi32>
    %701 = arith.sitofp %700 : vector<8x1xi32> to vector<8x1xf32>
    %cst_251 = arith.constant 0.000000e+00 : f32
    %702 = vector.shape_cast %701 : vector<8x1xf32> to vector<8x1xf32>
    %703 = vector.broadcast %702 : vector<8x1xf32> to vector<8x128xf32>
    %704 = vector.broadcast %cst_251 : f32 to vector<8x128xf32>
    %705 = arith.select %699, %703, %704 : vector<8x128xi1>, vector<8x128xf32>
    %cst_252 = arith.constant dense<0xFF800000> : vector<8xf32>
    %706 = vector.multi_reduction <maximumf>, %695, %cst_252 [1] : vector<8x16xf32> to vector<8xf32>
    %707 = vector.shape_cast %706 : vector<8xf32> to vector<8x1xf32>
    %708 = vector.broadcast %707 : vector<8x1xf32> to vector<8x16xf32>
    %709 = arith.cmpf oeq, %695, %708 : vector<8x16xf32>
    %c16_i32 = arith.constant 16 : i32
    %710 = vector.broadcast %c16_i32 : i32 to vector<8x16xi32>
    %711 = arith.select %709, %696, %710 : vector<8x16xi1>, vector<8x16xi32>
    %cst_253 = arith.constant dense<2147483647> : vector<8xi32>
    %712 = vector.multi_reduction <minsi>, %711, %cst_253 [1] : vector<8x16xi32> to vector<8xi32>
    %713 = vector.shape_cast %712 : vector<8xi32> to vector<8x1xi32>
    %714 = vector.broadcast %713 : vector<8x1xi32> to vector<8x16xi32>
    %715 = arith.cmpi eq, %696, %714 : vector<8x16xi32>
    %cst_254 = arith.constant 0.000000e+00 : f32
    %716 = vector.broadcast %cst_254 : f32 to vector<8x16xf32>
    %717 = arith.select %715, %690, %716 : vector<8x16xi1>, vector<8x16xf32>
    %cst_255 = arith.constant dense<0.000000e+00> : vector<8xf32>
    %718 = vector.multi_reduction <add>, %717, %cst_255 [1] : vector<8x16xf32> to vector<8xf32>
    %719 = vector.shape_cast %718 : vector<8xf32> to vector<8x1xf32>
    %c0_i32 = arith.constant 0 : i32
    %720 = vector.broadcast %c0_i32 : i32 to vector<8x128xi32>
    %721 = arith.cmpi eq, %697, %720 : vector<8x128xi32>
    %722 = vector.shape_cast %719 : vector<8x1xf32> to vector<8x1xf32>
    %723 = vector.broadcast %722 : vector<8x1xf32> to vector<8x128xf32>
    %724 = arith.select %721, %723, %705 : vector<8x128xi1>, vector<8x128xf32>
    %c10_i32 = arith.constant 10 : i32
    %725 = vector.broadcast %c10_i32 : i32 to vector<8x128xi32>
    %726 = arith.cmpi eq, %697, %725 : vector<8x128xi32>
    %727 = arith.sitofp %713 : vector<8x1xi32> to vector<8x1xf32>
    %728 = vector.shape_cast %727 : vector<8x1xf32> to vector<8x1xf32>
    %729 = vector.broadcast %728 : vector<8x1xf32> to vector<8x128xf32>
    %730 = arith.select %726, %729, %724 : vector<8x128xi1>, vector<8x128xf32>
    %cst_256 = arith.constant 0xFF800000 : f32
    %731 = vector.broadcast %cst_256 : f32 to vector<8x16xf32>
    %732 = arith.select %715, %731, %695 : vector<8x16xi1>, vector<8x16xf32>
    %cst_257 = arith.constant dense<0xFF800000> : vector<8xf32>
    %733 = vector.multi_reduction <maximumf>, %732, %cst_257 [1] : vector<8x16xf32> to vector<8xf32>
    %734 = vector.shape_cast %733 : vector<8xf32> to vector<8x1xf32>
    %735 = vector.broadcast %734 : vector<8x1xf32> to vector<8x16xf32>
    %736 = arith.cmpf oeq, %732, %735 : vector<8x16xf32>
    %c16_i32_258 = arith.constant 16 : i32
    %737 = vector.broadcast %c16_i32_258 : i32 to vector<8x16xi32>
    %738 = arith.select %736, %696, %737 : vector<8x16xi1>, vector<8x16xi32>
    %cst_259 = arith.constant dense<2147483647> : vector<8xi32>
    %739 = vector.multi_reduction <minsi>, %738, %cst_259 [1] : vector<8x16xi32> to vector<8xi32>
    %740 = vector.shape_cast %739 : vector<8xi32> to vector<8x1xi32>
    %741 = vector.broadcast %740 : vector<8x1xi32> to vector<8x16xi32>
    %742 = arith.cmpi eq, %696, %741 : vector<8x16xi32>
    %cst_260 = arith.constant 0.000000e+00 : f32
    %743 = vector.broadcast %cst_260 : f32 to vector<8x16xf32>
    %744 = arith.select %742, %690, %743 : vector<8x16xi1>, vector<8x16xf32>
    %cst_261 = arith.constant dense<0.000000e+00> : vector<8xf32>
    %745 = vector.multi_reduction <add>, %744, %cst_261 [1] : vector<8x16xf32> to vector<8xf32>
    %746 = vector.shape_cast %745 : vector<8xf32> to vector<8x1xf32>
    %c1_i32 = arith.constant 1 : i32
    %747 = vector.broadcast %c1_i32 : i32 to vector<8x128xi32>
    %748 = arith.cmpi eq, %697, %747 : vector<8x128xi32>
    %749 = vector.shape_cast %746 : vector<8x1xf32> to vector<8x1xf32>
    %750 = vector.broadcast %749 : vector<8x1xf32> to vector<8x128xf32>
    %751 = arith.select %748, %750, %730 : vector<8x128xi1>, vector<8x128xf32>
    %c11_i32 = arith.constant 11 : i32
    %752 = vector.broadcast %c11_i32 : i32 to vector<8x128xi32>
    %753 = arith.cmpi eq, %697, %752 : vector<8x128xi32>
    %754 = arith.sitofp %740 : vector<8x1xi32> to vector<8x1xf32>
    %755 = vector.shape_cast %754 : vector<8x1xf32> to vector<8x1xf32>
    %756 = vector.broadcast %755 : vector<8x1xf32> to vector<8x128xf32>
    %757 = arith.select %753, %756, %751 : vector<8x128xi1>, vector<8x128xf32>
    %cst_262 = arith.constant 0xFF800000 : f32
    %758 = vector.broadcast %cst_262 : f32 to vector<8x16xf32>
    %759 = arith.select %742, %758, %732 : vector<8x16xi1>, vector<8x16xf32>
    %cst_263 = arith.constant dense<0xFF800000> : vector<8xf32>
    %760 = vector.multi_reduction <maximumf>, %759, %cst_263 [1] : vector<8x16xf32> to vector<8xf32>
    %761 = vector.shape_cast %760 : vector<8xf32> to vector<8x1xf32>
    %762 = vector.broadcast %761 : vector<8x1xf32> to vector<8x16xf32>
    %763 = arith.cmpf oeq, %759, %762 : vector<8x16xf32>
    %c16_i32_264 = arith.constant 16 : i32
    %764 = vector.broadcast %c16_i32_264 : i32 to vector<8x16xi32>
    %765 = arith.select %763, %696, %764 : vector<8x16xi1>, vector<8x16xi32>
    %cst_265 = arith.constant dense<2147483647> : vector<8xi32>
    %766 = vector.multi_reduction <minsi>, %765, %cst_265 [1] : vector<8x16xi32> to vector<8xi32>
    %767 = vector.shape_cast %766 : vector<8xi32> to vector<8x1xi32>
    %768 = vector.broadcast %767 : vector<8x1xi32> to vector<8x16xi32>
    %769 = arith.cmpi eq, %696, %768 : vector<8x16xi32>
    %cst_266 = arith.constant 0.000000e+00 : f32
    %770 = vector.broadcast %cst_266 : f32 to vector<8x16xf32>
    %771 = arith.select %769, %690, %770 : vector<8x16xi1>, vector<8x16xf32>
    %cst_267 = arith.constant dense<0.000000e+00> : vector<8xf32>
    %772 = vector.multi_reduction <add>, %771, %cst_267 [1] : vector<8x16xf32> to vector<8xf32>
    %773 = vector.shape_cast %772 : vector<8xf32> to vector<8x1xf32>
    %c2_i32 = arith.constant 2 : i32
    %774 = vector.broadcast %c2_i32 : i32 to vector<8x128xi32>
    %775 = arith.cmpi eq, %697, %774 : vector<8x128xi32>
    %776 = vector.shape_cast %773 : vector<8x1xf32> to vector<8x1xf32>
    %777 = vector.broadcast %776 : vector<8x1xf32> to vector<8x128xf32>
    %778 = arith.select %775, %777, %757 : vector<8x128xi1>, vector<8x128xf32>
    %c12_i32 = arith.constant 12 : i32
    %779 = vector.broadcast %c12_i32 : i32 to vector<8x128xi32>
    %780 = arith.cmpi eq, %697, %779 : vector<8x128xi32>
    %781 = arith.sitofp %767 : vector<8x1xi32> to vector<8x1xf32>
    %782 = vector.shape_cast %781 : vector<8x1xf32> to vector<8x1xf32>
    %783 = vector.broadcast %782 : vector<8x1xf32> to vector<8x128xf32>
    %784 = arith.select %780, %783, %778 : vector<8x128xi1>, vector<8x128xf32>
    %cst_268 = arith.constant 0xFF800000 : f32
    %785 = vector.broadcast %cst_268 : f32 to vector<8x16xf32>
    %786 = arith.select %769, %785, %759 : vector<8x16xi1>, vector<8x16xf32>
    %cst_269 = arith.constant dense<0xFF800000> : vector<8xf32>
    %787 = vector.multi_reduction <maximumf>, %786, %cst_269 [1] : vector<8x16xf32> to vector<8xf32>
    %788 = vector.shape_cast %787 : vector<8xf32> to vector<8x1xf32>
    %789 = vector.broadcast %788 : vector<8x1xf32> to vector<8x16xf32>
    %790 = arith.cmpf oeq, %786, %789 : vector<8x16xf32>
    %c16_i32_270 = arith.constant 16 : i32
    %791 = vector.broadcast %c16_i32_270 : i32 to vector<8x16xi32>
    %792 = arith.select %790, %696, %791 : vector<8x16xi1>, vector<8x16xi32>
    %cst_271 = arith.constant dense<2147483647> : vector<8xi32>
    %793 = vector.multi_reduction <minsi>, %792, %cst_271 [1] : vector<8x16xi32> to vector<8xi32>
    %794 = vector.shape_cast %793 : vector<8xi32> to vector<8x1xi32>
    %795 = vector.broadcast %794 : vector<8x1xi32> to vector<8x16xi32>
    %796 = arith.cmpi eq, %696, %795 : vector<8x16xi32>
    %cst_272 = arith.constant 0.000000e+00 : f32
    %797 = vector.broadcast %cst_272 : f32 to vector<8x16xf32>
    %798 = arith.select %796, %690, %797 : vector<8x16xi1>, vector<8x16xf32>
    %cst_273 = arith.constant dense<0.000000e+00> : vector<8xf32>
    %799 = vector.multi_reduction <add>, %798, %cst_273 [1] : vector<8x16xf32> to vector<8xf32>
    %800 = vector.shape_cast %799 : vector<8xf32> to vector<8x1xf32>
    %c3_i32 = arith.constant 3 : i32
    %801 = vector.broadcast %c3_i32 : i32 to vector<8x128xi32>
    %802 = arith.cmpi eq, %697, %801 : vector<8x128xi32>
    %803 = vector.shape_cast %800 : vector<8x1xf32> to vector<8x1xf32>
    %804 = vector.broadcast %803 : vector<8x1xf32> to vector<8x128xf32>
    %805 = arith.select %802, %804, %784 : vector<8x128xi1>, vector<8x128xf32>
    %c13_i32 = arith.constant 13 : i32
    %806 = vector.broadcast %c13_i32 : i32 to vector<8x128xi32>
    %807 = arith.cmpi eq, %697, %806 : vector<8x128xi32>
    %808 = arith.sitofp %794 : vector<8x1xi32> to vector<8x1xf32>
    %809 = vector.shape_cast %808 : vector<8x1xf32> to vector<8x1xf32>
    %810 = vector.broadcast %809 : vector<8x1xf32> to vector<8x128xf32>
    %811 = arith.select %807, %810, %805 : vector<8x128xi1>, vector<8x128xf32>
    %cst_274 = arith.constant 0xFF800000 : f32
    %812 = vector.broadcast %cst_274 : f32 to vector<8x16xf32>
    %813 = arith.select %796, %812, %786 : vector<8x16xi1>, vector<8x16xf32>
    %cst_275 = arith.constant dense<0xFF800000> : vector<8xf32>
    %814 = vector.multi_reduction <maximumf>, %813, %cst_275 [1] : vector<8x16xf32> to vector<8xf32>
    %815 = vector.shape_cast %814 : vector<8xf32> to vector<8x1xf32>
    %816 = vector.broadcast %815 : vector<8x1xf32> to vector<8x16xf32>
    %817 = arith.cmpf oeq, %813, %816 : vector<8x16xf32>
    %c16_i32_276 = arith.constant 16 : i32
    %818 = vector.broadcast %c16_i32_276 : i32 to vector<8x16xi32>
    %819 = arith.select %817, %696, %818 : vector<8x16xi1>, vector<8x16xi32>
    %cst_277 = arith.constant dense<2147483647> : vector<8xi32>
    %820 = vector.multi_reduction <minsi>, %819, %cst_277 [1] : vector<8x16xi32> to vector<8xi32>
    %821 = vector.shape_cast %820 : vector<8xi32> to vector<8x1xi32>
    %822 = vector.broadcast %821 : vector<8x1xi32> to vector<8x16xi32>
    %823 = arith.cmpi eq, %696, %822 : vector<8x16xi32>
    %cst_278 = arith.constant 0.000000e+00 : f32
    %824 = vector.broadcast %cst_278 : f32 to vector<8x16xf32>
    %825 = arith.select %823, %690, %824 : vector<8x16xi1>, vector<8x16xf32>
    %cst_279 = arith.constant dense<0.000000e+00> : vector<8xf32>
    %826 = vector.multi_reduction <add>, %825, %cst_279 [1] : vector<8x16xf32> to vector<8xf32>
    %827 = vector.shape_cast %826 : vector<8xf32> to vector<8x1xf32>
    %c4_i32 = arith.constant 4 : i32
    %828 = vector.broadcast %c4_i32 : i32 to vector<8x128xi32>
    %829 = arith.cmpi eq, %697, %828 : vector<8x128xi32>
    %830 = vector.shape_cast %827 : vector<8x1xf32> to vector<8x1xf32>
    %831 = vector.broadcast %830 : vector<8x1xf32> to vector<8x128xf32>
    %832 = arith.select %829, %831, %811 : vector<8x128xi1>, vector<8x128xf32>
    %c14_i32 = arith.constant 14 : i32
    %833 = vector.broadcast %c14_i32 : i32 to vector<8x128xi32>
    %834 = arith.cmpi eq, %697, %833 : vector<8x128xi32>
    %835 = arith.sitofp %821 : vector<8x1xi32> to vector<8x1xf32>
    %836 = vector.shape_cast %835 : vector<8x1xf32> to vector<8x1xf32>
    %837 = vector.broadcast %836 : vector<8x1xf32> to vector<8x128xf32>
    %838 = arith.select %834, %837, %832 : vector<8x128xi1>, vector<8x128xf32>
    %cst_280 = arith.constant 0xFF800000 : f32
    %839 = vector.broadcast %cst_280 : f32 to vector<8x16xf32>
    %840 = arith.select %823, %839, %813 : vector<8x16xi1>, vector<8x16xf32>
    %cst_281 = arith.constant dense<0xFF800000> : vector<8xf32>
    %841 = vector.multi_reduction <maximumf>, %840, %cst_281 [1] : vector<8x16xf32> to vector<8xf32>
    %842 = vector.shape_cast %841 : vector<8xf32> to vector<8x1xf32>
    %843 = vector.broadcast %842 : vector<8x1xf32> to vector<8x16xf32>
    %844 = arith.cmpf oeq, %840, %843 : vector<8x16xf32>
    %c16_i32_282 = arith.constant 16 : i32
    %845 = vector.broadcast %c16_i32_282 : i32 to vector<8x16xi32>
    %846 = arith.select %844, %696, %845 : vector<8x16xi1>, vector<8x16xi32>
    %cst_283 = arith.constant dense<2147483647> : vector<8xi32>
    %847 = vector.multi_reduction <minsi>, %846, %cst_283 [1] : vector<8x16xi32> to vector<8xi32>
    %848 = vector.shape_cast %847 : vector<8xi32> to vector<8x1xi32>
    %849 = vector.broadcast %848 : vector<8x1xi32> to vector<8x16xi32>
    %850 = arith.cmpi eq, %696, %849 : vector<8x16xi32>
    %cst_284 = arith.constant 0.000000e+00 : f32
    %851 = vector.broadcast %cst_284 : f32 to vector<8x16xf32>
    %852 = arith.select %850, %690, %851 : vector<8x16xi1>, vector<8x16xf32>
    %cst_285 = arith.constant dense<0.000000e+00> : vector<8xf32>
    %853 = vector.multi_reduction <add>, %852, %cst_285 [1] : vector<8x16xf32> to vector<8xf32>
    %854 = vector.shape_cast %853 : vector<8xf32> to vector<8x1xf32>
    %c5_i32 = arith.constant 5 : i32
    %855 = vector.broadcast %c5_i32 : i32 to vector<8x128xi32>
    %856 = arith.cmpi eq, %697, %855 : vector<8x128xi32>
    %857 = vector.shape_cast %854 : vector<8x1xf32> to vector<8x1xf32>
    %858 = vector.broadcast %857 : vector<8x1xf32> to vector<8x128xf32>
    %859 = arith.select %856, %858, %838 : vector<8x128xi1>, vector<8x128xf32>
    %c15_i32 = arith.constant 15 : i32
    %860 = vector.broadcast %c15_i32 : i32 to vector<8x128xi32>
    %861 = arith.cmpi eq, %697, %860 : vector<8x128xi32>
    %862 = arith.sitofp %848 : vector<8x1xi32> to vector<8x1xf32>
    %863 = vector.shape_cast %862 : vector<8x1xf32> to vector<8x1xf32>
    %864 = vector.broadcast %863 : vector<8x1xf32> to vector<8x128xf32>
    %865 = arith.select %861, %864, %859 : vector<8x128xi1>, vector<8x128xf32>
    %cst_286 = arith.constant 0xFF800000 : f32
    %866 = vector.broadcast %cst_286 : f32 to vector<8x16xf32>
    %867 = arith.select %850, %866, %840 : vector<8x16xi1>, vector<8x16xf32>
    %cst_287 = arith.constant dense<0xFF800000> : vector<8xf32>
    %868 = vector.multi_reduction <maximumf>, %867, %cst_287 [1] : vector<8x16xf32> to vector<8xf32>
    %869 = vector.shape_cast %868 : vector<8xf32> to vector<8x1xf32>
    %870 = vector.broadcast %869 : vector<8x1xf32> to vector<8x16xf32>
    %871 = arith.cmpf oeq, %867, %870 : vector<8x16xf32>
    %c16_i32_288 = arith.constant 16 : i32
    %872 = vector.broadcast %c16_i32_288 : i32 to vector<8x16xi32>
    %873 = arith.select %871, %696, %872 : vector<8x16xi1>, vector<8x16xi32>
    %cst_289 = arith.constant dense<2147483647> : vector<8xi32>
    %874 = vector.multi_reduction <minsi>, %873, %cst_289 [1] : vector<8x16xi32> to vector<8xi32>
    %875 = vector.shape_cast %874 : vector<8xi32> to vector<8x1xi32>
    %876 = vector.broadcast %875 : vector<8x1xi32> to vector<8x16xi32>
    %877 = arith.cmpi eq, %696, %876 : vector<8x16xi32>
    %cst_290 = arith.constant 0.000000e+00 : f32
    %878 = vector.broadcast %cst_290 : f32 to vector<8x16xf32>
    %879 = arith.select %877, %690, %878 : vector<8x16xi1>, vector<8x16xf32>
    %cst_291 = arith.constant dense<0.000000e+00> : vector<8xf32>
    %880 = vector.multi_reduction <add>, %879, %cst_291 [1] : vector<8x16xf32> to vector<8xf32>
    %881 = vector.shape_cast %880 : vector<8xf32> to vector<8x1xf32>
    %c6_i32 = arith.constant 6 : i32
    %882 = vector.broadcast %c6_i32 : i32 to vector<8x128xi32>
    %883 = arith.cmpi eq, %697, %882 : vector<8x128xi32>
    %884 = vector.shape_cast %881 : vector<8x1xf32> to vector<8x1xf32>
    %885 = vector.broadcast %884 : vector<8x1xf32> to vector<8x128xf32>
    %886 = arith.select %883, %885, %865 : vector<8x128xi1>, vector<8x128xf32>
    %c16_i32_292 = arith.constant 16 : i32
    %887 = vector.broadcast %c16_i32_292 : i32 to vector<8x128xi32>
    %888 = arith.cmpi eq, %697, %887 : vector<8x128xi32>
    %889 = arith.sitofp %875 : vector<8x1xi32> to vector<8x1xf32>
    %890 = vector.shape_cast %889 : vector<8x1xf32> to vector<8x1xf32>
    %891 = vector.broadcast %890 : vector<8x1xf32> to vector<8x128xf32>
    %892 = arith.select %888, %891, %886 : vector<8x128xi1>, vector<8x128xf32>
    %cst_293 = arith.constant 0xFF800000 : f32
    %893 = vector.broadcast %cst_293 : f32 to vector<8x16xf32>
    %894 = arith.select %877, %893, %867 : vector<8x16xi1>, vector<8x16xf32>
    %cst_294 = arith.constant dense<0xFF800000> : vector<8xf32>
    %895 = vector.multi_reduction <maximumf>, %894, %cst_294 [1] : vector<8x16xf32> to vector<8xf32>
    %896 = vector.shape_cast %895 : vector<8xf32> to vector<8x1xf32>
    %897 = vector.broadcast %896 : vector<8x1xf32> to vector<8x16xf32>
    %898 = arith.cmpf oeq, %894, %897 : vector<8x16xf32>
    %c16_i32_295 = arith.constant 16 : i32
    %899 = vector.broadcast %c16_i32_295 : i32 to vector<8x16xi32>
    %900 = arith.select %898, %696, %899 : vector<8x16xi1>, vector<8x16xi32>
    %cst_296 = arith.constant dense<2147483647> : vector<8xi32>
    %901 = vector.multi_reduction <minsi>, %900, %cst_296 [1] : vector<8x16xi32> to vector<8xi32>
    %902 = vector.shape_cast %901 : vector<8xi32> to vector<8x1xi32>
    %903 = vector.broadcast %902 : vector<8x1xi32> to vector<8x16xi32>
    %904 = arith.cmpi eq, %696, %903 : vector<8x16xi32>
    %cst_297 = arith.constant 0.000000e+00 : f32
    %905 = vector.broadcast %cst_297 : f32 to vector<8x16xf32>
    %906 = arith.select %904, %690, %905 : vector<8x16xi1>, vector<8x16xf32>
    %cst_298 = arith.constant dense<0.000000e+00> : vector<8xf32>
    %907 = vector.multi_reduction <add>, %906, %cst_298 [1] : vector<8x16xf32> to vector<8xf32>
    %908 = vector.shape_cast %907 : vector<8xf32> to vector<8x1xf32>
    %c7_i32 = arith.constant 7 : i32
    %909 = vector.broadcast %c7_i32 : i32 to vector<8x128xi32>
    %910 = arith.cmpi eq, %697, %909 : vector<8x128xi32>
    %911 = vector.shape_cast %908 : vector<8x1xf32> to vector<8x1xf32>
    %912 = vector.broadcast %911 : vector<8x1xf32> to vector<8x128xf32>
    %913 = arith.select %910, %912, %892 : vector<8x128xi1>, vector<8x128xf32>
    %c17_i32 = arith.constant 17 : i32
    %914 = vector.broadcast %c17_i32 : i32 to vector<8x128xi32>
    %915 = arith.cmpi eq, %697, %914 : vector<8x128xi32>
    %916 = arith.sitofp %902 : vector<8x1xi32> to vector<8x1xf32>
    %917 = vector.shape_cast %916 : vector<8x1xf32> to vector<8x1xf32>
    %918 = vector.broadcast %917 : vector<8x1xf32> to vector<8x128xf32>
    %919 = arith.select %915, %918, %913 : vector<8x128xi1>, vector<8x128xf32>
    %cst_299 = arith.constant 0xFF800000 : f32
    %920 = vector.broadcast %cst_299 : f32 to vector<8x16xf32>
    %921 = arith.select %904, %920, %894 : vector<8x16xi1>, vector<8x16xf32>
    %cst_300 = arith.constant dense<0xFF800000> : vector<8xf32>
    %922 = vector.multi_reduction <maximumf>, %921, %cst_300 [1] : vector<8x16xf32> to vector<8xf32>
    %923 = vector.shape_cast %922 : vector<8xf32> to vector<8x1xf32>
    %924 = vector.broadcast %923 : vector<8x1xf32> to vector<8x16xf32>
    %925 = arith.cmpf oeq, %921, %924 : vector<8x16xf32>
    %c16_i32_301 = arith.constant 16 : i32
    %926 = vector.broadcast %c16_i32_301 : i32 to vector<8x16xi32>
    %927 = arith.select %925, %696, %926 : vector<8x16xi1>, vector<8x16xi32>
    %cst_302 = arith.constant dense<2147483647> : vector<8xi32>
    %928 = vector.multi_reduction <minsi>, %927, %cst_302 [1] : vector<8x16xi32> to vector<8xi32>
    %929 = vector.shape_cast %928 : vector<8xi32> to vector<8x1xi32>
    %930 = vector.broadcast %929 : vector<8x1xi32> to vector<8x16xi32>
    %931 = arith.cmpi eq, %696, %930 : vector<8x16xi32>
    %cst_303 = arith.constant 0.000000e+00 : f32
    %932 = vector.broadcast %cst_303 : f32 to vector<8x16xf32>
    %933 = arith.select %931, %690, %932 : vector<8x16xi1>, vector<8x16xf32>
    %cst_304 = arith.constant dense<0.000000e+00> : vector<8xf32>
    %934 = vector.multi_reduction <add>, %933, %cst_304 [1] : vector<8x16xf32> to vector<8xf32>
    %935 = vector.shape_cast %934 : vector<8xf32> to vector<8x1xf32>
    %c8_i32 = arith.constant 8 : i32
    %936 = vector.broadcast %c8_i32 : i32 to vector<8x128xi32>
    %937 = arith.cmpi eq, %697, %936 : vector<8x128xi32>
    %938 = vector.shape_cast %935 : vector<8x1xf32> to vector<8x1xf32>
    %939 = vector.broadcast %938 : vector<8x1xf32> to vector<8x128xf32>
    %940 = arith.select %937, %939, %919 : vector<8x128xi1>, vector<8x128xf32>
    %c18_i32 = arith.constant 18 : i32
    %941 = vector.broadcast %c18_i32 : i32 to vector<8x128xi32>
    %942 = arith.cmpi eq, %697, %941 : vector<8x128xi32>
    %943 = arith.sitofp %929 : vector<8x1xi32> to vector<8x1xf32>
    %944 = vector.shape_cast %943 : vector<8x1xf32> to vector<8x1xf32>
    %945 = vector.broadcast %944 : vector<8x1xf32> to vector<8x128xf32>
    %946 = arith.select %942, %945, %940 : vector<8x128xi1>, vector<8x128xf32>
    %cst_305 = arith.constant 0xFF800000 : f32
    %947 = vector.broadcast %cst_305 : f32 to vector<8x16xf32>
    %948 = arith.select %931, %947, %921 : vector<8x16xi1>, vector<8x16xf32>
    %cst_306 = arith.constant dense<0xFF800000> : vector<8xf32>
    %949 = vector.multi_reduction <maximumf>, %948, %cst_306 [1] : vector<8x16xf32> to vector<8xf32>
    %950 = vector.shape_cast %949 : vector<8xf32> to vector<8x1xf32>
    %951 = vector.broadcast %950 : vector<8x1xf32> to vector<8x16xf32>
    %952 = arith.cmpf oeq, %948, %951 : vector<8x16xf32>
    %c16_i32_307 = arith.constant 16 : i32
    %953 = vector.broadcast %c16_i32_307 : i32 to vector<8x16xi32>
    %954 = arith.select %952, %696, %953 : vector<8x16xi1>, vector<8x16xi32>
    %cst_308 = arith.constant dense<2147483647> : vector<8xi32>
    %955 = vector.multi_reduction <minsi>, %954, %cst_308 [1] : vector<8x16xi32> to vector<8xi32>
    %956 = vector.shape_cast %955 : vector<8xi32> to vector<8x1xi32>
    %957 = vector.broadcast %956 : vector<8x1xi32> to vector<8x16xi32>
    %958 = arith.cmpi eq, %696, %957 : vector<8x16xi32>
    %cst_309 = arith.constant 0.000000e+00 : f32
    %959 = vector.broadcast %cst_309 : f32 to vector<8x16xf32>
    %960 = arith.select %958, %690, %959 : vector<8x16xi1>, vector<8x16xf32>
    %cst_310 = arith.constant dense<0.000000e+00> : vector<8xf32>
    %961 = vector.multi_reduction <add>, %960, %cst_310 [1] : vector<8x16xf32> to vector<8xf32>
    %962 = vector.shape_cast %961 : vector<8xf32> to vector<8x1xf32>
    %c9_i32 = arith.constant 9 : i32
    %963 = vector.broadcast %c9_i32 : i32 to vector<8x128xi32>
    %964 = arith.cmpi eq, %697, %963 : vector<8x128xi32>
    %965 = vector.shape_cast %962 : vector<8x1xf32> to vector<8x1xf32>
    %966 = vector.broadcast %965 : vector<8x1xf32> to vector<8x128xf32>
    %967 = arith.select %964, %966, %946 : vector<8x128xi1>, vector<8x128xf32>
    %c19_i32 = arith.constant 19 : i32
    %968 = vector.broadcast %c19_i32 : i32 to vector<8x128xi32>
    %969 = arith.cmpi eq, %697, %968 : vector<8x128xi32>
    %970 = arith.sitofp %956 : vector<8x1xi32> to vector<8x1xf32>
    %971 = vector.shape_cast %970 : vector<8x1xf32> to vector<8x1xf32>
    %972 = vector.broadcast %971 : vector<8x1xf32> to vector<8x128xf32>
    %973 = arith.select %969, %972, %967 : vector<8x128xi1>, vector<8x128xf32>
    %c0_311 = arith.constant 0 : index
    %c0_312 = arith.constant 0 : index
    %974 = vector.load %arg10[%c0_311, %c0_312] : memref<8x128xf32, #tpu.memory_space<vmem>>, vector<8x128xf32>
    tpu.vector_store %arg10[%c0_311, %c0_312], %973 {strides = array<i32>} : memref<8x128xf32, #tpu.memory_space<vmem>>, vector<8x128xf32>,
    return
  }
  func.func @transform_0(%arg0: i32) -> (i32, i32, i32) {
    %c0_i32 = arith.constant 0 : i32
    %c0_i32_0 = arith.constant 0 : i32
    %c0_i32_1 = arith.constant 0 : i32
    return %c0_i32, %arg0, %c0_i32_0 : i32, i32, i32
  }
  func.func @transform_1(%arg0: i32) -> i32 {
    %c0_i32 = arith.constant 0 : i32
    %c0_i32_0 = arith.constant 0 : i32
    return %c0_i32 : i32
  }
  func.func @transform_2(%arg0: i32) -> i32 {
    %c0_i32 = arith.constant 0 : i32
    %c0_i32_0 = arith.constant 0 : i32
    return %c0_i32 : i32
  }
  func.func @transform_3(%arg0: i32) -> i32 {
    %c0_i32 = arith.constant 0 : i32
    %c0_i32_0 = arith.constant 0 : i32
    return %c0_i32 : i32
  }
  func.func @transform_4(%arg0: i32) -> i32 {
    %c0_i32 = arith.constant 0 : i32
    %c0_i32_0 = arith.constant 0 : i32
    return %c0_i32 : i32
  }
  func.func @transform_5(%arg0: i32) -> i32 {
    %c0_i32 = arith.constant 0 : i32
    %c0_i32_0 = arith.constant 0 : i32
    return %c0_i32 : i32
  }
  func.func @transform_6(%arg0: i32) -> i32 {
    %c0_i32 = arith.constant 0 : i32
    %c0_i32_0 = arith.constant 0 : i32
    return %c0_i32 : i32
  }
  func.func @transform_7(%arg0: i32) -> i32 {
    %c0_i32 = arith.constant 0 : i32
    %c0_i32_0 = arith.constant 0 : i32
    return %c0_i32 : i32
  }
  func.func @transform_8(%arg0: i32) -> i32 {
    %c0_i32 = arith.constant 0 : i32
    %c0_i32_0 = arith.constant 0 : i32
    return %c0_i32 : i32
  }
  func.func @transform_9(%arg0: i32) -> (i32, i32) {
    %c0_i32 = arith.constant 0 : i32
    %c0_i32_0 = arith.constant 0 : i32
    return %arg0, %c0_i32 : i32, i32
  }
}

</mosaic_0001>

<bundles_post_ra>
// kernel: tpu_custom_call.1
= control target key start
LH: loop header
LB: loop body
LE: loop exit
PB: predicated region body
PF: predicated region fallthrough
CT: control target
= control target key end

     0   :  { %s2770_s0 = inlined_call_operand.hbm [shape: f32[8,8,16], index: 0, kind: input, shape index: {}]   ;;  %s2771_s1 = inlined_call_operand.vmem [shape: f32[56], index: 1, kind: input, shape index: {}]   ;;  %s2772_s2 = inlined_call_operand.vmem [shape: f32[8], index: 2, kind: input, shape index: {}]   ;;  %s2773_s3 = inlined_call_operand.vmem [shape: f32[8], index: 3, kind: input, shape index: {}]   ;;  %s2774_s4 = inlined_call_operand.<no memory space> [shape: f32[1], index: 4, kind: input, shape index: {}]   ;;  %s2775_s5 = inlined_call_operand.vmem [shape: f32[56], index: 5, kind: input, shape index: {}]   ;;  %s2776_s6 = inlined_call_operand.vmem [shape: f32[8], index: 6, kind: input, shape index: {}]   ;;  %s2777_s7 = inlined_call_operand.vmem [shape: f32[8], index: 7, kind: input, shape index: {}]   ;;  %s2778_s8 = inlined_call_operand.<no memory space> [shape: f32[1], index: 8, kind: input, shape index: {}]   ;;  %s2779_s9 = inlined_call_operand.hbm [shape: f32[8,128], index: 9, kind: output, shape index: {}]  }
   0x1   :  { %2929 = sst [smem:[#allocation210_spill]] %s2774_s4 }
   0x2   :  { %2930 = sst [smem:[#allocation211_spill]] %s2778_s8 }
   0x3   :  { %2931 = sst [smem:[#allocation212_spill]] %s2779_s9 }
   0x4   :  { %16 = vsyncpa [#allocation5], 0 }
   0x5   :  { %17 = vsyncpa [#allocation7], 0 }
   0x6   :  { %18 = vsyncpa [#allocation10], 0 }
   0x7   :  { %19 = vsyncpa [#allocation13], 0 }
   0x8   :  { %20 = vsyncpa [#allocation16], 0  ;;  %s50_s11 = sshll.u32 %s2772_s2, 4  ;;  %s51_s11 = int_to_ptr.vmem [resolvable:$true] %s50_s11 }
   0x9   :  { %21 = vsyncpa [#allocation6], 0  ;;  %s72_s14 = sshll.u32 %s2775_s5, 4  ;;  %s1132_s15 = scalar_lea.vmem %s51_s11, 16  ;;  %s73_s14 = int_to_ptr.vmem [resolvable:$true] %s72_s14 }
   0xa   :  { %p1133_p0 = scmp.ne.s32.totalorder %s51_s11, %s1132_s15  ;;  %p1137_p1 = scmp.lt.s32.totalorder %s51_s11, %s51_s11 }
   0xb   :  { %p1138_p2 = scmp.lt.s32.totalorder %s1132_s15, %s1132_s15 }
   0xd   :  { %p1139_p3 = por %p1138_p2, %p1137_p1 }
   0xf   :  { %p1140_p4 = pnand %p1139_p3, %p1133_p0 }
  0x11   :  { %1143 = shalt.err (!%p1140_p4)
}
  0x12   :  { %s1260_s16 = smov [#allocation9]   ;;  %s1144_s17 = scalar_lea.vmem %s73_s14, 16 }
  0x13   :  { %53 = dma.vmem_to_smem %s51_s11, 16, %s1260_s16, [#allocation10]  }
  0x14   :  { %p1145_p5 = scmp.ne.s32.totalorder %s73_s14, %s1144_s17  ;;  %p1149_p6 = scmp.lt.s32.totalorder %s73_s14, %s73_s14 }
  0x15   :  { %p1150_p7 = scmp.lt.s32.totalorder %s1144_s17, %s1144_s17 }
  0x17   :  { %p1151_p8 = por %p1150_p7, %p1149_p6 }
  0x19   :  { %p1152_p9 = pnand %p1151_p8, %p1145_p5 }
  0x1b   :  { %1155 = shalt.err (!%p1152_p9)
}
  0x1c   :  { %s1261_s2 = smov [#allocation12]   ;;  %s1262_s5 = smov [#allocation4]  }
  0x1d   :  { %75 = dma.vmem_to_smem %s73_s14, 16, %s1261_s2, [#allocation13]  }
  0x1e   :  { %s27_s18 = sshll.u32 %s1262_s5, 4  ;;  %s40_s21 = sshll.u32 %s2771_s1, 4  ;;  %s28_s18 = int_to_ptr.vmem [resolvable:$true] %s27_s18  ;;  %s41_s21 = int_to_ptr.vmem [resolvable:$true] %s40_s21 }
  0x1f   :  { %s1156_s24 = scalar_lea.hbm %s2770_s0, 1024 }
  0x20   :  { %p1157_p10 = scmp.ne.s32.totalorder %s2770_s0, %s1156_s24  ;;  %p1160_p11 = scmp.lt.u32.totalorder %s1156_s24, %s2770_s0 }
  0x22   :  { %p1162_p12 = pnand %p1160_p11, %p1157_p10 }
  0x24   :  { %1165 = shalt.err (!%p1162_p12)
}
  0x25   :  { %s1166_s29 = scalar_lea.vmem %s28_s18, 1024  ;;  %p1171_p0 = scmp.lt.s32.totalorder %s28_s18, %s28_s18 }
  0x26   :  { %p1167_p13 = scmp.ne.s32.totalorder %s28_s18, %s1166_s29  ;;  %p1172_p1 = scmp.lt.s32.totalorder %s1166_s29, %s1166_s29 }
  0x28   :  { %p1173_p2 = por %p1172_p1, %p1171_p0 }
  0x2a   :  { %p1174_p3 = pnand %p1173_p2, %p1167_p13 }
  0x2c   :  { %1177 = shalt.err (!%p1174_p3)
}
  0x2d   :  { %s1263_s1 = smov 128   ;;  %s1264_s30 = smov 8  }
  0x2e   :  { %33 = dma.hbm_to_vmem [thread:$0]  %s2770_s0, 1024, %s28_s18, [#allocation5], %s1263_s1, %s1263_s1, %s1264_s30  }
  0x2f   :  { %s1178_s12 = scalar_lea.vmem %s41_s21, 16  ;;  %p1183_p5 = scmp.lt.s32.totalorder %s41_s21, %s41_s21 }
  0x30   :  { %p1179_p4 = scmp.ne.s32.totalorder %s41_s21, %s1178_s12  ;;  %p1184_p6 = scmp.lt.s32.totalorder %s1178_s12, %s1178_s12 }
  0x32   :  { %p1185_p7 = por %p1184_p6, %p1183_p5 }
  0x34   :  { %p1186_p8 = pnand %p1185_p7, %p1179_p4 }
  0x36   :  { %1189 = shalt.err (!%p1186_p8)
}
  0x37   :  { %s1265_s13 = smov [#allocation8]   ;;  %s60_s16 = sshll.u32 %s2773_s3, 4  ;;  %s61_s16 = int_to_ptr.vmem [resolvable:$true] %s60_s16 }
  0x38   :  { %43 = dma.vmem_to_smem %s41_s21, 16, %s1265_s13, [#allocation7]  }
  0x39   :  { %s82_s5 = sshll.u32 %s2776_s6, 4  ;;  %s1190_s0 = scalar_lea.vmem %s61_s16, 16  ;;  %s83_s5 = int_to_ptr.vmem [resolvable:$true] %s82_s5 }
  0x3a   :  { %p1191_p9 = scmp.ne.s32.totalorder %s61_s16, %s1190_s0  ;;  %p1195_p10 = scmp.lt.s32.totalorder %s61_s16, %s61_s16 }
  0x3b   :  { %p1196_p11 = scmp.lt.s32.totalorder %s1190_s0, %s1190_s0 }
  0x3d   :  { %p1197_p12 = por %p1196_p11, %p1195_p10 }
  0x3f   :  { %p1198_p13 = pnand %p1197_p12, %p1191_p9 }
  0x41   :  { %1201 = shalt.err (!%p1198_p13)
}
  0x42   :  { %s1266_s18 = smov [#allocation11]   ;;  %s1202_s19 = scalar_lea.vmem %s83_s5, 16 }
  0x43   :  { %63 = dma.vmem_to_smem %s61_s16, 16, %s1266_s18, [#allocation10]  }
  0x44   :  { %p1203_p0 = scmp.ne.s32.totalorder %s83_s5, %s1202_s19  ;;  %p1207_p1 = scmp.lt.s32.totalorder %s83_s5, %s83_s5 }
  0x45   :  { %p1208_p2 = scmp.lt.s32.totalorder %s1202_s19, %s1202_s19 }
  0x47   :  { %p1209_p3 = por %p1208_p2, %p1207_p1 }
  0x49   :  { %p1210_p4 = pnand %p1209_p3, %p1203_p0 }
  0x4b   :  { %1213 = shalt.err (!%p1210_p4)
}
  0x4c   :  { %s1267_s3 = smov [#allocation14]   ;;  %s92_s21 = sshll.u32 %s2777_s7, 4  ;;  %s93_s21 = int_to_ptr.vmem [resolvable:$true] %s92_s21 }
  0x4d   :  { %85 = dma.vmem_to_smem %s83_s5, 16, %s1267_s3, [#allocation13]  }
  0x4e   :  { %s1214_s22 = scalar_lea.vmem %s93_s21, 16  ;;  %p1219_p6 = scmp.lt.s32.totalorder %s93_s21, %s93_s21 }
  0x4f   :  { %p1215_p5 = scmp.ne.s32.totalorder %s93_s21, %s1214_s22  ;;  %p1220_p7 = scmp.lt.s32.totalorder %s1214_s22, %s1214_s22 }
  0x51   :  { %p1221_p8 = por %p1220_p7, %p1219_p6 }
  0x53   :  { %p1222_p9 = pnand %p1221_p8, %p1215_p5 }
  0x55   :  { %1225 = shalt.err (!%p1222_p9)
}
  0x56   :  { %s1268_s23 = smov [#allocation15]  }
  0x57   :  { %95 = dma.vmem_to_smem %s93_s21, 16, %s1268_s23, [#allocation16]  }
  0x58   :  { %1248 = dma.done.wait [#allocation5], 1024  }
  0x59   :  { %1249 = vsyncadd [#allocation5], 4294966272 }
  0x5a   :  { %1250 = dma.done.wait [#allocation7], 16  }
  0x5b   :  { %1251 = vsyncadd [#allocation7], 4294967280 }
  0x5c   :  { %1252 = dma.done.wait [#allocation10], 32  }
  0x5d   :  { %1253 = vsyncadd [#allocation10], 4294967264 }
  0x5e   :  { %1254 = dma.done.wait [#allocation13], 32  }
  0x5f   :  { %1255 = vsyncadd [#allocation13], 4294967264 }
  0x60   :  { %1256 = dma.done.wait [#allocation16], 16  }
  0x61   :  { %1257 = vsyncadd [#allocation16], 4294967280 }
  0x62   :  { %119 = sfence }
  0x63   :  { %v1351_v0 = vld [vmem:[#allocation4] sm:$0xff]  ;;  %vm123_vm0 = vcmask 130048   ;;  %s1355_s7 = sld [smem:[#allocation8]]  ;;  %s1363_s27 = sld [smem:[#allocation8 + $0x1]]  ;;  %v1777_v55 = vld [vmem:[#allocation4 + $0x8] sm:$0xff] }
  0x64   :  { %v124_v1 = vsel %vm123_vm0, %v1351_v0, 0.0  ;;  %s1357_s24 = sld [smem:[#allocation12]]  ;;  %s1365_s28 = sld [smem:[#allocation12 + $0x1]] }
  0x65   :  { %125 = vadd.xlane.f32.xlu0 %v124_v1  ;;  %s1359_s25 = sld [smem:[#allocation9]]  ;;  %s1367_s29 = sld [smem:[#allocation8 + $0x2]] }
  0x66   :  { %s1361_s26 = sld [smem:[#allocation14]]  ;;  %s1369_s1 = sld [smem:[#allocation12 + $0x2]] }
  0x67   :  { %s1371_s30 = sld [smem:[#allocation8 + $0x3]]  ;;  %s1375_s11 = sld [smem:[#allocation8 + $0x4]] }
  0x68   :  { %s1373_s10 = sld [smem:[#allocation12 + $0x3]]  ;;  %s1377_s12 = sld [smem:[#allocation12 + $0x4]] }
  0x69   :  { %2932 = sst [smem:[#allocation24_spill]] %s1355_s7  ;;  %s1379_s13 = sld [smem:[#allocation8 + $0x5]]  ;;  %v135_v2 = vstv %s1355_s7  ;;  %v149_v7 = vstv %s1363_s27 }
  0x6a   :  { %2933 = sst [smem:[#allocation25_spill]] %s1357_s24  ;;  %s1381_s14 = sld [smem:[#allocation12 + $0x5]]  ;;  %v136_v4 = vstv %s1357_s24  ;;  %v150_v8 = vstv %s1365_s28 }
  0x6b   :  { %2934 = sst [smem:[#allocation26_spill]] %s1359_s25  ;;  %s1383_s15 = sld [smem:[#allocation8 + $0x6]]  ;;  %v141_v5 = vstv %s1359_s25  ;;  %v158_v9 = vstv %s1367_s29 }
  0x6c   :  { %2935 = sst [smem:[#allocation27_spill]] %s1361_s26  ;;  %s1385_s16 = sld [smem:[#allocation12 + $0x6]]  ;;  %v142_v6 = vstv %s1361_s26  ;;  %v159_v10 = vstv %s1369_s1 }
  0x6d   :  { %2936 = sst [smem:[#allocation28_spill]] %s1363_s27  ;;  %s1387_s17 = sld [smem:[#allocation11]]  ;;  %v167_v11 = vstv %s1371_s30  ;;  %v176_v13 = vstv %s1375_s11 }
  0x6e   :  { %2937 = sst [smem:[#allocation29_spill]] %s1365_s28  ;;  %s1389_s2 = sld [smem:[#allocation15]]  ;;  %v168_v12 = vstv %s1373_s10  ;;  %v177_v14 = vstv %s1377_s12 }
  0x6f   :  { %2938 = sst [smem:[#allocation30_spill]] %s1367_s29  ;;  %s1391_s5 = sld [smem:[#allocation8 + $0x7]]  ;;  %v185_v15 = vstv %s1379_s13 }
  0x70   :  { %2939 = sst [smem:[#allocation31_spill]] %s1369_s1  ;;  %s1395_s18 = sld [smem:[#allocation9 + $0x1]]  ;;  %v186_v16 = vstv %s1381_s14 }
  0x71   :  { %2940 = sst [smem:[#allocation32_spill]] %s1371_s30  ;;  %s1393_s0 = sld [smem:[#allocation12 + $0x7]]  ;;  %v194_v17 = vstv %s1383_s15 }
  0x72   :  { %2941 = sst [smem:[#allocation33_spill]] %s1373_s10  ;;  %s1399_s3 = sld [smem:[#allocation8 + $0x8]]  ;;  %v195_v18 = vstv %s1385_s16 }
  0x73   :  { %2942 = sst [smem:[#allocation34_spill]] %s1375_s11  ;;  %s1397_s19 = sld [smem:[#allocation14 + $0x1]]  ;;  %v202_v19 = vstv %s1387_s17 }
  0x74   :  { %2943 = sst [smem:[#allocation35_spill]] %s1377_s12  ;;  %s1401_s6 = sld [smem:[#allocation12 + $0x8]]  ;;  %v203_v20 = vstv %s1389_s2 }
  0x75   :  { %2944 = sst [smem:[#allocation36_spill]] %s1379_s13  ;;  %s1403_s20 = sld [smem:[#allocation8 + $0x9]]  ;;  %v208_v21 = vstv %s1391_s5 }
  0x76   :  { %2945 = sst [smem:[#allocation37_spill]] %s1381_s14  ;;  %s1405_s21 = sld [smem:[#allocation12 + $0x9]] }
  0x77   :  { %2946 = sst [smem:[#allocation38_spill]] %s1383_s15  ;;  %s1407_s22 = sld [smem:[#allocation8 + $0xa]]  ;;  %v209_v22 = vstv %s1393_s0 }
  0x78   :  { %2947 = sst [smem:[#allocation39_spill]] %s1385_s16  ;;  %s1409_s23 = sld [smem:[#allocation12 + $0xa]] }
  0x79   :  { %2948 = sst [smem:[#allocation40_spill]] %s1387_s17  ;;  %s1411_s9 = sld [smem:[#allocation8 + $0xb]] }
  0x7a   :  { %2949 = sst [smem:[#allocation41_spill]] %s1389_s2  ;;  %s1413_s8 = sld [smem:[#allocation12 + $0xb]] }
  0x7b   :  { %2950 = sst [smem:[#allocation42_spill]] %s1391_s5  ;;  %s1415_s4 = sld [smem:[#allocation8 + $0xc]] }
  0x7c   :  { %2951 = sst [smem:[#allocation43_spill]] %s1393_s0  ;;  %s1537_s7 = sld [smem:[#allocation11 + $0x4]] }
  0x7d   :  { %2952 = sst [smem:[#allocation44_spill]] %s1395_s18  ;;  %s1545_s25 = sld [smem:[#allocation8 + $0x23]] }
  0x7e   :  { %2953 = sst [smem:[#allocation45_spill]] %s1397_s19  ;;  %s1417_s18 = sld [smem:[#allocation12 + $0xc]] }
  0x7f   :  { %2954 = sst [smem:[#allocation46_spill]] %s1399_s3  ;;  %s1419_s19 = sld [smem:[#allocation8 + $0xd]] }
  0x80   :  { %2955 = sst [smem:[#allocation47_spill]] %s1401_s6  ;;  %s1421_s3 = sld [smem:[#allocation12 + $0xd]] }
  0x81   :  { %2956 = sst [smem:[#allocation48_spill]] %s1403_s20  ;;  %s1423_s6 = sld [smem:[#allocation11 + $0x1]] }
  0x82   :  { %2957 = sst [smem:[#allocation49_spill]] %s1405_s21  ;;  %s1427_s21 = sld [smem:[#allocation8 + $0xe]] }
  0x83   :  { %2958 = sst [smem:[#allocation50_spill]] %s1407_s22  ;;  %s1425_s20 = sld [smem:[#allocation15 + $0x1]] }
  0x84   :  { %2959 = sst [smem:[#allocation51_spill]] %s1409_s23  ;;  %s1429_s22 = sld [smem:[#allocation12 + $0xe]] }
  0x85   :  { %2960 = sst [smem:[#allocation52_spill]] %s1411_s9  ;;  %s1431_s23 = sld [smem:[#allocation9 + $0x2]] }
  0x86   :  { %2961 = sst [smem:[#allocation53_spill]] %s1413_s8  ;;  %s1433_s9 = sld [smem:[#allocation14 + $0x2]] }
  0x87   :  { %2962 = sst [smem:[#allocation54_spill]] %s1415_s4  ;;  %s1435_s8 = sld [smem:[#allocation8 + $0xf]] }
  0x88   :  { %2963 = sst [smem:[#allocation55_spill]] %s1417_s18  ;;  %s1439_s18 = sld [smem:[#allocation8 + $0x10]] }
  0x89   :  { %2964 = sst [smem:[#allocation56_spill]] %s1419_s19  ;;  %s1437_s4 = sld [smem:[#allocation12 + $0xf]] }
  0x8a   :  { %2965 = sst [smem:[#allocation57_spill]] %s1421_s3  ;;  %s1441_s19 = sld [smem:[#allocation12 + $0x10]] }
  0x8b   :  { %2966 = sst [smem:[#allocation58_spill]] %s1423_s6  ;;  %s1443_s3 = sld [smem:[#allocation8 + $0x11]] }
  0x8c   :  { %2967 = sst [smem:[#allocation59_spill]] %s1425_s20  ;;  %s1445_s6 = sld [smem:[#allocation12 + $0x11]] }
  0x8d   :  { %2968 = sst [smem:[#allocation60_spill]] %s1427_s21  ;;  %s1447_s20 = sld [smem:[#allocation8 + $0x12]] }
  0x8e   :  { %2969 = sst [smem:[#allocation61_spill]] %s1429_s22  ;;  %s1449_s21 = sld [smem:[#allocation12 + $0x12]] }
  0x8f   :  { %2970 = sst [smem:[#allocation62_spill]] %s1431_s23  ;;  %s1451_s22 = sld [smem:[#allocation8 + $0x13]] }
  0x90   :  { %2971 = sst [smem:[#allocation63_spill]] %s1433_s9  ;;  %s1453_s23 = sld [smem:[#allocation12 + $0x13]] }
  0x91   :  { %2972 = sst [smem:[#allocation64_spill]] %s1435_s8  ;;  %s1455_s9 = sld [smem:[#allocation8 + $0x14]] }
  0x92   :  { %2973 = sst [smem:[#allocation65_spill]] %s1437_s4  ;;  %s1457_s8 = sld [smem:[#allocation12 + $0x14]] }
  0x93   :  { %2974 = sst [smem:[#allocation66_spill]] %s1439_s18  ;;  %s3023_s26 = sld [smem:[#allocation44_spill]] }
  0x94   :  { %2975 = sst [smem:[#allocation67_spill]] %s1441_s19  ;;  %s1459_s4 = sld [smem:[#allocation11 + $0x2]] }
  0x95   :  { %2976 = sst [smem:[#allocation68_spill]] %s1443_s3  ;;  %s1461_s18 = sld [smem:[#allocation15 + $0x2]] }
  0x96   :  { %2977 = sst [smem:[#allocation69_spill]] %s1445_s6  ;;  %s1467_s6 = sld [smem:[#allocation9 + $0x3]] }
  0x97   :  { %2978 = sst [smem:[#allocation70_spill]] %s1447_s20  ;;  %s1463_s19 = sld [smem:[#allocation8 + $0x15]] }
  0x98   :  { %2979 = sst [smem:[#allocation71_spill]] %s1449_s21  ;;  %s1465_s3 = sld [smem:[#allocation12 + $0x15]] }
  0x99   :  { %2980 = sst [smem:[#allocation72_spill]] %s1451_s22  ;;  %s1469_s20 = sld [smem:[#allocation14 + $0x3]]  ;;  %v214_v23 = vstv %s3023_s26 }
  0x9a   :  { %2981 = sst [smem:[#allocation73_spill]] %s1453_s23  ;;  %s1471_s21 = sld [smem:[#allocation8 + $0x16]] }
  0x9b   :  { %2982 = sst [smem:[#allocation74_spill]] %s1455_s9  ;;  %s1473_s22 = sld [smem:[#allocation12 + $0x16]] }
  0x9c   :  { %2983 = sst [smem:[#allocation75_spill]] %s1457_s8  ;;  %s1475_s23 = sld [smem:[#allocation8 + $0x17]] }
  0x9d   :  { %2984 = sst [smem:[#allocation76_spill]] %s1459_s4  ;;  %s1477_s9 = sld [smem:[#allocation12 + $0x17]] }
  0x9e   :  { %2985 = sst [smem:[#allocation77_spill]] %s1461_s18  ;;  %s1479_s8 = sld [smem:[#allocation8 + $0x18]] }
  0x9f   :  { %2986 = sst [smem:[#allocation78_spill]] %s1463_s19  ;;  %s1481_s4 = sld [smem:[#allocation12 + $0x18]] }
  0xa0   :  { %2987 = sst [smem:[#allocation79_spill]] %s1465_s3  ;;  %s1483_s18 = sld [smem:[#allocation8 + $0x19]] }
  0xa1   :  { %2988 = sst [smem:[#allocation80_spill]] %s1467_s6  ;;  %s1485_s19 = sld [smem:[#allocation12 + $0x19]] }
  0xa2   :  { %2989 = sst [smem:[#allocation81_spill]] %s1469_s20  ;;  %s1487_s3 = sld [smem:[#allocation8 + $0x1a]] }
  0xa3   :  { %2990 = sst [smem:[#allocation82_spill]] %s1471_s21  ;;  %s1491_s20 = sld [smem:[#allocation8 + $0x1b]] }
  0xa4   :  { %2991 = sst [smem:[#allocation83_spill]] %s1473_s22  ;;  %s1489_s6 = sld [smem:[#allocation12 + $0x1a]] }
  0xa5   :  { %2992 = sst [smem:[#allocation84_spill]] %s1475_s23  ;;  %s1493_s21 = sld [smem:[#allocation12 + $0x1b]] }
  0xa6   :  { %2993 = sst [smem:[#allocation85_spill]] %s1477_s9  ;;  %s1495_s23 = sld [smem:[#allocation11 + $0x3]] }
  0xa7   :  { %2994 = sst [smem:[#allocation86_spill]] %s1479_s8  ;;  %s1497_s9 = sld [smem:[#allocation15 + $0x3]] }
  0xa8   :  { %2995 = sst [smem:[#allocation87_spill]] %s1481_s4  ;;  %s1499_s8 = sld [smem:[#allocation8 + $0x1c]] }
  0xa9   :  { %2996 = sst [smem:[#allocation88_spill]] %s1483_s18  ;;  %s1501_s4 = sld [smem:[#allocation12 + $0x1c]] }
  0xaa   :  { %2997 = sst [smem:[#allocation89_spill]] %s1485_s19  ;;  %s1503_s18 = sld [smem:[#allocation9 + $0x4]] }
  0xab   :  { %2998 = sst [smem:[#allocation90_spill]] %s1487_s3  ;;  %s1505_s3 = sld [smem:[#allocation14 + $0x4]] }
  0xac   :  { %2999 = sst [smem:[#allocation91_spill]] %s1489_s6  ;;  %s1507_s6 = sld [smem:[#allocation8 + $0x1d]] }
  0xad   :  { %3000 = sst [smem:[#allocation92_spill]] %s1491_s20  ;;  %s1511_s20 = sld [smem:[#allocation8 + $0x1e]] }
  0xae   :  { %3001 = sst [smem:[#allocation93_spill]] %s1493_s21  ;;  %s3025_s24 = sld [smem:[#allocation46_spill]] }
  0xaf   :  { %3002 = sst [smem:[#allocation94_spill]] %s1495_s23  ;;  %s1509_s21 = sld [smem:[#allocation12 + $0x1d]] }
  0xb0   :  { %3003 = sst [smem:[#allocation95_spill]] %s1497_s9  ;;  %s1513_s23 = sld [smem:[#allocation12 + $0x1e]] }
  0xb1   :  { %3004 = sst [smem:[#allocation96_spill]] %s1499_s8  ;;  %s1515_s8 = sld [smem:[#allocation8 + $0x1f]] }
  0xb2   :  { %3005 = sst [smem:[#allocation97_spill]] %s1501_s4  ;;  %s1517_s4 = sld [smem:[#allocation12 + $0x1f]] }
  0xb3   :  { %3006 = sst [smem:[#allocation98_spill]] %s1503_s18  ;;  %s1519_s18 = sld [smem:[#allocation8 + $0x20]] }
  0xb4   :  { %3007 = sst [smem:[#allocation99_spill]] %s1505_s3  ;;  %s1521_s3 = sld [smem:[#allocation12 + $0x20]]  ;;  %v220_v25 = vstv %s3025_s24 }
  0xb5   :  { %3008 = sst [smem:[#allocation100_spill]] %s1507_s6  ;;  %s1523_s6 = sld [smem:[#allocation8 + $0x21]] }
  0xb6   :  { %3009 = sst [smem:[#allocation101_spill]] %s1509_s21  ;;  %s1526_s21 = sld [smem:[#allocation12 + $0x21]] }
  0xb7   :  { %3010 = sst [smem:[#allocation102_spill]] %s1511_s20  ;;  %s3024_s27 = sld [smem:[#allocation45_spill]] }
  0xb8   :  { %3011 = sst [smem:[#allocation103_spill]] %s1513_s23  ;;  %s1528_s23 = sld [smem:[#allocation8 + $0x22]] }
  0xb9   :  { %3012 = sst [smem:[#allocation104_spill]] %s1515_s8  ;;  %s3027_s28 = sld [smem:[#allocation47_spill]] }
  0xba   :  { %3013 = sst [smem:[#allocation105_spill]] %s1517_s4  ;;  %s1553_s29 = sld [smem:[#allocation9 + $0x5]] }
  0xbb   :  { %3014 = sst [smem:[#allocation106_spill]] %s1519_s18  ;;  %s3029_s1 = sld [smem:[#allocation48_spill]] }
  0xbc   :  { %3015 = sst [smem:[#allocation107_spill]] %s1521_s3  ;;  %s1535_s3 = sld [smem:[#allocation12 + $0x22]] }
  0xbd   :  { %3016 = sst [smem:[#allocation108_spill]] %s1523_s6  ;;  %s3030_s30 = sld [smem:[#allocation49_spill]]  ;;  %v215_v24 = vstv %s3024_s27 }
  0xbe   :  { %3017 = sst [smem:[#allocation109_spill]] %s1526_s21  ;;  %s3033_s10 = sld [smem:[#allocation51_spill]] }
  0xbf   :  { %3018 = sst [smem:[#allocation110_spill]] %s1528_s23  ;;  %s1543_s23 = sld [smem:[#allocation15 + $0x4]]  ;;  %v221_v26 = vstv %s3027_s28 }
  0xc0   :  { %3020 = sst [smem:[#allocation112_spill]] %s1537_s7  ;;  %s1551_s7 = sld [smem:[#allocation12 + $0x23]] }
  0xc1   :  { %3022 = sst [smem:[#allocation114_spill]] %s1545_s25  ;;  %s1559_s25 = sld [smem:[#allocation14 + $0x5]]  ;;  %v227_v27 = vstv %s3029_s1 }
  0xc2   :  { %3019 = sst [smem:[#allocation111_spill]] %s1535_s3  ;;  %s1561_s11 = sld [smem:[#allocation8 + $0x24]] }
  0xc3   :  { %3028 = sst [smem:[#allocation116_spill]] %s1553_s29  ;;  %s3036_s13 = sld [smem:[#allocation53_spill]]  ;;  %v228_v28 = vstv %s3030_s30 }
  0xc4   :  { %s3035_s12 = sld [smem:[#allocation52_spill]]  ;;  %s3039_s14 = sld [smem:[#allocation55_spill]]  ;;  %v235_v30 = vstv %s3033_s10 }
  0xc5   :  { %3021 = sst [smem:[#allocation113_spill]] %s1543_s23  ;;  %s3031_s23 = sld [smem:[#allocation50_spill]] }
  0xc6   :  { %3026 = sst [smem:[#allocation115_spill]] %s1551_s7  ;;  %s3037_s7 = sld [smem:[#allocation54_spill]] }
  0xc7   :  { %3032 = sst [smem:[#allocation117_spill]] %s1559_s25  ;;  %s1567_s29 = sld [smem:[#allocation12 + $0x24]] }
  0xc8   :  { %3034 = sst [smem:[#allocation118_spill]] %s1561_s11  ;;  %s1569_s15 = sld [smem:[#allocation8 + $0x25]] }
  0xc9   :  { %s3041_s16 = sld [smem:[#allocation56_spill]]  ;;  %s3042_s17 = sld [smem:[#allocation57_spill]]  ;;  %v242_v32 = vstv %s3036_s13 }
  0xca   :  { %s3043_s25 = sld [smem:[#allocation58_spill]]  ;;  %s1575_s11 = sld [smem:[#allocation12 + $0x25]]  ;;  %v241_v31 = vstv %s3035_s12  ;;  %v249_v34 = vstv %s3039_s14 }
  0xcb   :  { %s3045_s2 = sld [smem:[#allocation59_spill]]  ;;  %s1577_s5 = sld [smem:[#allocation8 + $0x26]]  ;;  %v234_v29 = vstv %s3031_s23 }
  0xcc   :  { %s3047_s0 = sld [smem:[#allocation60_spill]]  ;;  %s3048_s26 = sld [smem:[#allocation61_spill]]  ;;  %v248_v33 = vstv %s3037_s7 }
  0xcd   :  { %3038 = sst [smem:[#allocation119_spill]] %s1567_s29  ;;  %s3049_s29 = sld [smem:[#allocation62_spill]] }
  0xce   :  { %3040 = sst [smem:[#allocation120_spill]] %s1569_s15  ;;  %s1583_s15 = sld [smem:[#allocation12 + $0x26]] }
  0xcf   :  { %s3051_s27 = sld [smem:[#allocation63_spill]]  ;;  %s3053_s28 = sld [smem:[#allocation64_spill]]  ;;  %v255_v35 = vstv %s3041_s16  ;;  %v256_v36 = vstv %s3042_s17 }
  0xd0   :  { %3044 = sst [smem:[#allocation121_spill]] %s1575_s11  ;;  %s1585_s24 = sld [smem:[#allocation8 + $0x27]]  ;;  %v263_v37 = vstv %s3043_s25 }
  0xd1   :  { %3046 = sst [smem:[#allocation122_spill]] %s1577_s5  ;;  %s3054_s1 = sld [smem:[#allocation65_spill]]  ;;  %v264_v38 = vstv %s3045_s2 }
  0xd2   :  { %s3055_s11 = sld [smem:[#allocation66_spill]]  ;;  %s1591_s5 = sld [smem:[#allocation12 + $0x27]]  ;;  %v270_v39 = vstv %s3047_s0  ;;  %v271_v40 = vstv %s3048_s26 }
  0xd3   :  { %s3057_s30 = sld [smem:[#allocation67_spill]]  ;;  %s1593_s23 = sld [smem:[#allocation8 + $0x28]]  ;;  %v276_v41 = vstv %s3049_s29 }
  0xd4   :  { %3050 = sst [smem:[#allocation123_spill]] %s1583_s15  ;;  %s3059_s10 = sld [smem:[#allocation68_spill]] }
  0xd5   :  { %s3060_s12 = sld [smem:[#allocation69_spill]]  ;;  %s3061_s15 = sld [smem:[#allocation70_spill]]  ;;  %v277_v42 = vstv %s3051_s27  ;;  %v282_v43 = vstv %s3053_s28 }
  0xd6   :  { %3052 = sst [smem:[#allocation124_spill]] %s1585_s24  ;;  %s1599_s24 = sld [smem:[#allocation12 + $0x28]] }
  0xd7   :  { %s3063_s13 = sld [smem:[#allocation71_spill]]  ;;  %s1601_s7 = sld [smem:[#allocation8 + $0x29]]  ;;  %v283_v44 = vstv %s3054_s1 }
  0xd8   :  { %3056 = sst [smem:[#allocation125_spill]] %s1591_s5  ;;  %s3065_s14 = sld [smem:[#allocation72_spill]]  ;;  %v289_v45 = vstv %s3055_s11 }
  0xd9   :  { %3058 = sst [smem:[#allocation126_spill]] %s1593_s23  ;;  %s3066_s16 = sld [smem:[#allocation73_spill]]  ;;  %v290_v46 = vstv %s3057_s30 }
  0xda   :  { %s1607_s23 = sld [smem:[#allocation12 + $0x29]]  ;;  %s3069_s17 = sld [smem:[#allocation75_spill]]  ;;  %v296_v47 = vstv %s3059_s10 }
  0xdb   :  { %s1609_s25 = sld [smem:[#allocation11 + $0x5]]  ;;  %s1617_s29 = sld [smem:[#allocation8 + $0x2a]]  ;;  %v297_v48 = vstv %s3060_s12  ;;  %v303_v49 = vstv %s3061_s15 }
  0xdc   :  { %3062 = sst [smem:[#allocation127_spill]] %s1599_s24  ;;  %s1625_s11 = sld [smem:[#allocation9 + $0x6]] }
  0xdd   :  { %3064 = sst [smem:[#allocation128_spill]] %s1601_s7  ;;  %s1615_s7 = sld [smem:[#allocation15 + $0x5]]  ;;  %v304_v50 = vstv %s3063_s13 }
  0xde   :  { %v310_v51 = vstv %s3065_s14  ;;  %s1633_s15 = sld [smem:[#allocation8 + $0x2b]]  ;;  %s1641_s5 = sld [smem:[#allocation8 + $0x2c]] }
  0xdf   :  { %v311_v52 = vstv %s3066_s16  ;;  %s1649_s24 = sld [smem:[#allocation8 + $0x2d]]  ;;  %s1665_s1 = sld [smem:[#allocation8 + $0x2f]] }
  0xe0   :  { %3068 = sst [smem:[#allocation129_spill]] %s1607_s23  ;;  %v318_v54 = vstv %s3069_s17  ;;  %s1657_s23 = sld [smem:[#allocation8 + $0x2e]] }
  0xe1   :  { %3070 = sst [smem:[#allocation130_spill]] %s1609_s25  ;;  %s1671_s13 = sld [smem:[#allocation12 + $0x2f]] }
  0xe2   :  { %3076 = sst [smem:[#allocation132_spill]] %s1617_s29  ;;  %s1623_s25 = sld [smem:[#allocation12 + $0x2a]] }
  0xe3   :  { %3074 = sst [smem:[#allocation131_spill]] %s1615_s7  ;;  %s1631_s29 = sld [smem:[#allocation14 + $0x6]] }
  0xe4   :  { %3081 = sst [smem:[#allocation134_spill]] %s1625_s11  ;;  %s1639_s11 = sld [smem:[#allocation12 + $0x2b]] }
  0xe5   :  { %3087 = sst [smem:[#allocation136_spill]] %s1633_s15  ;;  %s1647_s15 = sld [smem:[#allocation12 + $0x2c]] }
  0xe6   :  { %3092 = sst [smem:[#allocation138_spill]] %s1641_s5  ;;  %s1655_s5 = sld [smem:[#allocation12 + $0x2d]] }
  0xe7   :  { %3097 = sst [smem:[#allocation140_spill]] %s1649_s24  ;;  %s1663_s24 = sld [smem:[#allocation12 + $0x2e]] }
  0xe8   :  { %3080 = sst [smem:[#allocation133_spill]] %s1623_s25  ;;  %s1673_s14 = sld [smem:[#allocation8 + $0x30]] }
  0xe9   :  { %3085 = sst [smem:[#allocation135_spill]] %s1631_s29  ;;  %s1679_s16 = sld [smem:[#allocation12 + $0x30]] }
  0xea   :  { %3090 = sst [smem:[#allocation137_spill]] %s1639_s11  ;;  %s1681_s29 = sld [smem:[#allocation11 + $0x6]] }
  0xeb   :  { %3096 = sst [smem:[#allocation139_spill]] %s1647_s15  ;;  %s1687_s12 = sld [smem:[#allocation15 + $0x6]] }
  0xec   :  { %3101 = sst [smem:[#allocation141_spill]] %s1655_s5  ;;  %s1689_s0 = sld [smem:[#allocation8 + $0x31]] }
  0xed   :  { %3103 = sst [smem:[#allocation142_spill]] %s1657_s23  ;;  %s1697_s20 = sld [smem:[#allocation9 + $0x7]] }
  0xee   :  { %3106 = sst [smem:[#allocation143_spill]] %s1663_s24  ;;  %s1705_s18 = sld [smem:[#allocation8 + $0x32]] }
  0xef   :  { %3108 = sst [smem:[#allocation144_spill]] %s1665_s1  ;;  %s1713_s17 = sld [smem:[#allocation8 + $0x33]] }
  0xf0   :  { %3109 = sst [smem:[#allocation145_spill]] %s1671_s13  ;;  %s1721_s2 = sld [smem:[#allocation8 + $0x34]] }
  0xf1   :  { %3111 = sst [smem:[#allocation146_spill]] %s1673_s14  ;;  %s1727_s26 = sld [smem:[#allocation12 + $0x34]] }
  0xf2   :  { %3113 = sst [smem:[#allocation147_spill]] %s1679_s16  ;;  %s1729_s16 = sld [smem:[#allocation8 + $0x35]]  ;;  %v126_v3 = vpop.xlane.xlu0 %125 }
  0xf3   :  { %3114 = sst [smem:[#allocation148_spill]] %s1681_s29  ;;  %s1695_s29 = sld [smem:[#allocation12 + $0x31]]  ;;  %v1782_v59 = vmul.f32 0.0625, %v126_v3 }
  0xf4   :  { %3118 = sst [smem:[#allocation149_spill]] %s1687_s12  ;;  %s1737_s12 = sld [smem:[#allocation8 + $0x36]] }
  0xf5   :  { %3120 = sst [smem:[#allocation150_spill]] %s1689_s0  ;;  %s1703_s0 = sld [smem:[#allocation14 + $0x7]]  ;;  %3180 = vst [vmem:[#allocation168_spill] sm:$0xff] %v1782_v59  ;;  %vm129_vm1 = vcmp.gt.f32.partialorder %v1782_v59, 0.55 }
  0xf6   :  { %3126 = sst [smem:[#allocation152_spill]] %s1697_s20  ;;  %s1711_s20 = sld [smem:[#allocation12 + $0x32]]  ;;  %v1797_v1 = vsel %vm129_vm1, %v1777_v55, %v1351_v0  ;;  %v1805_v3 = vsel %vm129_vm1, %v135_v2, %v136_v4  ;;  %v1813_v58 = vsel %vm129_vm1, %v141_v5, %v142_v6  ;;  %v1821_v53 = vsel %vm129_vm1, %v149_v7, %v150_v8 }
  0xf7   :  { %3132 = sst [smem:[#allocation154_spill]] %s1705_s18  ;;  %s1719_s18 = sld [smem:[#allocation12 + $0x33]]  ;;  %3204 = vst [vmem:[#allocation169_spill] sm:$0xff] %v1813_v58  ;;  %v1829_v2 = vsel %vm129_vm1, %v158_v9, %v159_v10  ;;  %v1837_v4 = vsel %vm129_vm1, %v167_v11, %v168_v12  ;;  %v1845_v5 = vsel %vm129_vm1, %v176_v13, %v177_v14  ;;  %v1853_v6 = vsel %vm129_vm1, %v185_v15, %v186_v16 }
  0xf8   :  { %3138 = sst [smem:[#allocation156_spill]] %s1713_s17  ;;  %s1743_s19 = sld [smem:[#allocation12 + $0x36]]  ;;  %v1861_v7 = vsel %vm129_vm1, %v194_v17, %v195_v18  ;;  %v1869_v8 = vsel %vm129_vm1, %v202_v19, %v203_v20  ;;  %v1877_v9 = vsel %vm129_vm1, %v208_v21, %v209_v22  ;;  %v1885_v10 = vsel %vm129_vm1, %v214_v23, %v215_v24 }
  0xf9   :  { %3124 = sst [smem:[#allocation151_spill]] %s1695_s29  ;;  %3219 = vst [vmem:[#allocation170_spill] sm:$0xff] %v1869_v8  ;;  %3224 = vst [vmem:[#allocation171_spill] sm:$0xff] %v1885_v10  ;;  %s3226_s22 = sld [smem:[#allocation77_spill]]  ;;  %v1893_v11 = vsel %vm129_vm1, %v220_v25, %v221_v26  ;;  %v1901_v12 = vsel %vm129_vm1, %v227_v27, %v228_v28  ;;  %v1909_v13 = vsel %vm129_vm1, %v234_v29, %v235_v30 }
  0xfa   :  { %3143 = sst [smem:[#allocation158_spill]] %s1721_s2  ;;  %s1735_s2 = sld [smem:[#allocation12 + $0x35]]  ;;  %v1917_v14 = vsel %vm129_vm1, %v241_v31, %v242_v32  ;;  %v1925_v15 = vsel %vm129_vm1, %v248_v33, %v249_v34  ;;  %v1933_v16 = vsel %vm129_vm1, %v255_v35, %v256_v36  ;;  %v1941_v17 = vsel %vm129_vm1, %v263_v37, %v264_v38 }
  0xfb   :  { %3130 = sst [smem:[#allocation153_spill]] %s1703_s0  ;;  %s1745_s29 = sld [smem:[#allocation8 + $0x37]]  ;;  %3239 = vst [vmem:[#allocation172_spill] sm:$0xff] %v1941_v17  ;;  %v1949_v18 = vsel %vm129_vm1, %v270_v39, %v271_v40  ;;  %v1957_v19 = vsel %vm129_vm1, %v276_v41, %v277_v42  ;;  %v1965_v20 = vsel %vm129_vm1, %v282_v43, %v283_v44  ;;  %v1973_v21 = vsel %vm129_vm1, %v289_v45, %v290_v46 }
  0xfc   :  { %3136 = sst [smem:[#allocation155_spill]] %s1711_s20  ;;  %s1751_s0 = sld [smem:[#allocation12 + $0x37]]  ;;  %3244 = vst [vmem:[#allocation173_spill] sm:$0xff] %v1957_v19  ;;  %v1981_v22 = vsel %vm129_vm1, %v296_v47, %v297_v48  ;;  %v1989_v23 = vsel %vm129_vm1, %v303_v49, %v304_v50  ;;  %v1997_v24 = vsel %vm129_vm1, %v310_v51, %v311_v52 }
  0xfd   :  { %3142 = sst [smem:[#allocation157_spill]] %s1719_s18  ;;  %s1753_s6 = sld [smem:[#allocation11 + $0x7]] }
  0xfe   :  { %3146 = sst [smem:[#allocation159_spill]] %s1727_s26  ;;  %s3225_s26 = sld [smem:[#allocation74_spill]] }
  0xff   :  { %3148 = sst [smem:[#allocation160_spill]] %s1729_s16  ;;  %s1759_s28 = sld [smem:[#allocation15 + $0x7]]  ;;  %v3258_v27 = vstv %s3226_s22 }
 0x100   :  { %3151 = sst [smem:[#allocation161_spill]] %s1735_s2  ;;  %s3227_s25 = sld [smem:[#allocation76_spill]] }
 0x101   :  { %3152 = sst [smem:[#allocation162_spill]] %s1737_s12  ;;  %s3228_s16 = sld [smem:[#allocation79_spill]] }
 0x102   :  { %3154 = sst [smem:[#allocation163_spill]] %s1743_s19  ;;  %s3229_s2 = sld [smem:[#allocation78_spill]] }
 0x103   :  { %3155 = sst [smem:[#allocation164_spill]] %s1745_s29  ;;  %s3230_s12 = sld [smem:[#allocation81_spill]] }
 0x104   :  { %3159 = sst [smem:[#allocation165_spill]] %s1751_s0  ;;  %s3231_s4 = sld [smem:[#allocation80_spill]]  ;;  %v3255_v25 = vstv %s3225_s26 }
 0x105   :  { %3161 = sst [smem:[#allocation166_spill]] %s1753_s6  ;;  %s3232_s10 = sld [smem:[#allocation83_spill]]  ;;  %v2005_v26 = vsel %vm129_vm1, %v3255_v25, %v318_v54 }
 0x106   :  { %3166 = sst [smem:[#allocation167_spill]] %s1759_s28  ;;  %s3233_s0 = sld [smem:[#allocation82_spill]]  ;;  %v3259_v28 = vstv %s3227_s25 }
 0x107   :  { %s3234_s6 = sld [smem:[#allocation85_spill]]  ;;  %s3235_s28 = sld [smem:[#allocation84_spill]]  ;;  %v2013_v29 = vsel %vm129_vm1, %v3259_v28, %v3258_v27  ;;  %v3263_v30 = vstv %s3228_s16 }
 0x108   :  { %s3236_s14 = sld [smem:[#allocation87_spill]]  ;;  %s3237_s3 = sld [smem:[#allocation86_spill]]  ;;  %3262 = vst [vmem:[#allocation174_spill] sm:$0xff] %v2013_v29  ;;  %v3264_v31 = vstv %s3229_s2 }
 0x109   :  { %s3238_s21 = sld [smem:[#allocation89_spill]]  ;;  %s3240_s9 = sld [smem:[#allocation88_spill]]  ;;  %v2021_v32 = vsel %vm129_vm1, %v3264_v31, %v3263_v30  ;;  %v3267_v33 = vstv %s3230_s12 }
 0x10a   :  { %s3241_s7 = sld [smem:[#allocation91_spill]]  ;;  %s3242_s1 = sld [smem:[#allocation90_spill]]  ;;  %v3268_v34 = vstv %s3231_s4 }
 0x10b   :  { %s3243_s27 = sld [smem:[#allocation93_spill]]  ;;  %s3245_s8 = sld [smem:[#allocation92_spill]]  ;;  %v2029_v35 = vsel %vm129_vm1, %v3268_v34, %v3267_v33  ;;  %v3272_v36 = vstv %s3232_s10 }
 0x10c   :  { %s3246_s19 = sld [smem:[#allocation95_spill]]  ;;  %s3247_s13 = sld [smem:[#allocation94_spill]]  ;;  %3271 = vst [vmem:[#allocation175_spill] sm:$0xff] %v2029_v35  ;;  %v3273_v37 = vstv %s3233_s0 }
 0x10d   :  { %s3248_s29 = sld [smem:[#allocation97_spill]]  ;;  %s3249_s17 = sld [smem:[#allocation96_spill]]  ;;  %v2037_v38 = vsel %vm129_vm1, %v3273_v37, %v3272_v36  ;;  %v3276_v39 = vstv %s3234_s6  ;;  %v3277_v40 = vstv %s3235_s28 }
 0x10e   :  { %s3250_s20 = sld [smem:[#allocation99_spill]]  ;;  %s3251_s23 = sld [smem:[#allocation98_spill]]  ;;  %v2045_v41 = vsel %vm129_vm1, %v3277_v40, %v3276_v39  ;;  %v3280_v42 = vstv %s3236_s14  ;;  %v3281_v43 = vstv %s3237_s3 }
 0x10f   :  { %s3252_s24 = sld [smem:[#allocation101_spill]]  ;;  %s3253_s5 = sld [smem:[#allocation100_spill]]  ;;  %v2053_v44 = vsel %vm129_vm1, %v3281_v43, %v3280_v42  ;;  %v3284_v45 = vstv %s3238_s21  ;;  %v3285_v46 = vstv %s3240_s9 }
 0x110   :  { %s3254_s18 = sld [smem:[#allocation103_spill]]  ;;  %s3256_s15 = sld [smem:[#allocation102_spill]]  ;;  %v2061_v47 = vsel %vm129_vm1, %v3285_v46, %v3284_v45  ;;  %v3288_v48 = vstv %s3241_s7  ;;  %v3289_v49 = vstv %s3242_s1 }
 0x111   :  { %s3257_s30 = sld [smem:[#allocation105_spill]]  ;;  %s3260_s11 = sld [smem:[#allocation104_spill]]  ;;  %v2069_v50 = vsel %vm129_vm1, %v3289_v49, %v3288_v48  ;;  %v3292_v51 = vstv %s3243_s27  ;;  %v3293_v52 = vstv %s3245_s8 }
 0x112   :  { %s3261_s26 = sld [smem:[#allocation107_spill]]  ;;  %s3265_s22 = sld [smem:[#allocation106_spill]]  ;;  %v2077_v54 = vsel %vm129_vm1, %v3293_v52, %v3292_v51  ;;  %v3296_v25 = vstv %s3246_s19  ;;  %v3297_v27 = vstv %s3247_s13 }
 0x113   :  { %s3266_s25 = sld [smem:[#allocation109_spill]]  ;;  %s3269_s16 = sld [smem:[#allocation108_spill]]  ;;  %v2085_v28 = vsel %vm129_vm1, %v3297_v27, %v3296_v25  ;;  %v3301_v30 = vstv %s3248_s29  ;;  %v3302_v31 = vstv %s3249_s17 }
 0x114   :  { %s3270_s2 = sld [smem:[#allocation111_spill]]  ;;  %s3274_s12 = sld [smem:[#allocation110_spill]]  ;;  %3300 = vst [vmem:[#allocation176_spill] sm:$0xff] %v2085_v28  ;;  %v2093_v33 = vsel %vm129_vm1, %v3302_v31, %v3301_v30  ;;  %v3305_v34 = vstv %s3250_s20  ;;  %v3306_v36 = vstv %s3251_s23 }
 0x115   :  { %s3275_s4 = sld [smem:[#allocation113_spill]]  ;;  %s3278_s10 = sld [smem:[#allocation112_spill]]  ;;  %v2101_v37 = vsel %vm129_vm1, %v3306_v36, %v3305_v34  ;;  %v3310_v39 = vstv %s3252_s24  ;;  %v3311_v40 = vstv %s3253_s5 }
 0x116   :  { %s3279_s0 = sld [smem:[#allocation115_spill]]  ;;  %s3282_s6 = sld [smem:[#allocation114_spill]]  ;;  %3309 = vst [vmem:[#allocation177_spill] sm:$0xff] %v2101_v37  ;;  %v2109_v42 = vsel %vm129_vm1, %v3311_v40, %v3310_v39  ;;  %v3314_v43 = vstv %s3254_s18  ;;  %v3315_v45 = vstv %s3256_s15 }
 0x117   :  { %s3283_s28 = sld [smem:[#allocation117_spill]]  ;;  %s3286_s14 = sld [smem:[#allocation116_spill]]  ;;  %v2117_v46 = vsel %vm129_vm1, %v3315_v45, %v3314_v43  ;;  %v3318_v48 = vstv %s3257_s30  ;;  %v3319_v49 = vstv %s3260_s11 }
 0x118   :  { %s3287_s3 = sld [smem:[#allocation119_spill]]  ;;  %s3290_s21 = sld [smem:[#allocation118_spill]]  ;;  %v2125_v51 = vsel %vm129_vm1, %v3319_v49, %v3318_v48  ;;  %v3322_v52 = vstv %s3261_s26  ;;  %v3323_v25 = vstv %s3265_s22 }
 0x119   :  { %s3291_s9 = sld [smem:[#allocation121_spill]]  ;;  %s3294_s7 = sld [smem:[#allocation120_spill]]  ;;  %v2133_v27 = vsel %vm129_vm1, %v3323_v25, %v3322_v52  ;;  %v3326_v30 = vstv %s3266_s25  ;;  %v3327_v31 = vstv %s3269_s16 }
 0x11a   :  { %s3295_s1 = sld [smem:[#allocation123_spill]]  ;;  %s3298_s27 = sld [smem:[#allocation122_spill]]  ;;  %v2141_v34 = vsel %vm129_vm1, %v3327_v31, %v3326_v30  ;;  %v3330_v36 = vstv %s3270_s2  ;;  %v3331_v39 = vstv %s3274_s12 }
 0x11b   :  { %s3299_s8 = sld [smem:[#allocation125_spill]]  ;;  %s3303_s19 = sld [smem:[#allocation124_spill]]  ;;  %v2149_v40 = vsel %vm129_vm1, %v3331_v39, %v3330_v36  ;;  %v3334_v43 = vstv %s3275_s4  ;;  %v3335_v45 = vstv %s3278_s10 }
 0x11c   :  { %s3304_s13 = sld [smem:[#allocation127_spill]]  ;;  %s3307_s29 = sld [smem:[#allocation126_spill]]  ;;  %v2157_v48 = vsel %vm129_vm1, %v3335_v45, %v3334_v43  ;;  %v3339_v49 = vstv %s3279_s0  ;;  %v3340_v52 = vstv %s3282_s6 }
 0x11d   :  { %s3308_s17 = sld [smem:[#allocation129_spill]]  ;;  %s3312_s20 = sld [smem:[#allocation128_spill]]  ;;  %3338 = vst [vmem:[#allocation178_spill] sm:$0xff] %v2157_v48  ;;  %v2165_v25 = vsel %vm129_vm1, %v3340_v52, %v3339_v49  ;;  %v3343_v30 = vstv %s3283_s28  ;;  %v3344_v31 = vstv %s3286_s14 }
 0x11e   :  { %s3313_s23 = sld [smem:[#allocation131_spill]]  ;;  %s3316_s24 = sld [smem:[#allocation130_spill]]  ;;  %v2173_v36 = vsel %vm129_vm1, %v3344_v31, %v3343_v30  ;;  %v3348_v39 = vstv %s3287_s3  ;;  %v3349_v57 = vstv %s3290_s21 }
 0x11f   :  { %s3317_s5 = sld [smem:[#allocation133_spill]]  ;;  %s3320_s18 = sld [smem:[#allocation132_spill]]  ;;  %3347 = vst [vmem:[#allocation179_spill] sm:$0xff] %v2173_v36  ;;  %v2181_v43 = vsel %vm129_vm1, %v3349_v57, %v3348_v39  ;;  %v3351_v45 = vstv %s3291_s9  ;;  %v3352_v61 = vstv %s3294_s7 }
 0x120   :  { %s3321_s15 = sld [smem:[#allocation135_spill]]  ;;  %s3324_s30 = sld [smem:[#allocation134_spill]]  ;;  %v2189_v49 = vsel %vm129_vm1, %v3352_v61, %v3351_v45  ;;  %v3353_v52 = vstv %s3295_s1  ;;  %v3354_v60 = vstv %s3298_s27 }
 0x121   :  { %s3325_s11 = sld [smem:[#allocation137_spill]]  ;;  %s3328_s26 = sld [smem:[#allocation136_spill]]  ;;  %v2197_v56 = vsel %vm129_vm1, %v3354_v60, %v3353_v52  ;;  %v3355_v30 = vstv %s3299_s8  ;;  %v3356_v31 = vstv %s3303_s19 }
 0x122   :  { %s3329_s22 = sld [smem:[#allocation139_spill]]  ;;  %s3332_s25 = sld [smem:[#allocation138_spill]]  ;;  %v2205_v57 = vsel %vm129_vm1, %v3356_v31, %v3355_v30  ;;  %v3360_v39 = vstv %s3304_s13  ;;  %v3361_v62 = vstv %s3307_s29 }
 0x123   :  { %s3333_s16 = sld [smem:[#allocation141_spill]]  ;;  %s3336_s2 = sld [smem:[#allocation140_spill]]  ;;  %3359 = vst [vmem:[#allocation180_spill] sm:$0xff] %v2205_v57  ;;  %v2213_v61 = vsel %vm129_vm1, %v3361_v62, %v3360_v39  ;;  %v3365_v45 = vstv %s3308_s17  ;;  %v3366_v63 = vstv %s3312_s20 }
 0x124   :  { %s3337_s12 = sld [smem:[#allocation143_spill]]  ;;  %s3341_s4 = sld [smem:[#allocation142_spill]]  ;;  %3364 = vst [vmem:[#allocation181_spill] sm:$0xff] %v2213_v61  ;;  %v2221_v60 = vsel %vm129_vm1, %v3366_v63, %v3365_v45  ;;  %v3370_v52 = vstv %s3313_s23  ;;  %v3371_v48 = vstv %s3316_s24 }
 0x125   :  { %s3342_s10 = sld [smem:[#allocation145_spill]]  ;;  %s3345_s0 = sld [smem:[#allocation144_spill]]  ;;  %3369 = vst [vmem:[#allocation182_spill] sm:$0xff] %v2221_v60  ;;  %v2229_v30 = vsel %vm129_vm1, %v3371_v48, %v3370_v52  ;;  %v3375_v31 = vstv %s3317_s5  ;;  %v3376_v28 = vstv %s3320_s18 }
 0x126   :  { %s3346_s6 = sld [smem:[#allocation147_spill]]  ;;  %s3350_s28 = sld [smem:[#allocation146_spill]]  ;;  %3374 = vst [vmem:[#allocation183_spill] sm:$0xff] %v2229_v30  ;;  %v2237_v62 = vsel %vm129_vm1, %v3376_v28, %v3375_v31  ;;  %v3378_v39 = vstv %s3321_s15  ;;  %v3379_v29 = vstv %s3324_s30 }
 0x127   :  { %s3357_s14 = sld [smem:[#allocation149_spill]]  ;;  %s3358_s3 = sld [smem:[#allocation148_spill]]  ;;  %3377 = vst [vmem:[#allocation184_spill] sm:$0xff] %v2237_v62  ;;  %v2245_v63 = vsel %vm129_vm1, %v3379_v29, %v3378_v39  ;;  %v3381_v45 = vstv %s3325_s11  ;;  %v3382_v17 = vstv %s3328_s26 }
 0x128   :  { %s3362_s21 = sld [smem:[#allocation151_spill]]  ;;  %s3363_s9 = sld [smem:[#allocation150_spill]]  ;;  %3380 = vst [vmem:[#allocation185_spill] sm:$0xff] %v2245_v63  ;;  %v2253_v8 = vsel %vm129_vm1, %v3382_v17, %v3381_v45  ;;  %v3384_v48 = vstv %s3329_s22  ;;  %v3385_v52 = vstv %s3332_s25 }
 0x129   :  { %s3367_s7 = sld [smem:[#allocation153_spill]]  ;;  %s3368_s1 = sld [smem:[#allocation152_spill]]  ;;  %3383 = vst [vmem:[#allocation186_spill] sm:$0xff] %v2253_v8  ;;  %v2261_v28 = vsel %vm129_vm1, %v3385_v52, %v3384_v48  ;;  %v3389_v31 = vstv %s3333_s16  ;;  %v3390_v30 = vstv %s3336_s2 }
 0x12a   :  { %s3372_s27 = sld [smem:[#allocation155_spill]]  ;;  %s3373_s8 = sld [smem:[#allocation154_spill]]  ;;  %3388 = vst [vmem:[#allocation187_spill] sm:$0xff] %v2261_v28  ;;  %v2269_v29 = vsel %vm129_vm1, %v3390_v30, %v3389_v31  ;;  %v3394_v39 = vstv %s3337_s12  ;;  %v3395_v63 = vstv %s3341_s4  ;;  %v2297_v31 = vld [vmem:[#allocation4 + $0x18] sm:$0xff] }
 0x12b   :  { %s3386_s19 = sld [smem:[#allocation157_spill]]  ;;  %s3387_s13 = sld [smem:[#allocation156_spill]]  ;;  %3393 = vst [vmem:[#allocation188_spill] sm:$0xff] %v2269_v29  ;;  %v2277_v17 = vsel %vm129_vm1, %v3395_v63, %v3394_v39  ;;  %v3399_v45 = vstv %s3342_s10  ;;  %v3400_v36 = vstv %s3345_s0  ;;  %v2295_v63 = vld [vmem:[#allocation4 + $0x10] sm:$0xff]  ;;  %v2299_v39 = vld [vmem:[#allocation4 + $0x20] sm:$0xff] }
 0x12c   :  { %s3391_s29 = sld [smem:[#allocation159_spill]]  ;;  %s3392_s17 = sld [smem:[#allocation158_spill]]  ;;  %3398 = vst [vmem:[#allocation189_spill] sm:$0xff] %v2277_v17  ;;  %v2285_v48 = vsel %vm129_vm1, %v3400_v36, %v3399_v45  ;;  %v3404_v52 = vstv %s3346_s6  ;;  %v3405_v37 = vstv %s3350_s28 }
 0x12d   :  { %s3396_s20 = sld [smem:[#allocation161_spill]]  ;;  %s3397_s23 = sld [smem:[#allocation160_spill]]  ;;  %3403 = vst [vmem:[#allocation190_spill] sm:$0xff] %v2285_v48  ;;  %v2293_v30 = vsel %vm129_vm1, %v3405_v37, %v3404_v52  ;;  %v3411_v35 = vstv %s3357_s14  ;;  %v3412_v19 = vstv %s3358_s3 }
 0x12e   :  { %s3401_s24 = sld [smem:[#allocation163_spill]]  ;;  %s3402_s5 = sld [smem:[#allocation162_spill]]  ;;  %3408 = vst [vmem:[#allocation191_spill] sm:$0xff] %v2293_v30  ;;  %v2307_v36 = vsel %vm129_vm1, %v3412_v19, %v3411_v35  ;;  %v3414_v45 = vstv %s3362_s21  ;;  %v3415_v10 = vstv %s3363_s9  ;;  %v2333_v19 = vld [vmem:[#allocation4 + $0x28] sm:$0xff]  ;;  %v2335_v35 = vld [vmem:[#allocation4 + $0x30] sm:$0xff] }
 0x12f   :  { %s3406_s18 = sld [smem:[#allocation165_spill]]  ;;  %s3407_s15 = sld [smem:[#allocation164_spill]]  ;;  %3413 = vst [vmem:[#allocation192_spill] sm:$0xff] %v2307_v36  ;;  %v2315_v37 = vsel %vm129_vm1, %v3415_v10, %v3414_v45  ;;  %v3417_v52 = vstv %s3367_s7  ;;  %v3418_v58 = vstv %s3368_s1  ;;  %v2337_v36 = vld [vmem:[#allocation4 + $0x38] sm:$0xff] }
 0x130   :  { %s3409_s30 = sld [smem:[#allocation167_spill]]  ;;  %s3410_s11 = sld [smem:[#allocation166_spill]]  ;;  %3416 = vst [vmem:[#allocation193_spill] sm:$0xff] %v2315_v37  ;;  %v2323_v30 = vsel %vm129_vm1, %v3418_v58, %v3417_v52  ;;  %v3420_v48 = vstv %s3372_s27  ;;  %v3421_v17 = vstv %s3373_s8 }
 0x131   :  { %3419 = vst [vmem:[#allocation194_spill] sm:$0xff] %v2323_v30  ;;  %v2331_v29 = vsel %vm129_vm1, %v3421_v17, %v3420_v48  ;;  %v3423_v10 = vstv %s3386_s19  ;;  %v3424_v45 = vstv %s3387_s13  ;;  %s3492_s25 = sld [smem:[#allocation210_spill]]  ;;  %s3493_s12 = sld [smem:[#allocation211_spill]] }
 0x132   :  { %3422 = vst [vmem:[#allocation195_spill] sm:$0xff] %v2331_v29  ;;  %v601_v37 = vsel %vm129_vm1, %v3424_v45, %v3423_v10  ;;  %v3425_v28 = vstv %s3391_s29  ;;  %v3426_v58 = vstv %s3392_s17  ;;  %s1270_s4 = smov [#allocation17]  }
 0x133   :  { %v608_v52 = vsel %vm129_vm1, %v3426_v58, %v3425_v28  ;;  %v3427_v30 = vstv %s3396_s20  ;;  %v3428_v8 = vstv %s3397_s23  ;;  %v3436_v58 = vsub.f32 0.0, %v1351_v0  ;;  %s969_s10 = sshll.u32 %s1270_s4, 4  ;;  %s970_s10 = int_to_ptr.vmem [resolvable:$true] %s969_s10 }
 0x134   :  { %v615_v17 = vsel %vm129_vm1, %v3428_v8, %v3427_v30  ;;  %v3429_v48 = vstv %s3401_s24  ;;  %v3430_v29 = vstv %s3402_s5  ;;  %v2398_v0 = vmul.f32 %v1837_v4, %v2299_v39  ;;  %s1226_s0 = scalar_lea.vmem %s970_s10, 128  ;;  %p1231_p11 = scmp.lt.s32.totalorder %s970_s10, %s970_s10 }
 0x135   :  { %v622_v62 = vsel %vm129_vm1, %v3430_v29, %v3429_v48  ;;  %v3431_v60 = vstv %s3406_s18  ;;  %v3432_v61 = vstv %s3407_s15  ;;  %v2382_v8 = vsel %vm129_vm1, %v1777_v55, %v3436_v58  ;;  %p1227_p10 = scmp.ne.s32.totalorder %s970_s10, %s1226_s0  ;;  %p1232_p12 = scmp.lt.s32.totalorder %s1226_s0, %s1226_s0 }
 0x136   :  { %v629_v10 = vsel %vm129_vm1, %v3432_v61, %v3431_v60  ;;  %v3433_v45 = vstv %s3409_s30  ;;  %v3434_v57 = vstv %s3410_s11  ;;  %3437 = vst [vmem:[#allocation197_spill] sm:$0xff] %v2382_v8  ;;  %v138_v29 = vmul.f32 %v1805_v3, %v1797_v1 }
 0x137   :  { %v2375_v28 = vsel %vm129_vm1, %v3434_v57, %v3433_v45  ;;  %v653_v30 = vsel %vm123_vm0, %v2382_v8, -inf  ;;  %v2390_v61 = vmul.f32 %v1821_v53, %v2295_v63  ;;  %v2394_v57 = vmul.f32 %v1829_v2, %v2297_v31  ;;  %v3451_v45 = vld [vmem:[#allocation181_spill] sm:$0xff]  ;;  %p1233_p13 = por %p1232_p12, %p1231_p11 }
 0x138   :  { %3435 = vst [vmem:[#allocation196_spill] sm:$0xff] %v2375_v28  ;;  %654 = vmax.xlane.f32.xlu0 %v653_v30  ;;  %v2402_v55 = vmul.f32 %v1845_v5, %v2333_v19  ;;  %v2406_v3 = vmul.f32 %v1853_v6, %v2335_v35  ;;  %v2410_v53 = vmul.f32 %v1861_v7, %v2337_v36 }
 0x139   :  { %v211_v2 = vmul.f32 %v1877_v9, %v1797_v1  ;;  %v223_v4 = vmul.f32 %v1893_v11, %v2295_v63  ;;  %v2418_v60 = vmul.f32 %v1901_v12, %v2297_v31  ;;  %v2422_v5 = vmul.f32 %v1909_v13, %v2299_v39  ;;  %p1234_p0 = pnand %p1233_p13, %p1227_p10 }
 0x13a   :  { %3438 = vst [vmem:[#allocation198_spill] sm:$0xff] %v2406_v3  ;;  %3439 = vst [vmem:[#allocation199_spill] sm:$0xff] %v2410_v53  ;;  %v2426_v6 = vmul.f32 %v1917_v14, %v2333_v19  ;;  %v2430_v7 = vmul.f32 %v1925_v15, %v2335_v35  ;;  %v2434_v9 = vmul.f32 %v1933_v16, %v2337_v36  ;;  %v3465_v3 = vld [vmem:[#allocation173_spill] sm:$0xff] }
 0x13b   :  { %v273_v11 = vmul.f32 %v1949_v18, %v1797_v1  ;;  %v285_v12 = vmul.f32 %v1965_v20, %v2295_v63  ;;  %v292_v13 = vmul.f32 %v1973_v21, %v2297_v31  ;;  %v2444_v14 = vmul.f32 %v1981_v22, %v2299_v39 }
 0x13c   :  { %3440 = vst [vmem:[#allocation200_spill] sm:$0xff] %v2430_v7  ;;  %3441 = vst [vmem:[#allocation201_spill] sm:$0xff] %v2434_v9  ;;  %v2448_v15 = vmul.f32 %v1989_v23, %v2333_v19  ;;  %v2452_v16 = vmul.f32 %v1997_v24, %v2335_v35  ;;  %v2456_v18 = vmul.f32 %v2005_v26, %v2337_v36  ;;  %v3464_v7 = vld [vmem:[#allocation171_spill] sm:$0xff] }
 0x13d   :  { %v335_v20 = vmul.f32 %v2021_v32, %v1797_v1  ;;  %v347_v21 = vmul.f32 %v2037_v38, %v2295_v63  ;;  %v354_v22 = vmul.f32 %v2045_v41, %v2297_v31  ;;  %v361_v23 = vmul.f32 %v2053_v44, %v2299_v39 }
 0x13e   :  { %3442 = vst [vmem:[#allocation202_spill] sm:$0xff] %v2448_v15  ;;  %3443 = vst [vmem:[#allocation203_spill] sm:$0xff] %v2452_v16  ;;  %v2468_v24 = vmul.f32 %v2061_v47, %v2333_v19  ;;  %v2472_v26 = vmul.f32 %v2069_v50, %v2335_v35  ;;  %v2476_v32 = vmul.f32 %v2077_v54, %v2337_v36  ;;  %v3467_v15 = vld [vmem:[#allocation177_spill] sm:$0xff] }
 0x13f   :  { %3444 = vst [vmem:[#allocation204_spill] sm:$0xff] %v2456_v18  ;;  %v397_v38 = vmul.f32 %v2093_v33, %v1797_v1  ;;  %v409_v41 = vmul.f32 %v2109_v42, %v2295_v63  ;;  %v416_v44 = vmul.f32 %v2117_v46, %v2297_v31  ;;  %v423_v47 = vmul.f32 %v2125_v51, %v2299_v39 }
 0x140   :  { %3445 = vst [vmem:[#allocation205_spill] sm:$0xff] %v2468_v24  ;;  %3446 = vst [vmem:[#allocation206_spill] sm:$0xff] %v2472_v26  ;;  %v430_v50 = vmul.f32 %v2133_v27, %v2333_v19  ;;  %v2490_v48 = vmul.f32 %v2141_v34, %v2335_v35  ;;  %v2494_v54 = vmul.f32 %v2149_v40, %v2337_v36  ;;  %v3450_v27 = vld [vmem:[#allocation180_spill] sm:$0xff]  ;;  %v3452_v40 = vld [vmem:[#allocation182_spill] sm:$0xff] }
 0x141   :  { %3447 = vst [vmem:[#allocation207_spill] sm:$0xff] %v2476_v32  ;;  %v459_v33 = vmul.f32 %v2165_v25, %v1797_v1  ;;  %v471_v42 = vmul.f32 %v2181_v43, %v2295_v63  ;;  %v478_v46 = vmul.f32 %v2189_v49, %v2297_v31  ;;  %v485_v51 = vmul.f32 %v2197_v56, %v2299_v39  ;;  %v3454_v25 = vld [vmem:[#allocation184_spill] sm:$0xff]  ;;  %v3455_v43 = vld [vmem:[#allocation186_spill] sm:$0xff]  ;;  %v3456_v49 = vld [vmem:[#allocation187_spill] sm:$0xff] }
 0x142   :  { %3448 = vst [vmem:[#allocation208_spill] sm:$0xff] %v2490_v48  ;;  %3449 = vst [vmem:[#allocation209_spill] sm:$0xff] %v2494_v54  ;;  %v492_v34 = vmul.f32 %v3450_v27, %v2333_v19  ;;  %v499_v58 = vmul.f32 %v3451_v45, %v2335_v35  ;;  %v2510_v30 = vmul.f32 %v3452_v40, %v2337_v36  ;;  %v3457_v56 = vld [vmem:[#allocation188_spill] sm:$0xff]  ;;  %v3458_v27 = vld [vmem:[#allocation189_spill] sm:$0xff] }
 0x143   :  { %v521_v8 = vmul.f32 %v3454_v25, %v1797_v1  ;;  %v533_v59 = vmul.f32 %v3455_v43, %v2295_v63  ;;  %v540_v28 = vmul.f32 %v3456_v49, %v2297_v31  ;;  %v547_v54 = vmul.f32 %v3457_v56, %v2299_v39  ;;  %v3459_v45 = vld [vmem:[#allocation190_spill] sm:$0xff]  ;;  %v3460_v40 = vld [vmem:[#allocation191_spill] sm:$0xff]  ;;  %v3461_v25 = vld [vmem:[#allocation193_spill] sm:$0xff] }
 0x144   :  { %3453 = vst [vmem:[#allocation180_spill] sm:$0xff] %v2510_v30  ;;  %v554_v32 = vmul.f32 %v3458_v27, %v2333_v19  ;;  %v561_v18 = vmul.f32 %v3459_v45, %v2335_v35  ;;  %v568_v30 = vmul.f32 %v3460_v40, %v2337_v36  ;;  %v583_v9 = vmul.f32 %v3461_v25, %v1797_v1  ;;  %v3462_v43 = vld [vmem:[#allocation195_spill] sm:$0xff]  ;;  %v3463_v45 = vld [vmem:[#allocation169_spill] sm:$0xff] }
 0x145   :  { %v595_v53 = vmul.f32 %v3462_v43, %v2295_v63  ;;  %v602_v49 = vmul.f32 %v601_v37, %v2297_v31  ;;  %v609_v48 = vmul.f32 %v608_v52, %v2299_v39  ;;  %v616_v56 = vmul.f32 %v615_v17, %v2333_v19  ;;  %v3466_v1 = vld [vmem:[#allocation175_spill] sm:$0xff]  ;;  %v3469_v37 = vld [vmem:[#allocation185_spill] sm:$0xff]  ;;  %v3470_v52 = vld [vmem:[#allocation194_spill] sm:$0xff] }
 0x146   :  { %v623_v27 = vmul.f32 %v622_v62, %v2335_v35  ;;  %v630_v26 = vmul.f32 %v629_v10, %v2337_v36  ;;  %v144_v16 = vadd.f32 %v3463_v45, %v138_v29  ;;  %v217_v40 = vadd.f32 %v3464_v7, %v211_v2  ;;  %v3468_v43 = vld [vmem:[#allocation179_spill] sm:$0xff] }
 0x147   :  { %v279_v24 = vadd.f32 %v3465_v3, %v273_v11  ;;  %v341_v25 = vadd.f32 %v3466_v1, %v335_v20  ;;  %v403_v63 = vadd.f32 %v3467_v15, %v397_v38  ;;  %v465_v31 = vadd.f32 %v3468_v43, %v459_v33  ;;  %v3479_v43 = vld [vmem:[#allocation201_spill] sm:$0xff] }
 0x148   :  { %v527_v39 = vadd.f32 %v3469_v37, %v521_v8  ;;  %v589_v19 = vadd.f32 %v3470_v52, %v583_v9  ;;  %v153_v62 = vadd.f32 %v2390_v61, %v144_v16  ;;  %v224_v35 = vadd.f32 %v223_v4, %v217_v40 }
 0x149   :  { %v286_v36 = vadd.f32 %v285_v12, %v279_v24  ;;  %v348_v17 = vadd.f32 %v347_v21, %v341_v25  ;;  %v410_v10 = vadd.f32 %v409_v41, %v403_v63  ;;  %v472_v29 = vadd.f32 %v471_v42, %v465_v31  ;;  %v3472_v24 = vld [vmem:[#allocation205_spill] sm:$0xff]  ;;  %v3478_v25 = vld [vmem:[#allocation199_spill] sm:$0xff] }
 0x14a   :  { %v534_v2 = vadd.f32 %v533_v59, %v527_v39  ;;  %v596_v7 = vadd.f32 %v595_v53, %v589_v19  ;;  %v162_v3 = vadd.f32 %v2394_v57, %v153_v62  ;;  %v231_v11 = vadd.f32 %v2418_v60, %v224_v35  ;;  %v3482_v37 = vld [vmem:[#allocation209_spill] sm:$0xff] }
 0x14b   :  { %v293_v15 = vadd.f32 %v292_v13, %v286_v36  ;;  %v355_v20 = vadd.f32 %v354_v22, %v348_v17  ;;  %v417_v38 = vadd.f32 %v416_v44, %v410_v10  ;;  %v479_v33 = vadd.f32 %v478_v46, %v472_v29  ;;  %v3471_v13 = vld [vmem:[#allocation202_spill] sm:$0xff]  ;;  %v3483_v52 = vld [vmem:[#allocation180_spill] sm:$0xff] }
 0x14c   :  { %v541_v8 = vadd.f32 %v540_v28, %v534_v2  ;;  %v603_v45 = vadd.f32 %v602_v49, %v596_v7  ;;  %v171_v9 = vadd.f32 %v2398_v0, %v162_v3  ;;  %v238_v61 = vadd.f32 %v2422_v5, %v231_v11  ;;  %v3473_v5 = vld [vmem:[#allocation198_spill] sm:$0xff]  ;;  %v3477_v49 = vld [vmem:[#allocation208_spill] sm:$0xff] }
 0x14d   :  { %v300_v4 = vadd.f32 %v2444_v14, %v293_v15  ;;  %v362_v12 = vadd.f32 %v361_v23, %v355_v20  ;;  %v424_v16 = vadd.f32 %v423_v47, %v417_v38  ;;  %v486_v59 = vadd.f32 %v485_v51, %v479_v33  ;;  %v3474_v14 = vld [vmem:[#allocation200_spill] sm:$0xff]  ;;  %v3475_v47 = vld [vmem:[#allocation203_spill] sm:$0xff]  ;;  %v3484_v7 = vld [vmem:[#allocation170_spill] sm:$0xff] }
 0x14e   :  { %v548_v53 = vadd.f32 %v547_v54, %v541_v8  ;;  %v610_v21 = vadd.f32 %v609_v48, %v603_v45  ;;  %v180_v57 = vadd.f32 %v2402_v55, %v171_v9  ;;  %v245_v60 = vadd.f32 %v2426_v6, %v238_v61  ;;  %v3476_v54 = vld [vmem:[#allocation206_spill] sm:$0xff]  ;;  %v3485_v11 = vld [vmem:[#allocation172_spill] sm:$0xff] }
 0x14f   :  { %v307_v22 = vadd.f32 %v3471_v13, %v300_v4  ;;  %v369_v28 = vadd.f32 %v3472_v24, %v362_v12  ;;  %v431_v41 = vadd.f32 %v430_v50, %v424_v16  ;;  %v493_v44 = vadd.f32 %v492_v34, %v486_v59  ;;  %v3480_v34 = vld [vmem:[#allocation204_spill] sm:$0xff]  ;;  %v3486_v20 = vld [vmem:[#allocation174_spill] sm:$0xff] }
 0x150   :  { %v555_v0 = vadd.f32 %v554_v32, %v548_v53  ;;  %v617_v42 = vadd.f32 %v616_v56, %v610_v21  ;;  %v189_v46 = vadd.f32 %v3473_v5, %v180_v57  ;;  %v252_v23 = vadd.f32 %v3474_v14, %v245_v60  ;;  %v3481_v56 = vld [vmem:[#allocation207_spill] sm:$0xff]  ;;  %v3487_v33 = vld [vmem:[#allocation176_spill] sm:$0xff]  ;;  %v3488_v45 = vld [vmem:[#allocation178_spill] sm:$0xff] }
 0x151   :  { %v314_v51 = vadd.f32 %v3475_v47, %v307_v22  ;;  %v376_v48 = vadd.f32 %v3476_v54, %v369_v28  ;;  %v438_v55 = vadd.f32 %v3477_v49, %v431_v41  ;;  %v500_v40 = vadd.f32 %v499_v58, %v493_v44  ;;  %v3490_v61 = vld [vmem:[#allocation192_spill] sm:$0xff]  ;;  %v3495_v14 = vld [vmem:[#allocation197_spill] sm:$0xff] }
 0x152   :  { %v562_v6 = vadd.f32 %v561_v18, %v555_v0  ;;  %v624_v1 = vadd.f32 %v623_v27, %v617_v42  ;;  %v198_v63 = vadd.f32 %v3478_v25, %v189_v46  ;;  %v259_v50 = vadd.f32 %v3479_v43, %v252_v23  ;;  %v3491_v12 = vld [vmem:[#allocation196_spill] sm:$0xff] }
 0x153   :  { %v321_v32 = vadd.f32 %v3480_v34, %v314_v51  ;;  %v383_v31 = vadd.f32 %v3481_v56, %v376_v48  ;;  %v445_v39 = vadd.f32 %v3482_v37, %v438_v55  ;;  %v507_v19 = vadd.f32 %v3483_v52, %v500_v40 }
 0x154   :  { %v569_v62 = vadd.f32 %v568_v30, %v562_v6  ;;  %v631_v35 = vadd.f32 %v630_v26, %v624_v1  ;;  %v199_v36 = vmax.f32 %v198_v63, 0.0  ;;  %v260_v17 = vmax.f32 %v259_v50, 0.0  ;;  %v3489_v30 = vld [vmem:[#allocation183_spill] sm:$0xff] }
 0x155   :  { %v322_v10 = vmax.f32 %v321_v32, 0.0  ;;  %v384_v58 = vmax.f32 %v383_v31, 0.0  ;;  %v446_v18 = vmax.f32 %v445_v39, 0.0  ;;  %v508_v27 = vmax.f32 %v507_v19, 0.0 }
 0x156   :  { %v570_v29 = vmax.f32 %v569_v62, 0.0  ;;  %v632_v2 = vmax.f32 %v631_v35, 0.0  ;;  %v205_v3 = vmul.f32 %v3484_v7, %v199_v36  ;;  %v266_v15 = vmul.f32 %v3485_v11, %v260_v17 }
 0x157   :  { %v328_v38 = vmul.f32 %v3486_v20, %v322_v10  ;;  %v390_v8 = vmul.f32 %v3487_v33, %v384_v58  ;;  %v452_v9 = vmul.f32 %v3488_v45, %v446_v18  ;;  %v514_v26 = vmul.f32 %v3489_v30, %v508_v27 }
 0x158   :  { %v576_v4 = vmul.f32 %v3490_v61, %v570_v29  ;;  %v638_v16 = vmul.f32 %v3491_v12, %v632_v2  ;;  %v267_v59 = vadd.f32 %v266_v15, %v205_v3  ;;  %v642_v13 = vstv %s3492_s25 }
 0x159   :  { %v643_v22 = vstv %s3493_s12  ;;  %v648_v42 = vlaneseq }
 0x15a   :  { %v329_v53 = vadd.f32 %v328_v38, %v267_v59  ;;  %v644_v44 = vsel %vm129_vm1, %v642_v13, %v643_v22 }
 0x15b   :  { %v2582_v5 = vand.u32 127, %v648_v42 }
 0x15c   :  { %v391_v21 = vadd.f32 %v390_v8, %v329_v53 }
 0x15e   :  { %v453_v57 = vadd.f32 %v452_v9, %v391_v21 }
 0x160   :  { %v515_v60 = vadd.f32 %v514_v26, %v453_v57 }
 0x162   :  { %v577_v24 = vadd.f32 %v576_v4, %v515_v60 }
 0x164   :  { %v639_v28 = vadd.f32 %v638_v16, %v577_v24 }
 0x166   :  { %v2580_v0 = vadd.f32 %v644_v44, %v639_v28 }
 0x1c5   :  { %v655_v46 = vpop.xlane.xlu0 %654 }
 0x1c6   :  { %vm656_vm2 = vcmp.eq.f32.partialorder %v3495_v14, %v655_v46 }
 0x1c7   :  { %v657_v23 = vsel %vm656_vm2, %v2582_v5, 16 }
 0x1c8   :  { %v658_v47 = vsel %vm123_vm0, %v657_v23, 2147483647 }
 0x1c9   :  { %v660_v51 = vshra.s32 %v658_v47, 16  ;;  %v659_v48 = vand.u32 65535, %v658_v47 }
 0x1cb   :  { %v662_v54 = vcvt.s32.f32 %v660_v51  ;;  %v661_v55 = vcvt.s32.f32 %v659_v48 }
 0x1cd   :  { %663 = vmin.xlane.f32.xlu1 %v662_v54 }
 0x25a   :  { %v664_v49 = vpop.xlane.xlu1 %663 }
 0x25b   :  { %vm665_vm3 = vcmp.eq.f32.partialorder %v662_v54, %v664_v49  ;;  %v670_v6 = vcvt.f32.s32 %v664_v49 }
 0x25c   :  { %v666_v40 = vsel %vm665_vm3, %v661_v55, inf }
 0x25d   :  { %667 = vmin.xlane.f32.xlu1 %v666_v40  ;;  %v671_v25 = vshll.u32 %v670_v6, 16 }
 0x2ea   :  { %v668_v1 = vpop.xlane.xlu1 %667 }
 0x2eb   :  { %v669_v63 = vcvt.f32.s32 %v668_v1 }
 0x2ed   :  { %v2587_v43 = vadd.s32 %v671_v25, %v669_v63 }
 0x2ef   :  { %vm673_vm4 = vcmp.eq.s32.totalorder %v2582_v5, %v2587_v43 }
 0x2f0   :  { %v683_v50 = vsel %vm673_vm4, -inf, %v3495_v14 }
 0x2f1   :  { %v684_v34 = vsel %vm123_vm0, %v683_v50, -inf }
 0x2f2   :  { %685 = vmax.xlane.f32.xlu0 %v684_v34 }
 0x37f   :  { %v686_v32 = vpop.xlane.xlu0 %685 }
 0x380   :  { %vm687_vm5 = vcmp.eq.f32.partialorder %v683_v50, %v686_v32 }
 0x381   :  { %v688_v56 = vsel %vm687_vm5, %v2582_v5, 16 }
 0x382   :  { %v689_v31 = vsel %vm123_vm0, %v688_v56, 2147483647 }
 0x383   :  { %v691_v37 = vshra.s32 %v689_v31, 16  ;;  %v690_v52 = vand.u32 65535, %v689_v31 }
 0x385   :  { %v693_v39 = vcvt.s32.f32 %v691_v37  ;;  %v692_v62 = vcvt.s32.f32 %v690_v52 }
 0x387   :  { %694 = vmin.xlane.f32.xlu1 %v693_v39 }
 0x414   :  { %v695_v19 = vpop.xlane.xlu1 %694 }
 0x415   :  { %vm696_vm6 = vcmp.eq.f32.partialorder %v693_v39, %v695_v19  ;;  %v701_v36 = vcvt.f32.s32 %v695_v19 }
 0x416   :  { %v697_v35 = vsel %vm696_vm6, %v692_v62, inf }
 0x417   :  { %698 = vmin.xlane.f32.xlu0 %v697_v35  ;;  %v702_v10 = vshll.u32 %v701_v36, 16 }
 0x4a4   :  { %v699_v17 = vpop.xlane.xlu0 %698 }
 0x4a5   :  { %v700_v58 = vcvt.f32.s32 %v699_v17 }
 0x4a7   :  { %v2598_v18 = vadd.s32 %v702_v10, %v700_v58 }
 0x4a9   :  { %vm704_vm7 = vcmp.eq.s32.totalorder %v2582_v5, %v2598_v18 }
 0x4aa   :  { %v714_v27 = vsel %vm704_vm7, -inf, %v683_v50 }
 0x4ab   :  { %v715_v29 = vsel %vm123_vm0, %v714_v27, -inf }
 0x4ac   :  { %716 = vmax.xlane.f32.xlu1 %v715_v29 }
 0x539   :  { %v717_v2 = vpop.xlane.xlu1 %716 }
 0x53a   :  { %vm718_vm8 = vcmp.eq.f32.partialorder %v714_v27, %v717_v2 }
 0x53b   :  { %v719_v7 = vsel %vm718_vm8, %v2582_v5, 16 }
 0x53c   :  { %v720_v3 = vsel %vm123_vm0, %v719_v7, 2147483647 }
 0x53d   :  { %v722_v11 = vshra.s32 %v720_v3, 16  ;;  %v721_v20 = vand.u32 65535, %v720_v3 }
 0x53f   :  { %v724_v15 = vcvt.s32.f32 %v722_v11  ;;  %v723_v33 = vcvt.s32.f32 %v721_v20 }
 0x541   :  { %725 = vmin.xlane.f32.xlu0 %v724_v15 }
 0x5ce   :  { %v726_v38 = vpop.xlane.xlu0 %725 }
 0x5cf   :  { %vm727_vm9 = vcmp.eq.f32.partialorder %v724_v15, %v726_v38  ;;  %v732_v45 = vcvt.f32.s32 %v726_v38 }
 0x5d0   :  { %v728_v8 = vsel %vm727_vm9, %v723_v33, inf }
 0x5d1   :  { %729 = vmin.xlane.f32.xlu1 %v728_v8  ;;  %v733_v30 = vshll.u32 %v732_v45, 16 }
 0x65e   :  { %v730_v9 = vpop.xlane.xlu1 %729 }
 0x65f   :  { %v731_v26 = vcvt.f32.s32 %v730_v9 }
 0x661   :  { %v2608_v61 = vadd.s32 %v733_v30, %v731_v26 }
 0x663   :  { %vm735_vm10 = vcmp.eq.s32.totalorder %v2582_v5, %v2608_v61 }
 0x664   :  { %v745_v4 = vsel %vm735_vm10, -inf, %v714_v27 }
 0x665   :  { %v746_v12 = vsel %vm123_vm0, %v745_v4, -inf }
 0x666   :  { %747 = vmax.xlane.f32.xlu0 %v746_v12 }
 0x6f3   :  { %v748_v16 = vpop.xlane.xlu0 %747 }
 0x6f4   :  { %vm749_vm11 = vcmp.eq.f32.partialorder %v745_v4, %v748_v16 }
 0x6f5   :  { %v750_v59 = vsel %vm749_vm11, %v2582_v5, 16 }
 0x6f6   :  { %v751_v53 = vsel %vm123_vm0, %v750_v59, 2147483647 }
 0x6f7   :  { %v753_v21 = vshra.s32 %v751_v53, 16  ;;  %v752_v60 = vand.u32 65535, %v751_v53 }
 0x6f9   :  { %v755_v57 = vcvt.s32.f32 %v753_v21  ;;  %v754_v22 = vcvt.s32.f32 %v752_v60 }
 0x6fb   :  { %756 = vmin.xlane.f32.xlu1 %v755_v57 }
 0x788   :  { %v757_v13 = vpop.xlane.xlu1 %756 }
 0x789   :  { %vm758_vm12 = vcmp.eq.f32.partialorder %v755_v57, %v757_v13  ;;  %v763_v28 = vcvt.f32.s32 %v757_v13 }
 0x78a   :  { %v759_v24 = vsel %vm758_vm12, %v754_v22, inf }
 0x78b   :  { %760 = vmin.xlane.f32.xlu0 %v759_v24  ;;  %v764_v42 = vshll.u32 %v763_v28, 16 }
 0x818   :  { %v761_v44 = vpop.xlane.xlu0 %760 }
 0x819   :  { %v762_v46 = vcvt.f32.s32 %v761_v44 }
 0x81b   :  { %v2618_v14 = vadd.s32 %v764_v42, %v762_v46 }
 0x81d   :  { %vm766_vm13 = vcmp.eq.s32.totalorder %v2582_v5, %v2618_v14 }
 0x81e   :  { %v776_v23 = vsel %vm766_vm13, -inf, %v745_v4 }
 0x81f   :  { %v777_v47 = vsel %vm123_vm0, %v776_v23, -inf }
 0x820   :  { %778 = vmax.xlane.f32.xlu1 %v777_v47 }
 0x8ad   :  { %v779_v51 = vpop.xlane.xlu1 %778 }
 0x8ae   :  { %vm780_vm14 = vcmp.eq.f32.partialorder %v776_v23, %v779_v51 }
 0x8af   :  { %v781_v54 = vsel %vm780_vm14, %v2582_v5, 16 }
 0x8b0   :  { %v782_v48 = vsel %vm123_vm0, %v781_v54, 2147483647 }
 0x8b1   :  { %v784_v49 = vshra.s32 %v782_v48, 16  ;;  %v783_v40 = vand.u32 65535, %v782_v48 }
 0x8b3   :  { %v786_v55 = vcvt.s32.f32 %v784_v49  ;;  %v785_v1 = vcvt.s32.f32 %v783_v40 }
 0x8b5   :  { %787 = vmin.xlane.f32.xlu0 %v786_v55 }
 0x942   :  { %v788_v6 = vpop.xlane.xlu0 %787 }
 0x943   :  { %vm789_vm15 = vcmp.eq.f32.partialorder %v786_v55, %v788_v6  ;;  %v794_v63 = vcvt.f32.s32 %v788_v6 }
 0x944   :  { %v790_v25 = vsel %vm789_vm15, %v785_v1, inf }
 0x945   :  { %791 = vmin.xlane.f32.xlu1 %v790_v25  ;;  %v795_v34 = vshll.u32 %v794_v63, 16 }
 0x9d2   :  { %v792_v50 = vpop.xlane.xlu1 %791 }
 0x9d3   :  { %v793_v32 = vcvt.f32.s32 %v792_v50 }
 0x9d5   :  { %v2628_v56 = vadd.s32 %v795_v34, %v793_v32 }
 0x9d7   :  { %vm797_vm2 = vcmp.eq.s32.totalorder %v2582_v5, %v2628_v56 }
 0x9d8   :  { %v807_v31 = vsel %vm797_vm2, -inf, %v776_v23 }
 0x9d9   :  { %v808_v37 = vsel %vm123_vm0, %v807_v31, -inf }
 0x9da   :  { %809 = vmax.xlane.f32.xlu0 %v808_v37 }
 0xa67   :  { %v810_v39 = vpop.xlane.xlu0 %809 }
 0xa68   :  { %vm811_vm3 = vcmp.eq.f32.partialorder %v807_v31, %v810_v39 }
 0xa69   :  { %v812_v52 = vsel %vm811_vm3, %v2582_v5, 16 }
 0xa6a   :  { %v813_v19 = vsel %vm123_vm0, %v812_v52, 2147483647 }
 0xa6b   :  { %v815_v62 = vshra.s32 %v813_v19, 16  ;;  %v814_v36 = vand.u32 65535, %v813_v19 }
 0xa6d   :  { %v817_v35 = vcvt.s32.f32 %v815_v62  ;;  %v816_v10 = vcvt.s32.f32 %v814_v36 }
 0xa6f   :  { %818 = vmin.xlane.f32.xlu1 %v817_v35 }
 0xafc   :  { %v819_v17 = vpop.xlane.xlu1 %818 }
 0xafd   :  { %vm820_vm5 = vcmp.eq.f32.partialorder %v817_v35, %v819_v17  ;;  %v825_v27 = vcvt.f32.s32 %v819_v17 }
 0xafe   :  { %v821_v58 = vsel %vm820_vm5, %v816_v10, inf }
 0xaff   :  { %822 = vmin.xlane.f32.xlu0 %v821_v58  ;;  %v826_v2 = vshll.u32 %v825_v27, 16 }
 0xb8c   :  { %v823_v29 = vpop.xlane.xlu0 %822 }
 0xb8d   :  { %v824_v7 = vcvt.f32.s32 %v823_v29 }
 0xb8f   :  { %v2638_v3 = vadd.s32 %v826_v2, %v824_v7 }
 0xb91   :  { %vm828_vm6 = vcmp.eq.s32.totalorder %v2582_v5, %v2638_v3 }
 0xb92   :  { %v838_v11 = vsel %vm828_vm6, -inf, %v807_v31 }
 0xb93   :  { %v839_v15 = vsel %vm123_vm0, %v838_v11, -inf }
 0xb94   :  { %840 = vmax.xlane.f32.xlu1 %v839_v15 }
 0xc21   :  { %v841_v20 = vpop.xlane.xlu1 %840 }
 0xc22   :  { %vm842_vm8 = vcmp.eq.f32.partialorder %v838_v11, %v841_v20  ;;  %v736_v20 = vsel %vm735_vm10, %v2580_v0, 0.0  ;;  %vm650_vm10 = vcmp.eq.s32.totalorder %v2582_v5, 20 }
 0xc23   :  { %v843_v38 = vsel %vm842_vm8, %v2582_v5, 16 }
 0xc24   :  { %v844_v33 = vsel %vm123_vm0, %v843_v38, 2147483647  ;;  %v737_v38 = vsel %vm123_vm0, %v736_v20, 0.0 }
 0xc25   :  { %v846_v8 = vshra.s32 %v844_v33, 16  ;;  %v845_v9 = vand.u32 65535, %v844_v33  ;;  %v798_v33 = vsel %vm797_vm2, %v2580_v0, 0.0  ;;  %vm678_vm2 = vcmp.eq.s32.totalorder %v2582_v5, 0 }
 0xc27   :  { %v848_v45 = vcvt.s32.f32 %v846_v8  ;;  %v847_v26 = vcvt.s32.f32 %v845_v9  ;;  %v799_v8 = vsel %vm123_vm0, %v798_v33, 0.0 }
 0xc29   :  { %849 = vmin.xlane.f32.xlu0 %v848_v45 }
 0xcb6   :  { %v850_v30 = vpop.xlane.xlu0 %849 }
 0xcb7   :  { %vm851_vm9 = vcmp.eq.f32.partialorder %v848_v45, %v850_v30  ;;  %v856_v12 = vcvt.f32.s32 %v850_v30 }
 0xcb8   :  { %v852_v4 = vsel %vm851_vm9, %v847_v26, inf }
 0xcb9   :  { %853 = vmin.xlane.f32.xlu1 %v852_v4  ;;  %v857_v59 = vshll.u32 %v856_v12, 16 }
 0xd46   :  { %v854_v16 = vpop.xlane.xlu1 %853 }
 0xd47   :  { %v855_v53 = vcvt.f32.s32 %v854_v16 }
 0xd49   :  { %v2648_v21 = vadd.s32 %v857_v59, %v855_v53  ;;  %v1269_v59 = vmov 0.0  }
 0xd4a   :  { %v1120_v53 = vsel %vm129_vm1, 1.0, %v1269_v59  ;;  %vm709_vm1 = vcmp.eq.s32.totalorder %v2582_v5, 1 }
 0xd4b   :  { %vm859_vm11 = vcmp.eq.s32.totalorder %v2582_v5, %v2648_v21 }
 0xd4c   :  { %v869_v57 = vsel %vm859_vm11, -inf, %v838_v11  ;;  %v674_v11 = vsel %vm673_vm4, %v2580_v0, 0.0  ;;  %v860_v45 = vsel %vm859_vm11, %v2580_v0, 0.0  ;;  %vm680_vm11 = vcmp.eq.s32.totalorder %v2582_v5, 10 }
 0xd4d   :  { %v870_v60 = vsel %vm123_vm0, %v869_v57, -inf  ;;  %v675_v15 = vsel %vm123_vm0, %v674_v11, 0.0  ;;  %v861_v9 = vsel %vm123_vm0, %v860_v45, 0.0 }
 0xd4e   :  { %871 = vmax.xlane.f32.xlu0 %v870_v60  ;;  %v705_v60 = vsel %vm704_vm7, %v2580_v0, 0.0  ;;  %vm711_vm7 = vcmp.eq.s32.totalorder %v2582_v5, 11 }
 0xddb   :  { %v872_v13 = vpop.xlane.xlu0 %871 }
 0xddc   :  { %vm873_vm12 = vcmp.eq.f32.partialorder %v869_v57, %v872_v13  ;;  %v681_v13 = vcvt.s32.f32 %v2587_v43  ;;  %v829_v43 = vsel %vm828_vm6, %v2580_v0, 0.0 }
 0xddd   :  { %v874_v22 = vsel %vm873_vm12, %v2582_v5, 16  ;;  %vm742_vm12 = vcmp.eq.s32.totalorder %v2582_v5, 12 }
 0xdde   :  { %v875_v24 = vsel %vm123_vm0, %v874_v22, 2147483647  ;;  %v652_v22 = vsel %vm650_vm10, %v1120_v53, 0.0  ;;  %vm895_vm10 = vcmp.eq.s32.totalorder %v2582_v5, 7 }
 0xddf   :  { %v877_v28 = vshra.s32 %v875_v24, 16  ;;  %v876_v42 = vand.u32 65535, %v875_v24 }
 0xde1   :  { %v879_v44 = vcvt.s32.f32 %v877_v28  ;;  %v878_v23 = vcvt.s32.f32 %v876_v42  ;;  %v767_v42 = vsel %vm766_vm13, %v2580_v0, 0.0  ;;  %vm740_vm13 = vcmp.eq.s32.totalorder %v2582_v5, 2 }
 0xde3   :  { %880 = vmin.xlane.f32.xlu1 %v879_v44 }
 0xe70   :  { %v881_v46 = vpop.xlane.xlu1 %880 }
 0xe71   :  { %vm882_vm14 = vcmp.eq.f32.partialorder %v879_v44, %v881_v46  ;;  %v887_v51 = vcvt.f32.s32 %v881_v46  ;;  %v706_v44 = vsel %vm123_vm0, %v705_v60, 0.0  ;;  %v768_v46 = vsel %vm123_vm0, %v767_v42, 0.0 }
 0xe72   :  { %v883_v47 = vsel %vm882_vm14, %v878_v23, inf  ;;  %v830_v23 = vsel %vm123_vm0, %v829_v43, 0.0  ;;  %vm771_vm14 = vcmp.eq.s32.totalorder %v2582_v5, 3 }
 0xe73   :  { %884 = vmin.xlane.f32.xlu0 %v883_v47  ;;  %v888_v48 = vshll.u32 %v887_v51, 16 }
 0xf00   :  { %v885_v54 = vpop.xlane.xlu0 %884 }
 0xf01   :  { %v886_v49 = vcvt.f32.s32 %v885_v54 }
 0xf03   :  { %v2658_v55 = vadd.s32 %v888_v48, %v886_v49 }
 0xf05   :  { %vm890_vm15 = vcmp.eq.s32.totalorder %v2582_v5, %v2658_v55  ;;  %v898_v11 = vcvt.s32.f32 %v2658_v55 }
 0xf06   :  { %v900_v40 = vsel %vm890_vm15, -inf, %v869_v57  ;;  %v891_v47 = vsel %vm890_vm15, %v2580_v0, 0.0  ;;  %vm773_vm15 = vcmp.eq.s32.totalorder %v2582_v5, 13 }
 0xf07   :  { %v901_v6 = vsel %vm123_vm0, %v900_v40, -inf  ;;  %v892_v51 = vsel %vm123_vm0, %v891_v47, 0.0 }
 0xf08   :  { %902 = vmax.xlane.f32.xlu1 %v901_v6 }
 0xf95   :  { %v903_v1 = vpop.xlane.xlu1 %902 }
 0xf96   :  { %vm904_vm3 = vcmp.eq.f32.partialorder %v900_v40, %v903_v1 }
 0xf97   :  { %v905_v25 = vsel %vm904_vm3, %v2582_v5, 16  ;;  %vm802_vm3 = vcmp.eq.s32.totalorder %v2582_v5, 4 }
 0xf98   :  { %v906_v63 = vsel %vm123_vm0, %v905_v25, 2147483647  ;;  %v712_v25 = vcvt.s32.f32 %v2598_v18 }
 0xf99   :  { %v908_v50 = vshra.s32 %v906_v63, 16  ;;  %v907_v32 = vand.u32 65535, %v906_v63 }
 0xf9b   :  { %v910_v34 = vcvt.s32.f32 %v908_v50  ;;  %v909_v37 = vcvt.s32.f32 %v907_v32 }
 0xf9d   :  { %911 = vmin.xlane.f32.xlu0 %v910_v34 }
0x102a   :  { %v912_v31 = vpop.xlane.xlu0 %911 }
0x102b   :  { %vm913_vm5 = vcmp.eq.f32.partialorder %v910_v34, %v912_v31  ;;  %v918_v52 = vcvt.f32.s32 %v912_v31  ;;  %v743_v34 = vcvt.s32.f32 %v2608_v61  ;;  %v805_v61 = vcvt.s32.f32 %v2628_v56 }
0x102c   :  { %v914_v39 = vsel %vm913_vm5, %v909_v37, inf  ;;  %vm804_vm5 = vcmp.eq.s32.totalorder %v2582_v5, 14 }
0x102d   :  { %915 = vmin.xlane.f32.xlu1 %v914_v39  ;;  %v919_v62 = vshll.u32 %v918_v52, 16  ;;  %v774_v52 = vcvt.s32.f32 %v2618_v14 }
0x10ba   :  { %v916_v19 = vpop.xlane.xlu1 %915 }
0x10bb   :  { %v917_v35 = vcvt.f32.s32 %v916_v19 }
0x10bd   :  { %v2668_v36 = vadd.s32 %v919_v62, %v917_v35 }
0x10bf   :  { %vm921_vm8 = vcmp.eq.s32.totalorder %v2582_v5, %v2668_v36 }
0x10c0   :  { %v931_v17 = vsel %vm921_vm8, -inf, %v900_v40  ;;  %v922_v30 = vsel %vm921_vm8, %v2580_v0, 0.0  ;;  %vm833_vm8 = vcmp.eq.s32.totalorder %v2582_v5, 5 }
0x10c1   :  { %v932_v10 = vsel %vm123_vm0, %v931_v17, -inf  ;;  %v923_v26 = vsel %vm123_vm0, %v922_v30, 0.0 }
0x10c2   :  { %933 = vmax.xlane.f32.xlu0 %v932_v10  ;;  %v836_v10 = vcvt.s32.f32 %v2638_v3 }
0x114f   :  { %v934_v58 = vpop.xlane.xlu0 %933 }
0x1150   :  { %vm935_vm9 = vcmp.eq.f32.partialorder %v931_v17, %v934_v58 }
0x1151   :  { %v936_v27 = vsel %vm935_vm9, %v2582_v5, 16  ;;  %vm864_vm9 = vcmp.eq.s32.totalorder %v2582_v5, 6 }
0x1152   :  { %v937_v29 = vsel %vm123_vm0, %v936_v27, 2147483647 }
0x1153   :  { %v939_v2 = vshra.s32 %v937_v29, 16  ;;  %v938_v4 = vand.u32 65535, %v937_v29 }
0x1155   :  { %v941_v7 = vcvt.s32.f32 %v939_v2  ;;  %v940_v16 = vcvt.s32.f32 %v938_v4  ;;  %v867_v2 = vcvt.s32.f32 %v2648_v21 }
0x1157   :  { %942 = vmin.xlane.f32.xlu1 %v941_v7 }
0x115b   :  { %676 = vadd.xlane.f32.xlu1 %v675_v15 }
0x115f   :  { %738 = vadd.xlane.f32.xlu1 %v737_v38  ;;  %v929_v38 = vcvt.s32.f32 %v2668_v36 }
0x1163   :  { %800 = vadd.xlane.f32.xlu1 %v799_v8 }
0x1167   :  { %862 = vadd.xlane.f32.xlu1 %v861_v9 }
0x116b   :  { %924 = vadd.xlane.f32.xlu1 %v923_v26 }
0x11e4   :  { %v943_v12 = vpop.xlane.xlu1 %942 }
0x11e5   :  { %vm944_vm4 = vcmp.eq.f32.partialorder %v941_v7, %v943_v12  ;;  %v949_v54 = vcvt.f32.s32 %v943_v12 }
0x11e6   :  { %v945_v57 = vsel %vm944_vm4, %v940_v16, inf  ;;  %vm866_vm4 = vcmp.eq.s32.totalorder %v2582_v5, 16 }
0x11e7   :  { %946 = vmin.xlane.f32.xlu0 %v945_v57  ;;  %v950_v40 = vshll.u32 %v949_v54, 16 }
0x11e8   :  { %v677_v24 = vpop.xlane.xlu1 %676 }
0x11e9   :  { %v679_v28 = vsel %vm678_vm2, %v677_v24, %v652_v22  ;;  %vm897_vm2 = vcmp.eq.s32.totalorder %v2582_v5, 17 }
0x11ea   :  { %v682_v41 = vsel %vm680_vm11, %v681_v13, %v679_v28  ;;  %vm926_vm11 = vcmp.eq.s32.totalorder %v2582_v5, 8 }
0x11eb   :  { %707 = vadd.xlane.f32.xlu0 %v706_v44 }
0x11ec   :  { %v739_v48 = vpop.xlane.xlu1 %738 }
0x11ef   :  { %769 = vadd.xlane.f32.xlu0 %v768_v46 }
0x11f0   :  { %v801_v32 = vpop.xlane.xlu1 %800 }
0x11f3   :  { %831 = vadd.xlane.f32.xlu0 %v830_v23 }
0x11f4   :  { %v863_v58 = vpop.xlane.xlu1 %862 }
0x11f7   :  { %893 = vadd.xlane.f32.xlu0 %v892_v51 }
0x11f8   :  { %v925_v33 = vpop.xlane.xlu1 %924 }
0x1274   :  { %v947_v49 = vpop.xlane.xlu0 %946 }
0x1275   :  { %v948_v6 = vcvt.f32.s32 %v947_v49 }
0x1277   :  { %v951_v1 = vadd.s32 %v950_v40, %v948_v6 }
0x1278   :  { %v708_v63 = vpop.xlane.xlu0 %707 }
0x1279   :  { %v710_v50 = vsel %vm709_vm1, %v708_v63, %v682_v41  ;;  %vm952_vm6 = vcmp.eq.s32.totalorder %v2582_v5, %v951_v1  ;;  %vm928_vm1 = vcmp.eq.s32.totalorder %v2582_v5, 18  ;;  %v960_v55 = vcvt.s32.f32 %v951_v1 }
0x127a   :  { %v713_v31 = vsel %vm711_vm7, %v712_v25, %v710_v50  ;;  %v953_v37 = vsel %vm952_vm6, %v2580_v0, 0.0  ;;  %vm957_vm7 = vcmp.eq.s32.totalorder %v2582_v5, 9 }
0x127b   :  { %v954_v39 = vsel %vm123_vm0, %v953_v37, 0.0  ;;  %v741_v18 = vsel %vm740_vm13, %v739_v48, %v713_v31  ;;  %vm835_vm0 = vcmp.eq.s32.totalorder %v2582_v5, 15  ;;  %vm959_vm13 = vcmp.eq.s32.totalorder %v2582_v5, 19 }
0x127c   :  { %955 = vadd.xlane.f32.xlu0 %v954_v39  ;;  %v770_v19 = vpop.xlane.xlu0 %769  ;;  %v744_v62 = vsel %vm742_vm12, %v743_v34, %v741_v18 }
0x127d   :  { %v772_v35 = vsel %vm771_vm14, %v770_v19, %v744_v62 }
0x127e   :  { %v775_v0 = vsel %vm773_vm15, %v774_v52, %v772_v35 }
0x127f   :  { %v803_v17 = vsel %vm802_vm3, %v801_v32, %v775_v0 }
0x1280   :  { %v832_v14 = vpop.xlane.xlu0 %831  ;;  %v806_v27 = vsel %vm804_vm5, %v805_v61, %v803_v17 }
0x1281   :  { %v834_v29 = vsel %vm833_vm8, %v832_v14, %v806_v27 }
0x1282   :  { %v837_v7 = vsel %vm835_vm0, %v836_v10, %v834_v29 }
0x1283   :  { %v865_v56 = vsel %vm864_vm9, %v863_v58, %v837_v7 }
0x1284   :  { %v894_v15 = vpop.xlane.xlu0 %893  ;;  %v868_v3 = vsel %vm866_vm4, %v867_v2, %v865_v56 }
0x1285   :  { %v896_v20 = vsel %vm895_vm10, %v894_v15, %v868_v3 }
0x1286   :  { %v899_v8 = vsel %vm897_vm2, %v898_v11, %v896_v20 }
0x1287   :  { %v927_v21 = vsel %vm926_vm11, %v925_v33, %v899_v8 }
0x1288   :  { %v930_v45 = vsel %vm928_vm1, %v929_v38, %v927_v21 }
0x1309   :  { %v956_v9 = vpop.xlane.xlu0 %955 }
0x130a   :  { %v958_v30 = vsel %vm957_vm7, %v956_v9, %v930_v45 }
0x130b   :  { %v961_v26 = vsel %vm959_vm13, %v960_v55, %v958_v30 }
0x130c   :  { %962 = vst [vmem:[#allocation17] sm:$0xff] %v961_v26 }
0x130d   :  { %1237 = shalt.err (!%p1234_p0)
}
0x130e   :  { %s3496_s14 = sld [smem:[#allocation212_spill]] }
0x1314   :  { %s1238_s3 = scalar_lea.hbm %s3496_s14, 128 }
0x1315   :  { %p1239_p1 = scmp.ne.s32.totalorder %s3496_s14, %s1238_s3  ;;  %p1242_p2 = scmp.lt.u32.totalorder %s1238_s3, %s3496_s14 }
0x1317   :  { %p1244_p3 = pnand %p1242_p2, %p1239_p1 }
0x1319   :  { %1247 = shalt.err (!%p1244_p3)
}
0x131a   :  { %972 = dma.vmem_to_hbm [thread:$0]  %s970_s10, 128, %s3496_s14, [#allocation6]  }
0x131b   :  { %1258 = dma.done.wait [#allocation6], 128  }
0x131c   :  { %1259 = vsyncadd [#allocation6], 4294967168 }
0x131d   :  { %976 = vsyncpa [#allocation5], 1 }
0x131e   :  { %977 = vsyncpa [#allocation6], 1 }
0x131f   :  { %978 = vsyncpa [#allocation7], 1 }
0x1320   :  { %979 = vsyncpa [#allocation10], 1 }
0x1321   :  { %980 = vsyncpa [#allocation13], 1 }
0x1322   :  { %981 = vsyncpa [#allocation16], 1 }

</bundles_post_ra>
